<compile_context>
chip_gen: v7x
topology: tpu7x:2x2x1
jax: 0.10.0
libtpu: 0.0.40
codegen_flags: <defaults>
</compile_context>

<pallas_src>
import functools

import jax
import jax.numpy as jnp
from jax.experimental import pallas as pl
from jax.experimental.pallas import tpu as pltpu


FEATURE_SIZE = 1325  # from TransAm.__init__ default


def _linear_kernel(x_ref, wt_ref, b_ref, o_ref):
    """y = x @ Wt + b in one full-array tile.

    x_ref : (M, K) f32  activations (cast to bf16 on-chip; avoids a wrapper op)
    wt_ref: (K, N) bf16 pre-transposed weight (streamed once from HBM)
    b_ref : (1, N) f32  bias
    o_ref : (M, N) f32  output
    """
    x_bf16 = x_ref[...].astype(jnp.bfloat16)
    acc = jnp.dot(x_bf16, wt_ref[...], preferred_element_type=jnp.float32)
    o_ref[...] = acc + b_ref[...]


def linear_pallas(x2d, wt, b2d):
    """y = x2d @ W.T + b.

    x2d: (M, K) float32 activations (unpadded).
    wt : (K, N) bfloat16 pre-transposed weight (unpadded).
    b2d: (1, N) float32 bias (unpadded).
    """
    M, K = x2d.shape
    K_w, N = wt.shape
    assert K_w == K and b2d.shape == (1, N)

    w_bytes = wt.size * wt.dtype.itemsize
    x_bytes = x2d.size * x2d.dtype.itemsize
    b_bytes = b2d.size * b2d.dtype.itemsize
    out_bytes = M * N * 4

    return pl.pallas_call(
        _linear_kernel,
        out_shape=jax.ShapeDtypeStruct((M, N), jnp.float32),
        grid_spec=pltpu.PrefetchScalarGridSpec(
            num_scalar_prefetch=0,
            grid=(1,),
            in_specs=[
                # Full-array blocks: waive the (8,128) rule, no zero padding
                # and no OOB regions feed the contraction.
                pl.BlockSpec((M, K), lambda j: (0, 0)),   # x: resident
                pl.BlockSpec((K, N), lambda j: (0, 0)),   # W (pre-transposed)
                pl.BlockSpec((1, N), lambda j: (0, 0)),   # bias
            ],
            out_specs=pl.BlockSpec((M, N), lambda j: (0, 0)),
        ),
        compiler_params=pltpu.CompilerParams(
            dimension_semantics=("arbitrary",),
        ),
        cost_estimate=pl.CostEstimate(
            flops=2 * M * K * N,
            bytes_accessed=w_bytes + x_bytes + b_bytes + out_bytes,
            transcendentals=0,
        ),
    )(x2d, wt, b2d)


class TransAmPallas:
    """JAX/Pallas port of TransAm: forward(x) = decoder(x) = x @ W.T + b."""

    def __init__(self, feature_size=FEATURE_SIZE, key=None):
        self.feature_size = feature_size
        if key is None:
            key = jax.random.PRNGKey(42)
        initrange = 0.1
        # Deterministic init matching init_weights(): W ~ U(-0.1, 0.1), b = 0.
        self.weight = jax.random.uniform(
            key, (feature_size, feature_size),
            minval=-initrange, maxval=initrange, dtype=jnp.float32,
        )
        self.bias = jnp.zeros((feature_size,), jnp.float32)

        # One-time preparation (hoisted out of the per-call path):
        # transpose + bf16-cast the weight; keep everything UNPADDED so the
        # kernel never streams zero rows/columns from HBM.
        self.wt = self.weight.T.astype(jnp.bfloat16)          # (K, N) bf16
        self.b2d = self.bias.reshape(1, feature_size)          # (1, N) f32

    @functools.partial(jax.jit, static_argnums=0)
    def __call__(self, x):
        # x: (..., feature_size); apply Linear over the last dim.
        lead_shape = x.shape[:-1]
        x2d = x.reshape(-1, self.feature_size).astype(jnp.float32)
        y2d = linear_pallas(x2d, self.wt, self.b2d)
        return y2d.reshape(*lead_shape, self.feature_size)


if __name__ == "__main__":
    key = jax.random.PRNGKey(0)
    k_x, k_w = jax.random.split(key)

    batch, seq = 2, 8
    x = jax.random.normal(k_x, (batch, seq, FEATURE_SIZE), dtype=jnp.float32)

    model = TransAmPallas(feature_size=FEATURE_SIZE, key=k_w)
    out = model(x)
    out = jax.block_until_ready(out)

    # Reference check: both operands are bf16-rounded in the kernel (f32
    # accumulation), so the reference uses the same bf16-rounded operands.
    # TODO(synk): bit-level parity with the f32 PyTorch nn.Linear would require
    # keeping the weight in f32 (doubling streamed HBM bytes).
    x_bf = x.astype(jnp.bfloat16).astype(jnp.float32)
    w_bf = model.weight.astype(jnp.bfloat16).astype(jnp.float32)
    ref = jnp.einsum(
        "bsf,gf->bsg", x_bf, w_bf, preferred_element_type=jnp.float32
    ) + model.bias

    assert out.shape == (batch, seq, FEATURE_SIZE)
    assert jnp.allclose(out, ref, atol=1e-2, rtol=1e-2), "mismatch vs reference"

    print("KERNEL_OK")
</pallas_src>

<mosaic_0001>
module attributes {stable_mosaic.version = 11 : i64} {
  func.func @_linear_kernel(%arg0: i32, %arg1: memref<16x1325xf32, #tpu.memory_space<vmem>>, %arg2: memref<1325x1325xbf16, #tpu.memory_space<vmem>>, %arg3: memref<1x1325xf32, #tpu.memory_space<vmem>>, %arg4: memref<16x1325xf32, #tpu.memory_space<vmem>>) attributes {dimension_semantics = [#tpu.dimension_semantics<arbitrary>], iteration_bounds = array<i64: 1>, scalar_prefetch = 0 : i64, scratch_operands = 0 : i64, tpu.core_type = #tpu.core_type<tc>, window_params = [{pipeline_mode = #tpu.pipeline_mode<synchronous>, transform_indices = @transform_0, window_bounds = array<i64: 16, 1325>}, {pipeline_mode = #tpu.pipeline_mode<synchronous>, transform_indices = @transform_1, window_bounds = array<i64: 1325, 1325>}, {pipeline_mode = #tpu.pipeline_mode<synchronous>, transform_indices = @transform_2, window_bounds = array<i64: 1, 1325>}, {pipeline_mode = #tpu.pipeline_mode<synchronous>, transform_indices = @transform_3, window_bounds = array<i64: 16, 1325>}]} {
    %c0 = arith.constant 0 : index
    %c0_0 = arith.constant 0 : index
    %0 = vector.load %arg1[%c0, %c0_0] : memref<16x1325xf32, #tpu.memory_space<vmem>>, vector<16x1325xf32>
    %1 = arith.truncf %0 : vector<16x1325xf32> to vector<16x1325xbf16>
    %c0_1 = arith.constant 0 : index
    %c0_2 = arith.constant 0 : index
    %2 = vector.load %arg2[%c0_1, %c0_2] : memref<1325x1325xbf16, #tpu.memory_space<vmem>>, vector<1325x1325xbf16>
    %cst = arith.constant dense<0.000000e+00> : vector<16x1325xf32>
    %3 = tpu.matmul %1, %2, %cst {dimension_numbers = #tpu.dot_dimension_numbers<[1], [0], [0], [1], [0, 0, 1, 1], [], []>} : vector<16x1325xbf16>, vector<1325x1325xbf16>, vector<16x1325xf32> -> vector<16x1325xf32>
    %c0_3 = arith.constant 0 : index
    %c0_4 = arith.constant 0 : index
    %4 = vector.load %arg3[%c0_3, %c0_4] : memref<1x1325xf32, #tpu.memory_space<vmem>>, vector<1x1325xf32>
    %5 = vector.broadcast %4 : vector<1x1325xf32> to vector<16x1325xf32>
    %6 = arith.addf %3, %5 : vector<16x1325xf32>
    %c0_5 = arith.constant 0 : index
    %c0_6 = arith.constant 0 : index
    %7 = vector.load %arg4[%c0_5, %c0_6] : memref<16x1325xf32, #tpu.memory_space<vmem>>, vector<16x1325xf32>
    tpu.vector_store %arg4[%c0_5, %c0_6], %6 {strides = array<i32>} : memref<16x1325xf32, #tpu.memory_space<vmem>>, vector<16x1325xf32>,
    return
  }
  func.func @transform_0(%arg0: i32) -> (i32, i32) {
    %c0_i32 = arith.constant 0 : i32
    %c0_i32_0 = arith.constant 0 : i32
    %c0_i32_1 = arith.constant 0 : i32
    return %c0_i32, %c0_i32_0 : i32, i32
  }
  func.func @transform_1(%arg0: i32) -> (i32, i32) {
    %c0_i32 = arith.constant 0 : i32
    %c0_i32_0 = arith.constant 0 : i32
    %c0_i32_1 = arith.constant 0 : i32
    return %c0_i32, %c0_i32_0 : i32, i32
  }
  func.func @transform_2(%arg0: i32) -> (i32, i32) {
    %c0_i32 = arith.constant 0 : i32
    %c0_i32_0 = arith.constant 0 : i32
    %c0_i32_1 = arith.constant 0 : i32
    return %c0_i32, %c0_i32_0 : i32, i32
  }
  func.func @transform_3(%arg0: i32) -> (i32, i32) {
    %c0_i32 = arith.constant 0 : i32
    %c0_i32_0 = arith.constant 0 : i32
    %c0_i32_1 = arith.constant 0 : i32
    return %c0_i32, %c0_i32_0 : i32, i32
  }
}

</mosaic_0001>

<bundles_post_ra>
// kernel: a_call__.1
= control target key start
LH: loop header
LB: loop body
LE: loop exit
PB: predicated region body
PF: predicated region fallthrough
CT: control target
= control target key end

     0   :  { %8 = vsyncpa [#allocation3], 0  ;;  %s10213_s0 = inlined_call_operand.hbm [shape: f32[16,1325], index: 0, kind: input, shape index: {}]   ;;  %s10214_s1 = inlined_call_operand.hbm [shape: bf16[1325,1325], index: 1, kind: input, shape index: {}]   ;;  %s10215_s2 = inlined_call_operand.vmem [shape: f32[1,1325], index: 2, kind: input, shape index: {}]   ;;  %s10216_s3 = inlined_call_operand.hbm [shape: f32[16,1325], index: 3, kind: output, shape index: {}]  }
   0x1   :  { %9 = vsyncpa [#allocation6], 0 }
   0x2   :  { %10 = vsyncpa [#allocation4], 0  ;;  %s9962_s12 = smov [#allocation2]   ;;  %s9890_s16 = scalar_lea.hbm %s10213_s0, 2816 }
   0x3   :  { %s16_s13 = sshll.u32 %s9962_s12, 4  ;;  %p9891_p0 = scmp.ne.s32.totalorder %s10213_s0, %s9890_s16  ;;  %s17_s13 = int_to_ptr.vmem [resolvable:$true] %s16_s13 }
   0x4   :  { %p9894_p1 = scmp.lt.u32.totalorder %s9890_s16, %s10213_s0 }
   0x6   :  { %p9896_p2 = pnand %p9894_p1, %p9891_p0 }
   0x8   :  { %9899 = shalt.err (!%p9896_p2)
}
   0x9   :  { %s9900_s21 = scalar_lea.vmem %s17_s13, 2816  ;;  %p9905_p4 = scmp.lt.s32.totalorder %s17_s13, %s17_s13 }
   0xa   :  { %p9901_p3 = scmp.ne.s32.totalorder %s17_s13, %s9900_s21  ;;  %p9906_p5 = scmp.lt.s32.totalorder %s9900_s21, %s9900_s21 }
   0xc   :  { %p9907_p6 = por %p9906_p5, %p9905_p4 }
   0xe   :  { %p9908_p7 = pnand %p9907_p6, %p9901_p3 }
  0x10   :  { %9911 = shalt.err (!%p9908_p7)
}
  0x11   :  { %s9963_s22 = smov 1408   ;;  %s9964_s23 = smov 88  }
  0x12   :  { %22 = dma.hbm_to_vmem [thread:$0]  %s10213_s0, 2816, %s17_s13, [#allocation3], %s9963_s22, %s9963_s22, %s9964_s23  }
  0x13   :  { %s9965_s26 = smov [#allocation5]   ;;  %s9912_s30 = scalar_lea.hbm %s10214_s1, 116864 }
  0x14   :  { %s28_s27 = sshll.u32 %s9965_s26, 4  ;;  %p9913_p8 = scmp.ne.s32.totalorder %s10214_s1, %s9912_s30  ;;  %s29_s27 = int_to_ptr.vmem [resolvable:$true] %s28_s27 }
  0x15   :  { %p9916_p9 = scmp.lt.u32.totalorder %s9912_s30, %s10214_s1 }
  0x17   :  { %p9918_p10 = pnand %p9916_p9, %p9913_p8 }
  0x19   :  { %9921 = shalt.err (!%p9918_p10)
}
  0x1a   :  { %s9922_s8 = scalar_lea.vmem %s29_s27, 116864  ;;  %p9927_p12 = scmp.lt.s32.totalorder %s29_s27, %s29_s27 }
  0x1b   :  { %p9923_p11 = scmp.ne.s32.totalorder %s29_s27, %s9922_s8  ;;  %p9928_p13 = scmp.lt.s32.totalorder %s9922_s8, %s9922_s8 }
  0x1d   :  { %p9929_p0 = por %p9928_p13, %p9927_p12 }
  0x1f   :  { %p9930_p1 = pnand %p9929_p0, %p9923_p11 }
  0x21   :  { %9933 = shalt.err (!%p9930_p1)
}
  0x22   :  { %s9966_s0 = smov 704   ;;  %s9967_s9 = smov 44  }
  0x23   :  { %34 = dma.hbm_to_vmem [thread:$0]  %s10214_s1, 116864, %s29_s27, [#allocation6], %s9966_s0, %s9966_s0, %s9967_s9  }
  0x24   :  { %9956 = dma.done.wait [#allocation3], 2816  }
  0x25   :  { %9957 = vsyncadd [#allocation3], 4294964480 }
  0x26   :  { %9958 = dma.done.wait [#allocation6], 116864  }
  0x27   :  { %9959 = vsyncadd [#allocation6], 4294850432  ;;  %v8560_v0 = vld [vmem:[#allocation5 + $0x4] ss:$44 sps:$4 sm:$0xff]   ;;  %v8564_v2 = vld [vmem:[#allocation5] ss:$44 sps:$4 sm:$0xff]  }
  0x28   :  { %v8562_v1 = vld [vmem:[#allocation5 + $0x584] ss:$44 sps:$4 sm:$0xff]   ;;  %5810 = vmatprep.subr.bf16.mxu1 %v8560_v0  ;;  %v8565_v3 = vld [vmem:[#allocation5 + $0x580] ss:$44 sps:$4 sm:$0xff]   ;;  %v8566_v4 = vld [vmem:[#allocation5 + $0x5c] ss:$44 sps:$4 sm:$0xff]  }
  0x29   :  { %5853 = vmatprep.subr.bf16.mxu0 %v8562_v1  ;;  %5811 = vmatpush1.bf16.msra.mxu1 %v8564_v2  ;;  %v8568_v5 = vld [vmem:[#allocation5 + $0x5dc] ss:$44 sps:$4 sm:$0xff]   ;;  %v8570_v6 = vld [vmem:[#allocation5 + $0x58] ss:$44 sps:$4 sm:$0xff]   ;;  %v8572_v8 = vld [vmem:[#allocation5 + $0xb4] ss:$44 sps:$4 sm:$0xff]  }
  0x2a   :  { %5854 = vmatpush1.bf16.msra.mxu0 %v8565_v3  ;;  %5812 = vmatprep.subr.bf16.mxu1 %v8566_v4  ;;  %v8571_v7 = vld [vmem:[#allocation5 + $0x5d8] ss:$44 sps:$4 sm:$0xff]   ;;  %v8574_v9 = vld [vmem:[#allocation5 + $0x634] ss:$44 sps:$4 sm:$0xff]   ;;  %v8576_v10 = vld [vmem:[#allocation5 + $0xb0] ss:$44 sps:$4 sm:$0xff]  }
  0x2b   :  { %5855 = vmatprep.subr.bf16.mxu0 %v8568_v5  ;;  %v8577_v11 = vld [vmem:[#allocation5 + $0x630] ss:$44 sps:$4 sm:$0xff]   ;;  %v8578_v12 = vld [vmem:[#allocation5 + $0x10c] ss:$44 sps:$4 sm:$0xff]   ;;  %v8582_v14 = vld [vmem:[#allocation5 + $0x108] ss:$44 sps:$4 sm:$0xff]  }
  0x2c   :  { %v8580_v13 = vld [vmem:[#allocation5 + $0x68c] ss:$44 sps:$4 sm:$0xff]   ;;  %v8583_v15 = vld [vmem:[#allocation5 + $0x688] ss:$44 sps:$4 sm:$0xff]   ;;  %v8584_v16 = vld [vmem:[#allocation5 + $0x164] ss:$44 sps:$4 sm:$0xff]  }
  0x2d   :  { %5813 = vmatpush1.bf16.msra.mxu1 %v8570_v6  ;;  %v8586_v17 = vld [vmem:[#allocation5 + $0x6e4] ss:$44 sps:$4 sm:$0xff]   ;;  %v8588_v18 = vld [vmem:[#allocation5 + $0x160] ss:$44 sps:$4 sm:$0xff]   ;;  %v8590_v20 = vld [vmem:[#allocation5 + $0x1bc] ss:$44 sps:$4 sm:$0xff]  }
  0x2e   :  { %5856 = vmatpush1.bf16.msra.mxu0 %v8571_v7  ;;  %5814 = vmatprep.subr.bf16.mxu1 %v8572_v8  ;;  %v8589_v19 = vld [vmem:[#allocation5 + $0x6e0] ss:$44 sps:$4 sm:$0xff]   ;;  %v8592_v21 = vld [vmem:[#allocation5 + $0x73c] ss:$44 sps:$4 sm:$0xff]   ;;  %v8594_v22 = vld [vmem:[#allocation5 + $0x1b8] ss:$44 sps:$4 sm:$0xff]  }
  0x2f   :  { %5857 = vmatprep.subr.bf16.mxu0 %v8574_v9  ;;  %v8595_v23 = vld [vmem:[#allocation5 + $0x738] ss:$44 sps:$4 sm:$0xff]   ;;  %v8596_v24 = vld [vmem:[#allocation5 + $0x214] ss:$44 sps:$4 sm:$0xff]   ;;  %v8600_v26 = vld [vmem:[#allocation5 + $0x210] ss:$44 sps:$4 sm:$0xff]  }
  0x30   :  { %v8598_v25 = vld [vmem:[#allocation5 + $0x794] ss:$44 sps:$4 sm:$0xff]   ;;  %v8601_v27 = vld [vmem:[#allocation5 + $0x790] ss:$44 sps:$4 sm:$0xff]   ;;  %v8602_v28 = vld [vmem:[#allocation5 + $0x26c] ss:$44 sps:$4 sm:$0xff]  }
  0x31   :  { %5815 = vmatpush1.bf16.msra.mxu1 %v8576_v10  ;;  %v8604_v29 = vld [vmem:[#allocation5 + $0x7ec] ss:$44 sps:$4 sm:$0xff]   ;;  %v8606_v30 = vld [vmem:[#allocation5 + $0x268] ss:$44 sps:$4 sm:$0xff]   ;;  %v8608_v32 = vld [vmem:[#allocation5 + $0x2c4] ss:$44 sps:$4 sm:$0xff]  }
  0x32   :  { %5858 = vmatpush1.bf16.msra.mxu0 %v8577_v11  ;;  %5816 = vmatprep.subr.bf16.mxu1 %v8578_v12  ;;  %v8607_v31 = vld [vmem:[#allocation5 + $0x7e8] ss:$44 sps:$4 sm:$0xff]   ;;  %v8610_v33 = vld [vmem:[#allocation5 + $0x844] ss:$44 sps:$4 sm:$0xff]   ;;  %v8612_v34 = vld [vmem:[#allocation5 + $0x2c0] ss:$44 sps:$4 sm:$0xff]  }
  0x33   :  { %5859 = vmatprep.subr.bf16.mxu0 %v8580_v13  ;;  %v8613_v35 = vld [vmem:[#allocation5 + $0x840] ss:$44 sps:$4 sm:$0xff]   ;;  %v8614_v36 = vld [vmem:[#allocation5 + $0x31c] ss:$44 sps:$4 sm:$0xff]   ;;  %v8618_v38 = vld [vmem:[#allocation5 + $0x318] ss:$44 sps:$4 sm:$0xff]  }
  0x34   :  { %v8616_v37 = vld [vmem:[#allocation5 + $0x89c] ss:$44 sps:$4 sm:$0xff]   ;;  %v8619_v39 = vld [vmem:[#allocation5 + $0x898] ss:$44 sps:$4 sm:$0xff]   ;;  %v8620_v40 = vld [vmem:[#allocation5 + $0x374] ss:$44 sps:$4 sm:$0xff]  }
  0x35   :  { %5817 = vmatpush1.bf16.msra.mxu1 %v8582_v14  ;;  %v8622_v41 = vld [vmem:[#allocation5 + $0x8f4] ss:$44 sps:$4 sm:$0xff]   ;;  %v8624_v42 = vld [vmem:[#allocation5 + $0x370] ss:$44 sps:$4 sm:$0xff]   ;;  %v8626_v44 = vld [vmem:[#allocation5 + $0x3cc] ss:$44 sps:$4 sm:$0xff]  }
  0x36   :  { %5860 = vmatpush1.bf16.msra.mxu0 %v8583_v15  ;;  %5818 = vmatprep.subr.bf16.mxu1 %v8584_v16  ;;  %v8625_v43 = vld [vmem:[#allocation5 + $0x8f0] ss:$44 sps:$4 sm:$0xff]   ;;  %v8628_v45 = vld [vmem:[#allocation5 + $0x94c] ss:$44 sps:$4 sm:$0xff]   ;;  %v8630_v46 = vld [vmem:[#allocation5 + $0x3c8] ss:$44 sps:$4 sm:$0xff]  }
  0x37   :  { %5861 = vmatprep.subr.bf16.mxu0 %v8586_v17  ;;  %v8631_v47 = vld [vmem:[#allocation5 + $0x948] ss:$44 sps:$4 sm:$0xff]   ;;  %v45_v48 = vld [vmem:[#allocation2 + $0x8] sm:$0xff]  ;;  %v58_v51 = vld [vmem:[#allocation2 + $0x70] sm:$0xff]  ;;  %vm5773_vm0 = vcmask 1045504   ;;  %vm5774_vm1 = vcmask 1046528  }
  0x38   :  { %v56_v49 = vld [vmem:[#allocation2 + $0x60] sm:$0xff]  ;;  %v47_v50 = vld [vmem:[#allocation2 + $0x18] sm:$0xff]  ;;  %v8642_v60 = vld [vmem:[#allocation5 + $0x478] ss:$44 sps:$4 sm:$0xff]   ;;  %v9968_v15 = vmov 65535   ;;  %vm5769_vm2 = vcmask 367616  }
  0x39   :  { %5819 = vmatpush1.bf16.msra.mxu1 %v8588_v18  ;;  %v8632_v52 = vld [vmem:[#allocation5 + $0x424] ss:$44 sps:$4 sm:$0xff]   ;;  %v10020_v53 = vpack.c.bf16 %v56_v49, %v45_v48  ;;  %v10022_v54 = vpack.c.bf16 %v58_v51, %v47_v50  ;;  %v8636_v56 = vld [vmem:[#allocation5 + $0x420] ss:$44 sps:$4 sm:$0xff]   ;;  %v8638_v58 = vld [vmem:[#allocation5 + $0x47c] ss:$44 sps:$4 sm:$0xff]  }
  0x3a   :  { %5862 = vmatpush1.bf16.msra.mxu0 %v8589_v19  ;;  %5820 = vmatprep.subr.bf16.mxu1 %v8590_v20  ;;  %v8634_v55 = vld [vmem:[#allocation5 + $0x9a4] ss:$44 sps:$4 sm:$0xff]   ;;  %v8637_v57 = vld [vmem:[#allocation5 + $0x9a0] ss:$44 sps:$4 sm:$0xff]   ;;  %v8640_v59 = vld [vmem:[#allocation5 + $0x9fc] ss:$44 sps:$4 sm:$0xff]  }
  0x3b   :  { %5863 = vmatprep.subr.bf16.mxu0 %v8592_v21  ;;  %5842 = vmatprep.mubr.bf16.mxu1 %v10020_v53  ;;  %v8643_v61 = vld [vmem:[#allocation5 + $0x9f8] ss:$44 sps:$4 sm:$0xff]   ;;  %v8644_v62 = vld [vmem:[#allocation5 + $0x4d4] ss:$44 sps:$4 sm:$0xff]   ;;  %v8648_v0 = vld [vmem:[#allocation5 + $0x4d0] ss:$44 sps:$4 sm:$0xff]  }
  0x3c   :  { %5885 = vmatprep.mubr.bf16.mxu0 %v10022_v54  ;;  %v8646_v63 = vld [vmem:[#allocation5 + $0xa54] ss:$44 sps:$4 sm:$0xff]   ;;  %v8649_v1 = vld [vmem:[#allocation5 + $0xa50] ss:$44 sps:$4 sm:$0xff]   ;;  %v8650_v2 = vld [vmem:[#allocation5 + $0x52c] ss:$44 sps:$4 sm:$0xff]  }
  0x3d   :  { %5821 = vmatpush1.bf16.msra.mxu1 %v8594_v22  ;;  %v8652_v3 = vld [vmem:[#allocation5 + $0xaac] ss:$44 sps:$4 sm:$0xff]   ;;  %v8654_v4 = vld [vmem:[#allocation5 + $0x528] ss:$44 sps:$4 sm:$0xff]   ;;  %v46_v8 = vld [vmem:[#allocation2 + $0x10] sm:$0xff]  ;;  %v5775_v16 = vsel %vm5773_vm0, 4294967295, %v9968_v15 }
  0x3e   :  { %5864 = vmatpush1.bf16.msra.mxu0 %v8595_v23  ;;  %5822 = vmatprep.subr.bf16.mxu1 %v8596_v24  ;;  %v8655_v5 = vld [vmem:[#allocation5 + $0xaa8] ss:$44 sps:$4 sm:$0xff]   ;;  %v57_v9 = vld [vmem:[#allocation2 + $0x68] sm:$0xff]  ;;  %v8658_v10 = vld [vmem:[#allocation5 + $0xb04] ss:$44 sps:$4 sm:$0xff]   ;;  %v10030_v21 = vsel %vm5774_vm1, %v5775_v16, 0 }
  0x3f   :  { %5865 = vmatprep.subr.bf16.mxu0 %v8598_v25  ;;  %v44_v6 = vld [vmem:[#allocation2] sm:$0xff]  ;;  %v55_v7 = vld [vmem:[#allocation2 + $0x58] sm:$0xff]  ;;  %v10028_v14 = vpack.c.bf16 %v57_v9, %v46_v8  ;;  %v8662_v22 = vld [vmem:[#allocation5 + $0xb58] ss:$44 sps:$4 sm:$0xff]   ;;  %vm9971_vm3 = vmmov 0  }
  0x40   :  { %v8661_v11 = vld [vmem:[#allocation5 + $0x1b84] ss:$44 sps:$4 sm:$0xff]   ;;  %v8656_v12 = vld [vmem:[#allocation5 + $0xb00] ss:$44 sps:$4 sm:$0xff]   ;;  %v10026_v13 = vpack.c.bf16 %v55_v7, %v44_v6  ;;  %v8664_v18 = vld [vmem:[#allocation5 + $0xb5c] ss:$44 sps:$4 sm:$0xff]  }
  0x41   :  { %5823 = vmatpush1.bf16.msra.mxu1 %v8600_v26  ;;  %v8659_v17 = vld [vmem:[#allocation5 + $0x1b80] ss:$44 sps:$4 sm:$0xff]   ;;  %v8667_v19 = vld [vmem:[#allocation5 + $0x1bdc] ss:$44 sps:$4 sm:$0xff]   ;;  %v8665_v23 = vld [vmem:[#allocation5 + $0x1bd8] ss:$44 sps:$4 sm:$0xff]  }
  0x42   :  { %5866 = vmatpush1.bf16.msra.mxu0 %v8601_v27  ;;  %5824 = vmatprep.subr.bf16.mxu1 %v8602_v28  ;;  %v8673_v20 = vld [vmem:[#allocation5 + $0x1c34] ss:$44 sps:$4 sm:$0x7f]   ;;  %v8671_v24 = vld [vmem:[#allocation5 + $0x1c30] ss:$44 sps:$4 sm:$0x7f]  }
  0x43   :  { %5867 = vmatprep.subr.bf16.mxu0 %v8604_v29  ;;  %v8670_v25 = vld [vmem:[#allocation5 + $0xbb4] ss:$44 sps:$4 sm:$0xff]   ;;  %v5781_v26 = vand.u32 %v8673_v20, %v10030_v21  ;;  %v9969_v27 = vmov 0   ;;  %v8668_v28 = vld [vmem:[#allocation5 + $0xbb0] ss:$44 sps:$4 sm:$0xff]   ;;  %v5778_v29 = vand.u32 %v8671_v24, %v10030_v21 }
  0x44   :  { %v8695_v48 = vld [vmem:[#allocation5 + $0x110] ss:$44 sps:$4 sm:$0xff]   ;;  %v8700_v49 = vld [vmem:[#allocation5 + $0xd6c] ss:$44 sps:$4 sm:$0xff]   ;;  %v8722_v8 = vld [vmem:[#allocation5 + $0xec8] ss:$44 sps:$4 sm:$0xff]  }
  0x45   :  { %5825 = vmatpush1.bf16.msra.mxu1 %v8606_v30  ;;  %v54_v30 = vld [vmem:[#allocation2 + $0x50] sm:$0xff]  ;;  %v8703_v50 = vld [vmem:[#allocation5 + $0x16c] ss:$44 sps:$4 sm:$0xff]   ;;  %v8725_v9 = vld [vmem:[#allocation5 + $0x2c8] ss:$44 sps:$4 sm:$0xff]  }
  0x46   :  { %5868 = vmatpush1.bf16.msra.mxu0 %v8607_v31  ;;  %5826 = vmatprep.subr.bf16.mxu1 %v8608_v32  ;;  %v65_v31 = vld [vmem:[#allocation2 + $0xa8] sm:$0xff]  ;;  %v8731_v15 = vld [vmem:[#allocation5 + $0x320] ss:$44 sps:$4 sm:$0xff]  }
  0x47   :  { %5869 = vmatprep.subr.bf16.mxu0 %v8610_v33  ;;  %v8676_v32 = vld [vmem:[#allocation5 + $0xc0c] ss:$44 sps:$4 sm:$0xff]   ;;  %v8736_v16 = vld [vmem:[#allocation5 + $0xf7c] ss:$44 sps:$4 sm:$0xff]   ;;  %v8742_v20 = vld [vmem:[#allocation5 + $0xfd4] ss:$44 sps:$4 sm:$0xff]  }
  0x48   :  { %v8679_v33 = vld [vmem:[#allocation5 + $0xc] ss:$44 sps:$4 sm:$0xff]   ;;  %v8743_v24 = vld [vmem:[#allocation5 + $0x3d0] ss:$44 sps:$4 sm:$0xff]  }
  0x49   :  { %5827 = vmatpush1.bf16.msra.mxu1 %v8612_v34  ;;  %v10037_v34 = vpack.c.bf16 %v65_v31, %v54_v30  ;;  %v49_v51 = vld [vmem:[#allocation2 + $0x28] sm:$0xff]  ;;  %v48_v30 = vld [vmem:[#allocation2 + $0x20] sm:$0xff]  ;;  %v59_v31 = vld [vmem:[#allocation2 + $0x78] sm:$0xff] }
  0x4a   :  { %5870 = vmatpush1.bf16.msra.mxu0 %v8613_v35  ;;  %5828 = vmatprep.subr.bf16.mxu1 %v8614_v36  ;;  %v8674_v35 = vld [vmem:[#allocation5 + $0xc08] ss:$44 sps:$4 sm:$0xff]   ;;  %v8724_v6 = vld [vmem:[#allocation5 + $0xecc] ss:$44 sps:$4 sm:$0xff]  }
  0x4b   :  { %5871 = vmatprep.subr.bf16.mxu0 %v8616_v37  ;;  %v8677_v36 = vld [vmem:[#allocation5 + $0x8] ss:$44 sps:$4 sm:$0xff]   ;;  %v8682_v37 = vld [vmem:[#allocation5 + $0xc64] ss:$44 sps:$4 sm:$0xff]   ;;  %v8727_v7 = vld [vmem:[#allocation5 + $0x2cc] ss:$44 sps:$4 sm:$0xff]  }
  0x4d   :  { %5829 = vmatpush1.bf16.msra.mxu1 %v8618_v38  ;;  %v8685_v38 = vld [vmem:[#allocation5 + $0x64] ss:$44 sps:$4 sm:$0xff]  }
  0x4e   :  { %5872 = vmatpush1.bf16.msra.mxu0 %v8619_v39  ;;  %5830 = vmatprep.subr.bf16.mxu1 %v8620_v40  ;;  %v8680_v39 = vld [vmem:[#allocation5 + $0xc60] ss:$44 sps:$4 sm:$0xff]  }
  0x4f   :  { %5873 = vmatprep.subr.bf16.mxu0 %v8622_v41  ;;  %v8683_v40 = vld [vmem:[#allocation5 + $0x60] ss:$44 sps:$4 sm:$0xff]   ;;  %v8688_v41 = vld [vmem:[#allocation5 + $0xcbc] ss:$44 sps:$4 sm:$0xff]  }
  0x51   :  { %5831 = vmatpush1.bf16.msra.mxu1 %v8624_v42  ;;  %v8691_v42 = vld [vmem:[#allocation5 + $0xbc] ss:$44 sps:$4 sm:$0xff]  }
  0x52   :  { %5874 = vmatpush1.bf16.msra.mxu0 %v8625_v43  ;;  %5832 = vmatprep.subr.bf16.mxu1 %v8626_v44  ;;  %v8686_v43 = vld [vmem:[#allocation5 + $0xcb8] ss:$44 sps:$4 sm:$0xff]  }
  0x53   :  { %5875 = vmatprep.subr.bf16.mxu0 %v8628_v45  ;;  %v8689_v44 = vld [vmem:[#allocation5 + $0xb8] ss:$44 sps:$4 sm:$0xff]   ;;  %v8694_v45 = vld [vmem:[#allocation5 + $0xd14] ss:$44 sps:$4 sm:$0xff]  }
  0x55   :  { %5833 = vmatpush1.bf16.msra.mxu1 %v8630_v46  ;;  %v8697_v46 = vld [vmem:[#allocation5 + $0x114] ss:$44 sps:$4 sm:$0xff]  }
  0x56   :  { %5876 = vmatpush1.bf16.msra.mxu0 %v8631_v47  ;;  %5834 = vmatprep.subr.bf16.mxu1 %v8632_v52  ;;  %v8692_v47 = vld [vmem:[#allocation5 + $0xd10] ss:$44 sps:$4 sm:$0xff]  }
  0x57   :  { %5877 = vmatprep.subr.bf16.mxu0 %v8634_v55  ;;  %v60_v52 = vld [vmem:[#allocation2 + $0x80] sm:$0xff] }
  0x58   :  { %v10042_v55 = vpack.c.bf16 %v60_v52, %v49_v51  ;;  %v8770_v51 = vld [vmem:[#allocation5 + $0x1188] ss:$44 sps:$4 sm:$0xff]  }
  0x59   :  { %5835 = vmatpush1.bf16.msra.mxu1 %v8636_v56  ;;  %v8698_v56 = vld [vmem:[#allocation5 + $0xd68] ss:$44 sps:$4 sm:$0xff]  }
  0x5a   :  { %5878 = vmatpush1.bf16.msra.mxu0 %v8637_v57  ;;  %5836 = vmatprep.subr.bf16.mxu1 %v8638_v58  ;;  %v8701_v57 = vld [vmem:[#allocation5 + $0x168] ss:$44 sps:$4 sm:$0xff]   ;;  %v8706_v58 = vld [vmem:[#allocation5 + $0xdc4] ss:$44 sps:$4 sm:$0xff]  }
  0x5b   :  { %5879 = vmatprep.subr.bf16.mxu0 %v8640_v59  ;;  %v8709_v59 = vld [vmem:[#allocation5 + $0x1c4] ss:$44 sps:$4 sm:$0xff]   ;;  %v8773_v52 = vld [vmem:[#allocation5 + $0x588] ss:$44 sps:$4 sm:$0xff]  }
  0x5d   :  { %5837 = vmatpush1.bf16.msra.mxu1 %v8642_v60  ;;  %v8704_v60 = vld [vmem:[#allocation5 + $0xdc0] ss:$44 sps:$4 sm:$0xff]  }
  0x5e   :  { %5880 = vmatpush1.bf16.msra.mxu0 %v8643_v61  ;;  %5838 = vmatprep.subr.bf16.mxu1 %v8644_v62  ;;  %v8707_v61 = vld [vmem:[#allocation5 + $0x1c0] ss:$44 sps:$4 sm:$0xff]   ;;  %v8712_v62 = vld [vmem:[#allocation5 + $0xe1c] ss:$44 sps:$4 sm:$0xff]  }
  0x5f   :  { %5881 = vmatprep.subr.bf16.mxu0 %v8646_v63  ;;  %v8715_v63 = vld [vmem:[#allocation5 + $0x21c] ss:$44 sps:$4 sm:$0xff]  }
  0x61   :  { %5839 = vmatpush1.bf16.msra.mxu1 %v8648_v0  ;;  %v8710_v0 = vld [vmem:[#allocation5 + $0xe18] ss:$44 sps:$4 sm:$0xff]  }
  0x62   :  { %5882 = vmatpush1.bf16.msra.mxu0 %v8649_v1  ;;  %5840 = vmatprep.subr.bf16.mxu1 %v8650_v2  ;;  %v8713_v1 = vld [vmem:[#allocation5 + $0x218] ss:$44 sps:$4 sm:$0xff]   ;;  %v8718_v2 = vld [vmem:[#allocation5 + $0xe74] ss:$44 sps:$4 sm:$0xff]  }
  0x63   :  { %5883 = vmatprep.subr.bf16.mxu0 %v8652_v3  ;;  %v8721_v3 = vld [vmem:[#allocation5 + $0x274] ss:$44 sps:$4 sm:$0xff]  }
  0x65   :  { %5841 = vmatpush1.bf16.msra.mxu1 %v8654_v4  ;;  %v8716_v4 = vld [vmem:[#allocation5 + $0xe70] ss:$44 sps:$4 sm:$0xff]  }
  0x66   :  { %5884 = vmatpush1.bf16.msra.mxu0 %v8655_v5  ;;  %6025 = vmatprep.subr.bf16.mxu1 %v8661_v11  ;;  %v8719_v5 = vld [vmem:[#allocation5 + $0x270] ss:$44 sps:$4 sm:$0xff]  }
  0x67   :  { %5896 = vmatprep.subr.bf16.mxu0 %v8658_v10  ;;  %v8730_v10 = vld [vmem:[#allocation5 + $0xf24] ss:$44 sps:$4 sm:$0xff]  }
  0x68   :  { %5843 = vmatmul.mubr.bf16.vlgmr.msra.gmra.mrb[0].mxu1 %v10026_v13  ;;  %v8733_v11 = vld [vmem:[#allocation5 + $0x324] ss:$44 sps:$4 sm:$0xff]  }
  0x69   :  { %5886 = vmatmul.mubr.bf16.vlgmr.msra.gmra.mrb[0].mxu0 %v10028_v14  ;;  %6026 = vmatpush1.bf16.msra.mxu1 %v8659_v17  ;;  %v8739_v17 = vld [vmem:[#allocation5 + $0x37c] ss:$44 sps:$4 sm:$0xff]  }
  0x6a   :  { %5897 = vmatpush1.bf16.msra.mxu0 %v8656_v12  ;;  %6027 = vmatprep.subr.bf16.mxu1 %v8667_v19  ;;  %v8728_v12 = vld [vmem:[#allocation5 + $0xf20] ss:$44 sps:$4 sm:$0xff]   ;;  %v8737_v19 = vld [vmem:[#allocation5 + $0x378] ss:$44 sps:$4 sm:$0xff]  }
  0x6b   :  { %5898 = vmatprep.subr.bf16.mxu0 %v8664_v18  ;;  %6057 = vmatprep.mubr.bf16.mxu1 %v9969_v27  ;;  %v8734_v18 = vld [vmem:[#allocation5 + $0xf78] ss:$44 sps:$4 sm:$0xff]  }
  0x6c   :  { %5928 = vmatprep.mubr.bf16.mxu0 %v10042_v55 }
  0x6d   :  { %6028 = vmatpush1.bf16.msra.mxu1 %v8665_v23  ;;  %v8740_v23 = vld [vmem:[#allocation5 + $0xfd0] ss:$44 sps:$4 sm:$0xff]  }
  0x6e   :  { %5899 = vmatpush1.bf16.msra.mxu0 %v8662_v22  ;;  %6029 = vmatprep.subr.bf16.mxu1 %v5781_v26  ;;  %v8745_v22 = vld [vmem:[#allocation5 + $0x3d4] ss:$44 sps:$4 sm:$0xff]   ;;  %v8751_v26 = vld [vmem:[#allocation5 + $0x42c] ss:$44 sps:$4 sm:$0xff]  }
  0x6f   :  { %5900 = vmatprep.subr.bf16.mxu0 %v8670_v25  ;;  %v8748_v25 = vld [vmem:[#allocation5 + $0x102c] ss:$44 sps:$4 sm:$0xff]  }
  0x71   :  { %6030 = vmatpush1.bf16.msra.mxu1 %v5778_v29  ;;  %v8749_v29 = vld [vmem:[#allocation5 + $0x428] ss:$44 sps:$4 sm:$0xff]  }
  0x72   :  { %5901 = vmatpush1.bf16.msra.mxu0 %v8668_v28  ;;  %6068 = vmatprep.subr.bf16.mxu1 %v8679_v33  ;;  %v8746_v28 = vld [vmem:[#allocation5 + $0x1028] ss:$44 sps:$4 sm:$0xff]   ;;  %v8757_v33 = vld [vmem:[#allocation5 + $0x484] ss:$44 sps:$4 sm:$0xff]  }
  0x73   :  { %5902 = vmatprep.subr.bf16.mxu0 %v8676_v32  ;;  %v8754_v32 = vld [vmem:[#allocation5 + $0x1084] ss:$44 sps:$4 sm:$0xff]  }
  0x74   :  { %8299 = vmatmul.mubr.msk.bf16.vlgmr.msra.gmra.mrb[4].mxu1 %vm5769_vm2, %v10037_v34 }
  0x75   :  { %6069 = vmatpush1.bf16.msra.mxu1 %v8677_v36  ;;  %6100 = vmatprep.mubr.bf16.mxu1 %v10020_v53  ;;  %v8752_v36 = vld [vmem:[#allocation5 + $0x1080] ss:$44 sps:$4 sm:$0xff]  }
  0x76   :  { %5903 = vmatpush1.bf16.msra.mxu0 %v8674_v35  ;;  %6070 = vmatprep.subr.bf16.mxu1 %v8685_v38  ;;  %v10045_v35 = vpack.c.bf16 %v59_v31, %v48_v30  ;;  %v8760_v38 = vld [vmem:[#allocation5 + $0x10dc] ss:$44 sps:$4 sm:$0xff]   ;;  %v8824_v30 = vld [vmem:[#allocation5 + $0x14a0] ss:$44 sps:$4 sm:$0xff]  }
  0x77   :  { %5904 = vmatprep.subr.bf16.mxu0 %v8682_v37  ;;  %v8755_v37 = vld [vmem:[#allocation5 + $0x480] ss:$44 sps:$4 sm:$0xff]  }
  0x78   :  { %v8827_v31 = vld [vmem:[#allocation5 + $0x8a0] ss:$44 sps:$4 sm:$0xff]  }
  0x79   :  { %6071 = vmatpush1.bf16.msra.mxu1 %v8683_v40  ;;  %v8758_v40 = vld [vmem:[#allocation5 + $0x10d8] ss:$44 sps:$4 sm:$0xff]  }
  0x7a   :  { %5905 = vmatpush1.bf16.msra.mxu0 %v8680_v39  ;;  %6072 = vmatprep.subr.bf16.mxu1 %v8691_v42  ;;  %v8763_v39 = vld [vmem:[#allocation5 + $0x4dc] ss:$44 sps:$4 sm:$0xff]   ;;  %v8766_v42 = vld [vmem:[#allocation5 + $0x1134] ss:$44 sps:$4 sm:$0xff]  }
  0x7b   :  { %5906 = vmatprep.subr.bf16.mxu0 %v8688_v41  ;;  %v8761_v41 = vld [vmem:[#allocation5 + $0x4d8] ss:$44 sps:$4 sm:$0xff]  }
  0x7d   :  { %6073 = vmatpush1.bf16.msra.mxu1 %v8689_v44  ;;  %v51_v44 = vld [vmem:[#allocation2 + $0x38] sm:$0xff] }
  0x7e   :  { %5907 = vmatpush1.bf16.msra.mxu0 %v8686_v43  ;;  %6074 = vmatprep.subr.bf16.mxu1 %v8697_v46  ;;  %v8769_v43 = vld [vmem:[#allocation5 + $0x534] ss:$44 sps:$4 sm:$0xff]  }
  0x7f   :  { %5908 = vmatprep.subr.bf16.mxu0 %v8694_v45  ;;  %v62_v45 = vld [vmem:[#allocation2 + $0x90] sm:$0xff] }
  0x80   :  { %v10048_v46 = vpack.c.bf16 %v62_v45, %v51_v44  ;;  %v8842_v44 = vld [vmem:[#allocation5 + $0x15a8] ss:$44 sps:$4 sm:$0xff]  }
  0x81   :  { %6075 = vmatpush1.bf16.msra.mxu1 %v8695_v48  ;;  %v8767_v48 = vld [vmem:[#allocation5 + $0x530] ss:$44 sps:$4 sm:$0xff]   ;;  %v8845_v45 = vld [vmem:[#allocation5 + $0x9a8] ss:$44 sps:$4 sm:$0xff]  }
  0x82   :  { %5909 = vmatpush1.bf16.msra.mxu0 %v8692_v47  ;;  %6076 = vmatprep.subr.bf16.mxu1 %v8703_v50  ;;  %v8764_v47 = vld [vmem:[#allocation5 + $0x1130] ss:$44 sps:$4 sm:$0xff]   ;;  %v8775_v50 = vld [vmem:[#allocation5 + $0x58c] ss:$44 sps:$4 sm:$0xff]  }
  0x83   :  { %5910 = vmatprep.subr.bf16.mxu0 %v8700_v49  ;;  %v8772_v49 = vld [vmem:[#allocation5 + $0x118c] ss:$44 sps:$4 sm:$0xff]  }
  0x85   :  { %6077 = vmatpush1.bf16.msra.mxu1 %v8701_v57  ;;  %v8781_v57 = vld [vmem:[#allocation5 + $0x5e4] ss:$44 sps:$4 sm:$0xff]  }
  0x86   :  { %5911 = vmatpush1.bf16.msra.mxu0 %v8698_v56  ;;  %6078 = vmatprep.subr.bf16.mxu1 %v8709_v59  ;;  %v8778_v56 = vld [vmem:[#allocation5 + $0x11e4] ss:$44 sps:$4 sm:$0xff]   ;;  %v8779_v59 = vld [vmem:[#allocation5 + $0x5e0] ss:$44 sps:$4 sm:$0xff]  }
  0x87   :  { %5912 = vmatprep.subr.bf16.mxu0 %v8706_v58  ;;  %v8776_v58 = vld [vmem:[#allocation5 + $0x11e0] ss:$44 sps:$4 sm:$0xff]  }
  0x89   :  { %6079 = vmatpush1.bf16.msra.mxu1 %v8707_v61  ;;  %v8787_v61 = vld [vmem:[#allocation5 + $0x63c] ss:$44 sps:$4 sm:$0xff]  }
  0x8a   :  { %5913 = vmatpush1.bf16.msra.mxu0 %v8704_v60  ;;  %6080 = vmatprep.subr.bf16.mxu1 %v8715_v63  ;;  %v8784_v60 = vld [vmem:[#allocation5 + $0x123c] ss:$44 sps:$4 sm:$0xff]   ;;  %v8785_v63 = vld [vmem:[#allocation5 + $0x638] ss:$44 sps:$4 sm:$0xff]  }
  0x8b   :  { %5914 = vmatprep.subr.bf16.mxu0 %v8712_v62  ;;  %v8782_v62 = vld [vmem:[#allocation5 + $0x1238] ss:$44 sps:$4 sm:$0xff]  }
  0x8d   :  { %6081 = vmatpush1.bf16.msra.mxu1 %v8713_v1  ;;  %v8793_v1 = vld [vmem:[#allocation5 + $0x694] ss:$44 sps:$4 sm:$0xff]  }
  0x8e   :  { %5915 = vmatpush1.bf16.msra.mxu0 %v8710_v0  ;;  %6082 = vmatprep.subr.bf16.mxu1 %v8721_v3  ;;  %v8790_v0 = vld [vmem:[#allocation5 + $0x1294] ss:$44 sps:$4 sm:$0xff]   ;;  %v8791_v3 = vld [vmem:[#allocation5 + $0x690] ss:$44 sps:$4 sm:$0xff]  }
  0x8f   :  { %5916 = vmatprep.subr.bf16.mxu0 %v8718_v2  ;;  %v8788_v2 = vld [vmem:[#allocation5 + $0x1290] ss:$44 sps:$4 sm:$0xff]  }
  0x91   :  { %6083 = vmatpush1.bf16.msra.mxu1 %v8719_v5  ;;  %v8799_v5 = vld [vmem:[#allocation5 + $0x6ec] ss:$44 sps:$4 sm:$0xff]  }
  0x92   :  { %5917 = vmatpush1.bf16.msra.mxu0 %v8716_v4  ;;  %6084 = vmatprep.subr.bf16.mxu1 %v8727_v7  ;;  %v8796_v4 = vld [vmem:[#allocation5 + $0x12ec] ss:$44 sps:$4 sm:$0xff]   ;;  %v8797_v7 = vld [vmem:[#allocation5 + $0x6e8] ss:$44 sps:$4 sm:$0xff]  }
  0x93   :  { %5918 = vmatprep.subr.bf16.mxu0 %v8724_v6  ;;  %v8794_v6 = vld [vmem:[#allocation5 + $0x12e8] ss:$44 sps:$4 sm:$0xff]  }
  0x95   :  { %6085 = vmatpush1.bf16.msra.mxu1 %v8725_v9  ;;  %v8805_v9 = vld [vmem:[#allocation5 + $0x744] ss:$44 sps:$4 sm:$0xff]  }
  0x96   :  { %5919 = vmatpush1.bf16.msra.mxu0 %v8722_v8  ;;  %6086 = vmatprep.subr.bf16.mxu1 %v8733_v11  ;;  %v8802_v8 = vld [vmem:[#allocation5 + $0x1344] ss:$44 sps:$4 sm:$0xff]   ;;  %v8803_v11 = vld [vmem:[#allocation5 + $0x740] ss:$44 sps:$4 sm:$0xff]  }
  0x97   :  { %5920 = vmatprep.subr.bf16.mxu0 %v8730_v10  ;;  %v8800_v10 = vld [vmem:[#allocation5 + $0x1340] ss:$44 sps:$4 sm:$0xff]  }
  0x99   :  { %6087 = vmatpush1.bf16.msra.mxu1 %v8731_v15  ;;  %v8811_v15 = vld [vmem:[#allocation5 + $0x79c] ss:$44 sps:$4 sm:$0xff]  }
  0x9a   :  { %5921 = vmatpush1.bf16.msra.mxu0 %v8728_v12  ;;  %6088 = vmatprep.subr.bf16.mxu1 %v8739_v17  ;;  %v8808_v12 = vld [vmem:[#allocation5 + $0x139c] ss:$44 sps:$4 sm:$0xff]   ;;  %v8809_v17 = vld [vmem:[#allocation5 + $0x798] ss:$44 sps:$4 sm:$0xff]  }
  0x9b   :  { %5922 = vmatprep.subr.bf16.mxu0 %v8736_v16  ;;  %v8806_v16 = vld [vmem:[#allocation5 + $0x1398] ss:$44 sps:$4 sm:$0xff]  }
  0x9d   :  { %6089 = vmatpush1.bf16.msra.mxu1 %v8737_v19  ;;  %v8817_v19 = vld [vmem:[#allocation5 + $0x7f4] ss:$44 sps:$4 sm:$0xff]  }
  0x9e   :  { %5923 = vmatpush1.bf16.msra.mxu0 %v8734_v18  ;;  %6090 = vmatprep.subr.bf16.mxu1 %v8745_v22  ;;  %v8814_v18 = vld [vmem:[#allocation5 + $0x13f4] ss:$44 sps:$4 sm:$0xff]   ;;  %v8815_v22 = vld [vmem:[#allocation5 + $0x7f0] ss:$44 sps:$4 sm:$0xff]  }
  0x9f   :  { %5924 = vmatprep.subr.bf16.mxu0 %v8742_v20  ;;  %v8812_v20 = vld [vmem:[#allocation5 + $0x13f0] ss:$44 sps:$4 sm:$0xff]  }
  0xa1   :  { %6091 = vmatpush1.bf16.msra.mxu1 %v8743_v24  ;;  %v8823_v24 = vld [vmem:[#allocation5 + $0x84c] ss:$44 sps:$4 sm:$0xff]  }
  0xa2   :  { %5925 = vmatpush1.bf16.msra.mxu0 %v8740_v23  ;;  %6092 = vmatprep.subr.bf16.mxu1 %v8751_v26  ;;  %v8820_v23 = vld [vmem:[#allocation5 + $0x144c] ss:$44 sps:$4 sm:$0xff]   ;;  %v8821_v26 = vld [vmem:[#allocation5 + $0x848] ss:$44 sps:$4 sm:$0xff]  }
  0xa3   :  { %5926 = vmatprep.subr.bf16.mxu0 %v8748_v25  ;;  %v8818_v25 = vld [vmem:[#allocation5 + $0x1448] ss:$44 sps:$4 sm:$0xff]  }
  0xa5   :  { %6093 = vmatpush1.bf16.msra.mxu1 %v8749_v29  ;;  %v8829_v29 = vld [vmem:[#allocation5 + $0x8a4] ss:$44 sps:$4 sm:$0xff]  }
  0xa6   :  { %5927 = vmatpush1.bf16.msra.mxu0 %v8746_v28  ;;  %6094 = vmatprep.subr.bf16.mxu1 %v8757_v33  ;;  %v8826_v28 = vld [vmem:[#allocation5 + $0x14a4] ss:$44 sps:$4 sm:$0xff]   ;;  %v8835_v33 = vld [vmem:[#allocation5 + $0x8fc] ss:$44 sps:$4 sm:$0xff]  }
  0xa7   :  { %5939 = vmatprep.subr.bf16.mxu0 %v8754_v32  ;;  %v8832_v32 = vld [vmem:[#allocation5 + $0x14fc] ss:$44 sps:$4 sm:$0xff]  }
  0xa9   :  { %5929 = vmatmul.mubr.bf16.vlgmr.msra.gmra.mrb[0].mxu0 %v10045_v35  ;;  %6095 = vmatpush1.bf16.msra.mxu1 %v8755_v37  ;;  %v8833_v37 = vld [vmem:[#allocation5 + $0x8f8] ss:$44 sps:$4 sm:$0xff]  }
  0xaa   :  { %5940 = vmatpush1.bf16.msra.mxu0 %v8752_v36  ;;  %6096 = vmatprep.subr.bf16.mxu1 %v8763_v39  ;;  %v8830_v36 = vld [vmem:[#allocation5 + $0x14f8] ss:$44 sps:$4 sm:$0xff]   ;;  %v8841_v39 = vld [vmem:[#allocation5 + $0x954] ss:$44 sps:$4 sm:$0xff]  }
  0xab   :  { %5941 = vmatprep.subr.bf16.mxu0 %v8760_v38  ;;  %5971 = vmatprep.mubr.bf16.mxu0 %v10048_v46  ;;  %v8838_v38 = vld [vmem:[#allocation5 + $0x1554] ss:$44 sps:$4 sm:$0xff]  }
  0xad   :  { %6097 = vmatpush1.bf16.msra.mxu1 %v8761_v41  ;;  %v8839_v41 = vld [vmem:[#allocation5 + $0x950] ss:$44 sps:$4 sm:$0xff]  }
  0xae   :  { %5942 = vmatpush1.bf16.msra.mxu0 %v8758_v40  ;;  %6098 = vmatprep.subr.bf16.mxu1 %v8769_v43  ;;  %v8836_v40 = vld [vmem:[#allocation5 + $0x1550] ss:$44 sps:$4 sm:$0xff]   ;;  %v8847_v43 = vld [vmem:[#allocation5 + $0x9ac] ss:$44 sps:$4 sm:$0xff]  }
  0xaf   :  { %5943 = vmatprep.subr.bf16.mxu0 %v8766_v42  ;;  %v8844_v42 = vld [vmem:[#allocation5 + $0x15ac] ss:$44 sps:$4 sm:$0xff]  }
  0xb1   :  { %6099 = vmatpush1.bf16.msra.mxu1 %v8767_v48  ;;  %v61_v48 = vld [vmem:[#allocation2 + $0x88] sm:$0xff] }
  0xb2   :  { %5944 = vmatpush1.bf16.msra.mxu0 %v8764_v47  ;;  %6111 = vmatprep.subr.bf16.mxu1 %v8775_v50  ;;  %v50_v47 = vld [vmem:[#allocation2 + $0x30] sm:$0xff] }
  0xb3   :  { %5945 = vmatprep.subr.bf16.mxu0 %v8772_v49  ;;  %v8850_v49 = vld [vmem:[#allocation5 + $0x1604] ss:$44 sps:$4 sm:$0xff]  }
  0xb4   :  { %6101 = vmatmul.mubr.bf16.vlgmr.msra.gmra.mrb[8].mxu1 %v10026_v13  ;;  %v8853_v50 = vld [vmem:[#allocation5 + $0xa04] ss:$44 sps:$4 sm:$0xff]  }
  0xb5   :  { %6112 = vmatpush1.bf16.msra.mxu1 %v8773_v52  ;;  %6143 = vmatprep.mubr.bf16.mxu1 %v10022_v54  ;;  %v10053_v52 = vpack.c.bf16 %v61_v48, %v50_v47  ;;  %v8922_v47 = vld [vmem:[#allocation5 + $0x1a24] ss:$44 sps:$4 sm:$0xff]  }
  0xb6   :  { %5946 = vmatpush1.bf16.msra.mxu0 %v8770_v51  ;;  %6113 = vmatprep.subr.bf16.mxu1 %v8781_v57  ;;  %v53_v51 = vld [vmem:[#allocation2 + $0x48] sm:$0xff]  ;;  %v8848_v57 = vld [vmem:[#allocation5 + $0x1600] ss:$44 sps:$4 sm:$0xff]   ;;  %v8925_v48 = vld [vmem:[#allocation5 + $0xe24] ss:$44 sps:$4 sm:$0xff]  }
  0xb7   :  { %5947 = vmatprep.subr.bf16.mxu0 %v8778_v56  ;;  %v64_v56 = vld [vmem:[#allocation2 + $0xa0] sm:$0xff] }
  0xb9   :  { %6114 = vmatpush1.bf16.msra.mxu1 %v8779_v59  ;;  %v8856_v59 = vld [vmem:[#allocation5 + $0x165c] ss:$44 sps:$4 sm:$0xff]  }
  0xba   :  { %5948 = vmatpush1.bf16.msra.mxu0 %v8776_v58  ;;  %6115 = vmatprep.subr.bf16.mxu1 %v8787_v61  ;;  %v8851_v58 = vld [vmem:[#allocation5 + $0xa00] ss:$44 sps:$4 sm:$0xff]   ;;  %v10055_v61 = vpack.c.bf16 %v64_v56, %v53_v51  ;;  %v8928_v51 = vld [vmem:[#allocation5 + $0x1a7c] ss:$44 sps:$4 sm:$0xff]  }
  0xbb   :  { %5949 = vmatprep.subr.bf16.mxu0 %v8784_v60  ;;  %v8859_v60 = vld [vmem:[#allocation5 + $0xa5c] ss:$44 sps:$4 sm:$0xff]  }
  0xbc   :  { %v8931_v56 = vld [vmem:[#allocation5 + $0xe7c] ss:$44 sps:$4 sm:$0xff]  }
  0xbd   :  { %6116 = vmatpush1.bf16.msra.mxu1 %v8785_v63  ;;  %v8857_v63 = vld [vmem:[#allocation5 + $0xa58] ss:$44 sps:$4 sm:$0xff]  }
  0xbe   :  { %5950 = vmatpush1.bf16.msra.mxu0 %v8782_v62  ;;  %6117 = vmatprep.subr.bf16.mxu1 %v8793_v1  ;;  %v8854_v62 = vld [vmem:[#allocation5 + $0x1658] ss:$44 sps:$4 sm:$0xff]   ;;  %v8865_v1 = vld [vmem:[#allocation5 + $0xab4] ss:$44 sps:$4 sm:$0xff]  }
  0xbf   :  { %5951 = vmatprep.subr.bf16.mxu0 %v8790_v0  ;;  %v8862_v0 = vld [vmem:[#allocation5 + $0x16b4] ss:$44 sps:$4 sm:$0xff]  }
  0xc1   :  { %6118 = vmatpush1.bf16.msra.mxu1 %v8791_v3  ;;  %v8863_v3 = vld [vmem:[#allocation5 + $0xab0] ss:$44 sps:$4 sm:$0xff]  }
  0xc2   :  { %5952 = vmatpush1.bf16.msra.mxu0 %v8788_v2  ;;  %6119 = vmatprep.subr.bf16.mxu1 %v8799_v5  ;;  %v8860_v2 = vld [vmem:[#allocation5 + $0x16b0] ss:$44 sps:$4 sm:$0xff]   ;;  %v8871_v5 = vld [vmem:[#allocation5 + $0xb0c] ss:$44 sps:$4 sm:$0xff]  }
  0xc3   :  { %5953 = vmatprep.subr.bf16.mxu0 %v8796_v4  ;;  %v8868_v4 = vld [vmem:[#allocation5 + $0x170c] ss:$44 sps:$4 sm:$0xff]  }
  0xc5   :  { %6120 = vmatpush1.bf16.msra.mxu1 %v8797_v7  ;;  %v8869_v7 = vld [vmem:[#allocation5 + $0xb08] ss:$44 sps:$4 sm:$0xff]  }
  0xc6   :  { %5954 = vmatpush1.bf16.msra.mxu0 %v8794_v6  ;;  %6121 = vmatprep.subr.bf16.mxu1 %v8805_v9  ;;  %v8866_v6 = vld [vmem:[#allocation5 + $0x1708] ss:$44 sps:$4 sm:$0xff]   ;;  %v8877_v9 = vld [vmem:[#allocation5 + $0xb64] ss:$44 sps:$4 sm:$0xff]  }
  0xc7   :  { %5955 = vmatprep.subr.bf16.mxu0 %v8802_v8  ;;  %v8874_v8 = vld [vmem:[#allocation5 + $0x1764] ss:$44 sps:$4 sm:$0xff]  }
  0xc9   :  { %6122 = vmatpush1.bf16.msra.mxu1 %v8803_v11  ;;  %v8875_v11 = vld [vmem:[#allocation5 + $0xb60] ss:$44 sps:$4 sm:$0xff]  }
  0xca   :  { %5956 = vmatpush1.bf16.msra.mxu0 %v8800_v10  ;;  %6123 = vmatprep.subr.bf16.mxu1 %v8811_v15  ;;  %v8872_v10 = vld [vmem:[#allocation5 + $0x1760] ss:$44 sps:$4 sm:$0xff]   ;;  %v8883_v15 = vld [vmem:[#allocation5 + $0xbbc] ss:$44 sps:$4 sm:$0xff]  }
  0xcb   :  { %5957 = vmatprep.subr.bf16.mxu0 %v8808_v12  ;;  %v8880_v12 = vld [vmem:[#allocation5 + $0x17bc] ss:$44 sps:$4 sm:$0xff]  }
  0xcd   :  { %6124 = vmatpush1.bf16.msra.mxu1 %v8809_v17  ;;  %v8881_v17 = vld [vmem:[#allocation5 + $0xbb8] ss:$44 sps:$4 sm:$0xff]  }
  0xce   :  { %5958 = vmatpush1.bf16.msra.mxu0 %v8806_v16  ;;  %6125 = vmatprep.subr.bf16.mxu1 %v8817_v19  ;;  %v8878_v16 = vld [vmem:[#allocation5 + $0x17b8] ss:$44 sps:$4 sm:$0xff]   ;;  %v8889_v19 = vld [vmem:[#allocation5 + $0xc14] ss:$44 sps:$4 sm:$0xff]  }
  0xcf   :  { %5959 = vmatprep.subr.bf16.mxu0 %v8814_v18  ;;  %v8886_v18 = vld [vmem:[#allocation5 + $0x1814] ss:$44 sps:$4 sm:$0xff]  }
  0xd1   :  { %6126 = vmatpush1.bf16.msra.mxu1 %v8815_v22  ;;  %v8887_v22 = vld [vmem:[#allocation5 + $0xc10] ss:$44 sps:$4 sm:$0xff]  }
  0xd2   :  { %5960 = vmatpush1.bf16.msra.mxu0 %v8812_v20  ;;  %6127 = vmatprep.subr.bf16.mxu1 %v8823_v24  ;;  %v8884_v20 = vld [vmem:[#allocation5 + $0x1810] ss:$44 sps:$4 sm:$0xff]   ;;  %v8895_v24 = vld [vmem:[#allocation5 + $0xc6c] ss:$44 sps:$4 sm:$0xff]  }
  0xd3   :  { %5961 = vmatprep.subr.bf16.mxu0 %v8820_v23  ;;  %v8892_v23 = vld [vmem:[#allocation5 + $0x186c] ss:$44 sps:$4 sm:$0xff]  }
  0xd5   :  { %6128 = vmatpush1.bf16.msra.mxu1 %v8821_v26  ;;  %v8893_v26 = vld [vmem:[#allocation5 + $0xc68] ss:$44 sps:$4 sm:$0xff]  }
  0xd6   :  { %5962 = vmatpush1.bf16.msra.mxu0 %v8818_v25  ;;  %6129 = vmatprep.subr.bf16.mxu1 %v8829_v29  ;;  %v8890_v25 = vld [vmem:[#allocation5 + $0x1868] ss:$44 sps:$4 sm:$0xff]   ;;  %v8901_v29 = vld [vmem:[#allocation5 + $0xcc4] ss:$44 sps:$4 sm:$0xff]  }
  0xd7   :  { %5963 = vmatprep.subr.bf16.mxu0 %v8826_v28  ;;  %v8898_v28 = vld [vmem:[#allocation5 + $0x18c4] ss:$44 sps:$4 sm:$0xff]  }
  0xd9   :  { %6130 = vmatpush1.bf16.msra.mxu1 %v8827_v31  ;;  %v8899_v31 = vld [vmem:[#allocation5 + $0xcc0] ss:$44 sps:$4 sm:$0xff]  }
  0xda   :  { %5964 = vmatpush1.bf16.msra.mxu0 %v8824_v30  ;;  %6131 = vmatprep.subr.bf16.mxu1 %v8835_v33  ;;  %v8896_v30 = vld [vmem:[#allocation5 + $0x18c0] ss:$44 sps:$4 sm:$0xff]   ;;  %v8907_v33 = vld [vmem:[#allocation5 + $0xd1c] ss:$44 sps:$4 sm:$0xff]  }
  0xdb   :  { %5965 = vmatprep.subr.bf16.mxu0 %v8832_v32  ;;  %v8904_v32 = vld [vmem:[#allocation5 + $0x191c] ss:$44 sps:$4 sm:$0xff]  }
  0xdd   :  { %6132 = vmatpush1.bf16.msra.mxu1 %v8833_v37  ;;  %v8905_v37 = vld [vmem:[#allocation5 + $0xd18] ss:$44 sps:$4 sm:$0xff]  }
  0xde   :  { %5966 = vmatpush1.bf16.msra.mxu0 %v8830_v36  ;;  %6133 = vmatprep.subr.bf16.mxu1 %v8841_v39  ;;  %v8902_v36 = vld [vmem:[#allocation5 + $0x1918] ss:$44 sps:$4 sm:$0xff]   ;;  %v8913_v39 = vld [vmem:[#allocation5 + $0xd74] ss:$44 sps:$4 sm:$0xff]  }
  0xdf   :  { %5967 = vmatprep.subr.bf16.mxu0 %v8838_v38  ;;  %v8910_v38 = vld [vmem:[#allocation5 + $0x1974] ss:$44 sps:$4 sm:$0xff]  }
  0xe1   :  { %6134 = vmatpush1.bf16.msra.mxu1 %v8839_v41  ;;  %v8911_v41 = vld [vmem:[#allocation5 + $0xd70] ss:$44 sps:$4 sm:$0xff]  }
  0xe2   :  { %5968 = vmatpush1.bf16.msra.mxu0 %v8836_v40  ;;  %6135 = vmatprep.subr.bf16.mxu1 %v8847_v43  ;;  %v8908_v40 = vld [vmem:[#allocation5 + $0x1970] ss:$44 sps:$4 sm:$0xff]   ;;  %v8919_v43 = vld [vmem:[#allocation5 + $0xdcc] ss:$44 sps:$4 sm:$0xff]  }
  0xe3   :  { %5969 = vmatprep.subr.bf16.mxu0 %v8844_v42  ;;  %v8916_v42 = vld [vmem:[#allocation5 + $0x19cc] ss:$44 sps:$4 sm:$0xff]  }
  0xe5   :  { %6136 = vmatpush1.bf16.msra.mxu1 %v8845_v45  ;;  %v8917_v45 = vld [vmem:[#allocation5 + $0xdc8] ss:$44 sps:$4 sm:$0xff]  }
  0xe6   :  { %5970 = vmatpush1.bf16.msra.mxu0 %v8842_v44  ;;  %6137 = vmatprep.subr.bf16.mxu1 %v8853_v50  ;;  %v8914_v44 = vld [vmem:[#allocation5 + $0x19c8] ss:$44 sps:$4 sm:$0xff]   ;;  %v8923_v50 = vld [vmem:[#allocation5 + $0xe20] ss:$44 sps:$4 sm:$0xff]  }
  0xe7   :  { %5982 = vmatprep.subr.bf16.mxu0 %v8850_v49  ;;  %v8920_v49 = vld [vmem:[#allocation5 + $0x1a20] ss:$44 sps:$4 sm:$0xff]  }
  0xe9   :  { %5972 = vmatmul.mubr.bf16.vlgmr.msra.gmra.mrb[0].mxu0 %v10053_v52  ;;  %6138 = vmatpush1.bf16.msra.mxu1 %v8851_v58  ;;  %v8929_v58 = vld [vmem:[#allocation5 + $0xe78] ss:$44 sps:$4 sm:$0xff]  }
  0xea   :  { %5983 = vmatpush1.bf16.msra.mxu0 %v8848_v57  ;;  %6139 = vmatprep.subr.bf16.mxu1 %v8859_v60  ;;  %v8926_v57 = vld [vmem:[#allocation5 + $0x1a78] ss:$44 sps:$4 sm:$0xff]   ;;  %v8937_v60 = vld [vmem:[#allocation5 + $0xed4] ss:$44 sps:$4 sm:$0xff]  }
  0xeb   :  { %5984 = vmatprep.subr.bf16.mxu0 %v8856_v59  ;;  %6014 = vmatprep.mubr.bf16.mxu0 %v10055_v61  ;;  %v8934_v59 = vld [vmem:[#allocation5 + $0x1ad4] ss:$44 sps:$4 sm:$0xff]  }
  0xed   :  { %6140 = vmatpush1.bf16.msra.mxu1 %v8857_v63  ;;  %v8935_v63 = vld [vmem:[#allocation5 + $0xed0] ss:$44 sps:$4 sm:$0xff]  }
  0xee   :  { %5985 = vmatpush1.bf16.msra.mxu0 %v8854_v62  ;;  %6141 = vmatprep.subr.bf16.mxu1 %v8865_v1  ;;  %v8932_v62 = vld [vmem:[#allocation5 + $0x1ad0] ss:$44 sps:$4 sm:$0xff]   ;;  %v8943_v1 = vld [vmem:[#allocation5 + $0xf2c] ss:$44 sps:$4 sm:$0xff]  }
  0xef   :  { %5986 = vmatprep.subr.bf16.mxu0 %v8862_v0  ;;  %v8940_v0 = vld [vmem:[#allocation5 + $0x1b2c] ss:$44 sps:$4 sm:$0xff]  }
  0xf1   :  { %6142 = vmatpush1.bf16.msra.mxu1 %v8863_v3  ;;  %v8941_v3 = vld [vmem:[#allocation5 + $0xf28] ss:$44 sps:$4 sm:$0xff]  }
  0xf2   :  { %5987 = vmatpush1.bf16.msra.mxu0 %v8860_v2  ;;  %6154 = vmatprep.subr.bf16.mxu1 %v8871_v5  ;;  %v8938_v2 = vld [vmem:[#allocation5 + $0x1b28] ss:$44 sps:$4 sm:$0xff]  }
  0xf3   :  { %5988 = vmatprep.subr.bf16.mxu0 %v8868_v4  ;;  %v52_v4 = vld [vmem:[#allocation2 + $0x40] sm:$0xff]  ;;  %v63_v5 = vld [vmem:[#allocation2 + $0x98] sm:$0xff] }
  0xf4   :  { %6144 = vmatmul.mubr.bf16.vlgmr.msra.gmra.mrb[8].mxu1 %v10028_v14 }
  0xf5   :  { %6155 = vmatpush1.bf16.msra.mxu1 %v8869_v7  ;;  %6186 = vmatprep.mubr.bf16.mxu1 %v10042_v55  ;;  %v8949_v7 = vld [vmem:[#allocation5 + $0x14] ss:$44 sps:$4 sm:$0xff]  }
  0xf6   :  { %5989 = vmatpush1.bf16.msra.mxu0 %v8866_v6  ;;  %6156 = vmatprep.subr.bf16.mxu1 %v8877_v9  ;;  %v8946_v6 = vld [vmem:[#allocation5 + $0xf84] ss:$44 sps:$4 sm:$0xff]   ;;  %v8944_v9 = vld [vmem:[#allocation5 + $0xf80] ss:$44 sps:$4 sm:$0xff]  }
  0xf7   :  { %5990 = vmatprep.subr.bf16.mxu0 %v8874_v8  ;;  %v10061_v8 = vpack.c.bf16 %v63_v5, %v52_v4  ;;  %v9004_v5 = vld [vmem:[#allocation5 + $0x12f0] ss:$44 sps:$4 sm:$0xff]  }
  0xf9   :  { %6157 = vmatpush1.bf16.msra.mxu1 %v8875_v11  ;;  %v8952_v11 = vld [vmem:[#allocation5 + $0xfdc] ss:$44 sps:$4 sm:$0xff]  }
  0xfa   :  { %5991 = vmatpush1.bf16.msra.mxu0 %v8872_v10  ;;  %6158 = vmatprep.subr.bf16.mxu1 %v8883_v15  ;;  %v8947_v10 = vld [vmem:[#allocation5 + $0x10] ss:$44 sps:$4 sm:$0xff]   ;;  %v8950_v15 = vld [vmem:[#allocation5 + $0xfd8] ss:$44 sps:$4 sm:$0xff]  }
  0xfb   :  { %5992 = vmatprep.subr.bf16.mxu0 %v8880_v12  ;;  %v8955_v12 = vld [vmem:[#allocation5 + $0x6c] ss:$44 sps:$4 sm:$0xff]  }
  0xfd   :  { %6159 = vmatpush1.bf16.msra.mxu1 %v8881_v17  ;;  %v8958_v17 = vld [vmem:[#allocation5 + $0x1034] ss:$44 sps:$4 sm:$0xff]  }
  0xfe   :  { %5993 = vmatpush1.bf16.msra.mxu0 %v8878_v16  ;;  %6160 = vmatprep.subr.bf16.mxu1 %v8889_v19  ;;  %v8953_v16 = vld [vmem:[#allocation5 + $0x68] ss:$44 sps:$4 sm:$0xff]   ;;  %v8956_v19 = vld [vmem:[#allocation5 + $0x1030] ss:$44 sps:$4 sm:$0xff]  }
  0xff   :  { %5994 = vmatprep.subr.bf16.mxu0 %v8886_v18  ;;  %v8961_v18 = vld [vmem:[#allocation5 + $0xc4] ss:$44 sps:$4 sm:$0xff]  }
 0x101   :  { %6161 = vmatpush1.bf16.msra.mxu1 %v8887_v22  ;;  %v8964_v22 = vld [vmem:[#allocation5 + $0x108c] ss:$44 sps:$4 sm:$0xff]  }
 0x102   :  { %5995 = vmatpush1.bf16.msra.mxu0 %v8884_v20  ;;  %6162 = vmatprep.subr.bf16.mxu1 %v8895_v24  ;;  %v8959_v20 = vld [vmem:[#allocation5 + $0xc0] ss:$44 sps:$4 sm:$0xff]   ;;  %v8962_v24 = vld [vmem:[#allocation5 + $0x1088] ss:$44 sps:$4 sm:$0xff]  }
 0x103   :  { %5996 = vmatprep.subr.bf16.mxu0 %v8892_v23  ;;  %v8967_v23 = vld [vmem:[#allocation5 + $0x11c] ss:$44 sps:$4 sm:$0xff]  }
 0x105   :  { %6163 = vmatpush1.bf16.msra.mxu1 %v8893_v26  ;;  %v8970_v26 = vld [vmem:[#allocation5 + $0x10e4] ss:$44 sps:$4 sm:$0xff]  }
 0x106   :  { %5997 = vmatpush1.bf16.msra.mxu0 %v8890_v25  ;;  %6164 = vmatprep.subr.bf16.mxu1 %v8901_v29  ;;  %v8965_v25 = vld [vmem:[#allocation5 + $0x118] ss:$44 sps:$4 sm:$0xff]   ;;  %v8968_v29 = vld [vmem:[#allocation5 + $0x10e0] ss:$44 sps:$4 sm:$0xff]  }
 0x107   :  { %5998 = vmatprep.subr.bf16.mxu0 %v8898_v28  ;;  %v8973_v28 = vld [vmem:[#allocation5 + $0x174] ss:$44 sps:$4 sm:$0xff]  }
 0x109   :  { %6165 = vmatpush1.bf16.msra.mxu1 %v8899_v31  ;;  %v8976_v31 = vld [vmem:[#allocation5 + $0x113c] ss:$44 sps:$4 sm:$0xff]  }
 0x10a   :  { %5999 = vmatpush1.bf16.msra.mxu0 %v8896_v30  ;;  %6166 = vmatprep.subr.bf16.mxu1 %v8907_v33  ;;  %v8971_v30 = vld [vmem:[#allocation5 + $0x170] ss:$44 sps:$4 sm:$0xff]   ;;  %v8974_v33 = vld [vmem:[#allocation5 + $0x1138] ss:$44 sps:$4 sm:$0xff]  }
 0x10b   :  { %6000 = vmatprep.subr.bf16.mxu0 %v8904_v32  ;;  %v8979_v32 = vld [vmem:[#allocation5 + $0x1cc] ss:$44 sps:$4 sm:$0xff]  }
 0x10d   :  { %6167 = vmatpush1.bf16.msra.mxu1 %v8905_v37  ;;  %v8982_v37 = vld [vmem:[#allocation5 + $0x1194] ss:$44 sps:$4 sm:$0xff]  }
 0x10e   :  { %6001 = vmatpush1.bf16.msra.mxu0 %v8902_v36  ;;  %6168 = vmatprep.subr.bf16.mxu1 %v8913_v39  ;;  %v8977_v36 = vld [vmem:[#allocation5 + $0x1c8] ss:$44 sps:$4 sm:$0xff]  }
 0x10f   :  { %6002 = vmatprep.subr.bf16.mxu0 %v8910_v38  ;;  %v8985_v38 = vld [vmem:[#allocation5 + $0x224] ss:$44 sps:$4 sm:$0xff]  }
 0x111   :  { %6169 = vmatpush1.bf16.msra.mxu1 %v8911_v41  ;;  %v8983_v41 = vld [vmem:[#allocation5 + $0x220] ss:$44 sps:$4 sm:$0xff]  }
 0x112   :  { %6003 = vmatpush1.bf16.msra.mxu0 %v8908_v40  ;;  %6170 = vmatprep.subr.bf16.mxu1 %v8919_v43  ;;  %v8980_v40 = vld [vmem:[#allocation5 + $0x1190] ss:$44 sps:$4 sm:$0xff]  }
 0x113   :  { %6004 = vmatprep.subr.bf16.mxu0 %v8916_v42 }
 0x115   :  { %6171 = vmatpush1.bf16.msra.mxu1 %v8917_v45  ;;  %v8991_v45 = vld [vmem:[#allocation5 + $0x27c] ss:$44 sps:$4 sm:$0xff]  }
 0x116   :  { %6005 = vmatpush1.bf16.msra.mxu0 %v8914_v44  ;;  %6172 = vmatprep.subr.bf16.mxu1 %v8925_v48  ;;  %v8988_v44 = vld [vmem:[#allocation5 + $0x11ec] ss:$44 sps:$4 sm:$0xff]   ;;  %v8986_v48 = vld [vmem:[#allocation5 + $0x11e8] ss:$44 sps:$4 sm:$0xff]  }
 0x117   :  { %6006 = vmatprep.subr.bf16.mxu0 %v8922_v47 }
 0x119   :  { %6173 = vmatpush1.bf16.msra.mxu1 %v8923_v50  ;;  %v8994_v50 = vld [vmem:[#allocation5 + $0x1244] ss:$44 sps:$4 sm:$0xff]  }
 0x11a   :  { %6007 = vmatpush1.bf16.msra.mxu0 %v8920_v49  ;;  %6174 = vmatprep.subr.bf16.mxu1 %v8931_v56  ;;  %v8989_v49 = vld [vmem:[#allocation5 + $0x278] ss:$44 sps:$4 sm:$0xff]   ;;  %v8992_v56 = vld [vmem:[#allocation5 + $0x1240] ss:$44 sps:$4 sm:$0xff]  }
 0x11b   :  { %6008 = vmatprep.subr.bf16.mxu0 %v8928_v51  ;;  %v8997_v51 = vld [vmem:[#allocation5 + $0x2d4] ss:$44 sps:$4 sm:$0xff]  }
 0x11d   :  { %6175 = vmatpush1.bf16.msra.mxu1 %v8929_v58  ;;  %v9000_v58 = vld [vmem:[#allocation5 + $0x129c] ss:$44 sps:$4 sm:$0xff]  }
 0x11e   :  { %6009 = vmatpush1.bf16.msra.mxu0 %v8926_v57  ;;  %6176 = vmatprep.subr.bf16.mxu1 %v8937_v60  ;;  %v8995_v57 = vld [vmem:[#allocation5 + $0x2d0] ss:$44 sps:$4 sm:$0xff]  }
 0x11f   :  { %6010 = vmatprep.subr.bf16.mxu0 %v8934_v59  ;;  %v9003_v59 = vld [vmem:[#allocation5 + $0x32c] ss:$44 sps:$4 sm:$0xff]  }
 0x121   :  { %6177 = vmatpush1.bf16.msra.mxu1 %v8935_v63  ;;  %v8998_v63 = vld [vmem:[#allocation5 + $0x1298] ss:$44 sps:$4 sm:$0xff]  }
 0x122   :  { %6011 = vmatpush1.bf16.msra.mxu0 %v8932_v62  ;;  %6178 = vmatprep.subr.bf16.mxu1 %v8943_v1 }
 0x123   :  { %6012 = vmatprep.subr.bf16.mxu0 %v8940_v0  ;;  %v9001_v0 = vld [vmem:[#allocation5 + $0x328] ss:$44 sps:$4 sm:$0xff]  }
 0x125   :  { %6179 = vmatpush1.bf16.msra.mxu1 %v8941_v3  ;;  %v9009_v3 = vld [vmem:[#allocation5 + $0x384] ss:$44 sps:$4 sm:$0xff]  }
 0x126   :  { %6013 = vmatpush1.bf16.msra.mxu0 %v8938_v2  ;;  %6180 = vmatprep.subr.bf16.mxu1 %v8946_v6  ;;  %v9006_v2 = vld [vmem:[#allocation5 + $0x12f4] ss:$44 sps:$4 sm:$0xff]  }
 0x127   :  { %6326 = vmatprep.subr.bf16.mxu0 %v8949_v7  ;;  %v9007_v6 = vld [vmem:[#allocation5 + $0x380] ss:$44 sps:$4 sm:$0xff]  }
 0x128   :  { %v9012_v7 = vld [vmem:[#allocation5 + $0x134c] ss:$44 sps:$4 sm:$0xff]  }
 0x129   :  { %6015 = vmatmul.mubr.bf16.vlgmr.msra.gmra.mrb[0].mxu0 %v10061_v8  ;;  %6181 = vmatpush1.bf16.msra.mxu1 %v8944_v9  ;;  %v9015_v9 = vld [vmem:[#allocation5 + $0x3dc] ss:$44 sps:$4 sm:$0xff]  }
 0x12a   :  { %6327 = vmatpush1.bf16.msra.mxu0 %v8947_v10  ;;  %6182 = vmatprep.subr.bf16.mxu1 %v8952_v11  ;;  %v9010_v10 = vld [vmem:[#allocation5 + $0x1348] ss:$44 sps:$4 sm:$0xff]   ;;  %v9013_v11 = vld [vmem:[#allocation5 + $0x3d8] ss:$44 sps:$4 sm:$0xff]  }
 0x12b   :  { %6328 = vmatprep.subr.bf16.mxu0 %v8955_v12  ;;  %6358 = vmatprep.mubr.bf16.mxu0 %v10020_v53  ;;  %v9018_v12 = vld [vmem:[#allocation5 + $0x13a4] ss:$44 sps:$4 sm:$0xff]  }
 0x12d   :  { %6183 = vmatpush1.bf16.msra.mxu1 %v8950_v15  ;;  %v9021_v15 = vld [vmem:[#allocation5 + $0x434] ss:$44 sps:$4 sm:$0xff]  }
 0x12e   :  { %6329 = vmatpush1.bf16.msra.mxu0 %v8953_v16  ;;  %6184 = vmatprep.subr.bf16.mxu1 %v8958_v17  ;;  %v9016_v16 = vld [vmem:[#allocation5 + $0x13a0] ss:$44 sps:$4 sm:$0xff]   ;;  %v9019_v17 = vld [vmem:[#allocation5 + $0x430] ss:$44 sps:$4 sm:$0xff]  }
 0x12f   :  { %6330 = vmatprep.subr.bf16.mxu0 %v8961_v18  ;;  %v9024_v18 = vld [vmem:[#allocation5 + $0x13fc] ss:$44 sps:$4 sm:$0xff]  }
 0x131   :  { %6185 = vmatpush1.bf16.msra.mxu1 %v8956_v19  ;;  %v9027_v19 = vld [vmem:[#allocation5 + $0x48c] ss:$44 sps:$4 sm:$0xff]  }
 0x132   :  { %6331 = vmatpush1.bf16.msra.mxu0 %v8959_v20  ;;  %6197 = vmatprep.subr.bf16.mxu1 %v8964_v22  ;;  %v9022_v20 = vld [vmem:[#allocation5 + $0x13f8] ss:$44 sps:$4 sm:$0xff]   ;;  %v9025_v22 = vld [vmem:[#allocation5 + $0x488] ss:$44 sps:$4 sm:$0xff]  }
 0x133   :  { %6332 = vmatprep.subr.bf16.mxu0 %v8967_v23  ;;  %v9030_v23 = vld [vmem:[#allocation5 + $0x1454] ss:$44 sps:$4 sm:$0xff]  }
 0x134   :  { %6187 = vmatmul.mubr.bf16.vlgmr.msra.gmra.mrb[8].mxu1 %v10045_v35 }
 0x135   :  { %6198 = vmatpush1.bf16.msra.mxu1 %v8962_v24  ;;  %6229 = vmatprep.mubr.bf16.mxu1 %v10048_v46  ;;  %v9033_v24 = vld [vmem:[#allocation5 + $0x4e4] ss:$44 sps:$4 sm:$0xff]  }
 0x136   :  { %6333 = vmatpush1.bf16.msra.mxu0 %v8965_v25  ;;  %6199 = vmatprep.subr.bf16.mxu1 %v8970_v26  ;;  %v9028_v25 = vld [vmem:[#allocation5 + $0x1450] ss:$44 sps:$4 sm:$0xff]   ;;  %v9031_v26 = vld [vmem:[#allocation5 + $0x4e0] ss:$44 sps:$4 sm:$0xff]  }
 0x137   :  { %6334 = vmatprep.subr.bf16.mxu0 %v8973_v28  ;;  %v9036_v28 = vld [vmem:[#allocation5 + $0x14ac] ss:$44 sps:$4 sm:$0xff]  }
 0x139   :  { %6200 = vmatpush1.bf16.msra.mxu1 %v8968_v29  ;;  %v9039_v29 = vld [vmem:[#allocation5 + $0x53c] ss:$44 sps:$4 sm:$0xff]  }
 0x13a   :  { %6335 = vmatpush1.bf16.msra.mxu0 %v8971_v30  ;;  %6201 = vmatprep.subr.bf16.mxu1 %v8976_v31  ;;  %v9034_v30 = vld [vmem:[#allocation5 + $0x14a8] ss:$44 sps:$4 sm:$0xff]   ;;  %v9037_v31 = vld [vmem:[#allocation5 + $0x538] ss:$44 sps:$4 sm:$0xff]  }
 0x13b   :  { %6336 = vmatprep.subr.bf16.mxu0 %v8979_v32  ;;  %v10067_v39 = vpop.f32.mrb[0].mxu1  ;;  %v9042_v32 = vld [vmem:[#allocation5 + $0x1504] ss:$44 sps:$4 sm:$0xff]  }
 0x13c   :  { %v10069_v42 = vpop.f32.mrb[1].mxu1 }
 0x13d   :  { %6202 = vmatpush1.bf16.msra.mxu1 %v8974_v33  ;;  %v10071_v43 = vpop.f32.mrb[2].mxu1  ;;  %v9045_v33 = vld [vmem:[#allocation5 + $0x594] ss:$44 sps:$4 sm:$0xff]  }
 0x13e   :  { %6337 = vmatpush1.bf16.msra.mxu0 %v8977_v36  ;;  %6203 = vmatprep.subr.bf16.mxu1 %v8982_v37  ;;  %v10073_v47 = vpop.f32.mrb[3].mxu1  ;;  %v9040_v36 = vld [vmem:[#allocation5 + $0x1500] ss:$44 sps:$4 sm:$0xff]   ;;  %v9043_v37 = vld [vmem:[#allocation5 + $0x590] ss:$44 sps:$4 sm:$0xff]  }
 0x13f   :  { %6338 = vmatprep.subr.bf16.mxu0 %v8985_v38  ;;  %v9048_v38 = vld [vmem:[#allocation5 + $0x155c] ss:$44 sps:$4 sm:$0xff]  }
 0x141   :  { %6204 = vmatpush1.bf16.msra.mxu1 %v8980_v40  ;;  %v9051_v40 = vld [vmem:[#allocation5 + $0x5ec] ss:$44 sps:$4 sm:$0xff]  }
 0x142   :  { %6339 = vmatpush1.bf16.msra.mxu0 %v8983_v41  ;;  %6205 = vmatprep.subr.bf16.mxu1 %v8988_v44  ;;  %v9046_v41 = vld [vmem:[#allocation5 + $0x1558] ss:$44 sps:$4 sm:$0xff]   ;;  %v9049_v44 = vld [vmem:[#allocation5 + $0x5e8] ss:$44 sps:$4 sm:$0xff]  }
 0x143   :  { %6340 = vmatprep.subr.bf16.mxu0 %v8991_v45  ;;  %v9054_v45 = vld [vmem:[#allocation5 + $0x15b4] ss:$44 sps:$4 sm:$0xff]  }
 0x145   :  { %6206 = vmatpush1.bf16.msra.mxu1 %v8986_v48  ;;  %v9057_v48 = vld [vmem:[#allocation5 + $0x644] ss:$44 sps:$4 sm:$0xff]  }
 0x146   :  { %6341 = vmatpush1.bf16.msra.mxu0 %v8989_v49  ;;  %6207 = vmatprep.subr.bf16.mxu1 %v8994_v50  ;;  %v9052_v49 = vld [vmem:[#allocation5 + $0x15b0] ss:$44 sps:$4 sm:$0xff]   ;;  %v9055_v50 = vld [vmem:[#allocation5 + $0x640] ss:$44 sps:$4 sm:$0xff]  }
 0x147   :  { %6342 = vmatprep.subr.bf16.mxu0 %v8997_v51  ;;  %v10075_v60 = vpop.f32.mrb[4].mxu1  ;;  %v9060_v51 = vld [vmem:[#allocation5 + $0x160c] ss:$44 sps:$4 sm:$0xff]  }
 0x148   :  { %v10077_v62 = vpop.f32.mrb[5].mxu1 }
 0x149   :  { %6208 = vmatpush1.bf16.msra.mxu1 %v8992_v56  ;;  %v10079_v1 = vpop.f32.mrb[6].mxu1  ;;  %v9063_v56 = vld [vmem:[#allocation5 + $0x69c] ss:$44 sps:$4 sm:$0xff]  }
 0x14a   :  { %6343 = vmatpush1.bf16.msra.mxu0 %v8995_v57  ;;  %6209 = vmatprep.subr.bf16.mxu1 %v9000_v58  ;;  %v10081_v4 = vpop.f32.mrb[7].mxu1  ;;  %v9058_v57 = vld [vmem:[#allocation5 + $0x1608] ss:$44 sps:$4 sm:$0xff]   ;;  %v9061_v58 = vld [vmem:[#allocation5 + $0x698] ss:$44 sps:$4 sm:$0xff]  }
 0x14b   :  { %6344 = vmatprep.subr.bf16.mxu0 %v9003_v59  ;;  %v9066_v59 = vld [vmem:[#allocation5 + $0x1664] ss:$44 sps:$4 sm:$0xff]  }
 0x14d   :  { %6210 = vmatpush1.bf16.msra.mxu1 %v8998_v63  ;;  %v9069_v63 = vld [vmem:[#allocation5 + $0x6f4] ss:$44 sps:$4 sm:$0xff]  }
 0x14e   :  { %6345 = vmatpush1.bf16.msra.mxu0 %v9001_v0  ;;  %6211 = vmatprep.subr.bf16.mxu1 %v9006_v2  ;;  %v9064_v0 = vld [vmem:[#allocation5 + $0x1660] ss:$44 sps:$4 sm:$0xff]   ;;  %v9067_v2 = vld [vmem:[#allocation5 + $0x6f0] ss:$44 sps:$4 sm:$0xff]  }
 0x14f   :  { %6346 = vmatprep.subr.bf16.mxu0 %v9009_v3  ;;  %v9072_v3 = vld [vmem:[#allocation5 + $0x16bc] ss:$44 sps:$4 sm:$0xff]  }
 0x151   :  { %6212 = vmatpush1.bf16.msra.mxu1 %v9004_v5  ;;  %v9075_v5 = vld [vmem:[#allocation5 + $0x74c] ss:$44 sps:$4 sm:$0xff]  }
 0x152   :  { %6347 = vmatpush1.bf16.msra.mxu0 %v9007_v6  ;;  %6213 = vmatprep.subr.bf16.mxu1 %v9012_v7  ;;  %v9070_v6 = vld [vmem:[#allocation5 + $0x16b8] ss:$44 sps:$4 sm:$0xff]   ;;  %v9073_v7 = vld [vmem:[#allocation5 + $0x748] ss:$44 sps:$4 sm:$0xff]  }
 0x153   :  { %6348 = vmatprep.subr.bf16.mxu0 %v9015_v9  ;;  %v9078_v9 = vld [vmem:[#allocation5 + $0x1714] ss:$44 sps:$4 sm:$0xff]  }
 0x155   :  { %6214 = vmatpush1.bf16.msra.mxu1 %v9010_v10  ;;  %v9081_v10 = vld [vmem:[#allocation5 + $0x7a4] ss:$44 sps:$4 sm:$0xff]  }
 0x156   :  { %6349 = vmatpush1.bf16.msra.mxu0 %v9013_v11  ;;  %6215 = vmatprep.subr.bf16.mxu1 %v9018_v12  ;;  %v9076_v11 = vld [vmem:[#allocation5 + $0x1710] ss:$44 sps:$4 sm:$0xff]   ;;  %v9079_v12 = vld [vmem:[#allocation5 + $0x7a0] ss:$44 sps:$4 sm:$0xff]  }
 0x157   :  { %6350 = vmatprep.subr.bf16.mxu0 %v9021_v15  ;;  %v9084_v15 = vld [vmem:[#allocation5 + $0x176c] ss:$44 sps:$4 sm:$0xff]  }
 0x159   :  { %6216 = vmatpush1.bf16.msra.mxu1 %v9016_v16  ;;  %v9087_v16 = vld [vmem:[#allocation5 + $0x7fc] ss:$44 sps:$4 sm:$0xff]  }
 0x15a   :  { %6351 = vmatpush1.bf16.msra.mxu0 %v9019_v17  ;;  %6217 = vmatprep.subr.bf16.mxu1 %v9024_v18  ;;  %v9082_v17 = vld [vmem:[#allocation5 + $0x1768] ss:$44 sps:$4 sm:$0xff]   ;;  %v9085_v18 = vld [vmem:[#allocation5 + $0x7f8] ss:$44 sps:$4 sm:$0xff]  }
 0x15b   :  { %6352 = vmatprep.subr.bf16.mxu0 %v9027_v19  ;;  %v9090_v19 = vld [vmem:[#allocation5 + $0x17c4] ss:$44 sps:$4 sm:$0xff]  }
 0x15d   :  { %6218 = vmatpush1.bf16.msra.mxu1 %v9022_v20  ;;  %v9093_v20 = vld [vmem:[#allocation5 + $0x854] ss:$44 sps:$4 sm:$0xff]  }
 0x15e   :  { %6353 = vmatpush1.bf16.msra.mxu0 %v9025_v22  ;;  %6219 = vmatprep.subr.bf16.mxu1 %v9030_v23  ;;  %v9088_v22 = vld [vmem:[#allocation5 + $0x17c0] ss:$44 sps:$4 sm:$0xff]   ;;  %v9091_v23 = vld [vmem:[#allocation5 + $0x850] ss:$44 sps:$4 sm:$0xff]  }
 0x15f   :  { %6354 = vmatprep.subr.bf16.mxu0 %v9033_v24  ;;  %v9096_v24 = vld [vmem:[#allocation5 + $0x181c] ss:$44 sps:$4 sm:$0xff]  }
 0x161   :  { %6220 = vmatpush1.bf16.msra.mxu1 %v9028_v25  ;;  %v9099_v25 = vld [vmem:[#allocation5 + $0x8ac] ss:$44 sps:$4 sm:$0xff]  }
 0x162   :  { %6355 = vmatpush1.bf16.msra.mxu0 %v9031_v26  ;;  %6221 = vmatprep.subr.bf16.mxu1 %v9036_v28  ;;  %v9094_v26 = vld [vmem:[#allocation5 + $0x1818] ss:$44 sps:$4 sm:$0xff]   ;;  %v9097_v28 = vld [vmem:[#allocation5 + $0x8a8] ss:$44 sps:$4 sm:$0xff]  }
 0x163   :  { %6356 = vmatprep.subr.bf16.mxu0 %v9039_v29  ;;  %v9102_v29 = vld [vmem:[#allocation5 + $0x1874] ss:$44 sps:$4 sm:$0xff]  }
 0x165   :  { %6222 = vmatpush1.bf16.msra.mxu1 %v9034_v30  ;;  %v9105_v30 = vld [vmem:[#allocation5 + $0x904] ss:$44 sps:$4 sm:$0xff]  }
 0x166   :  { %6357 = vmatpush1.bf16.msra.mxu0 %v9037_v31  ;;  %6223 = vmatprep.subr.bf16.mxu1 %v9042_v32  ;;  %v9100_v31 = vld [vmem:[#allocation5 + $0x1870] ss:$44 sps:$4 sm:$0xff]   ;;  %v9103_v32 = vld [vmem:[#allocation5 + $0x900] ss:$44 sps:$4 sm:$0xff]  }
 0x167   :  { %6369 = vmatprep.subr.bf16.mxu0 %v9045_v33  ;;  %v9108_v33 = vld [vmem:[#allocation5 + $0x18cc] ss:$44 sps:$4 sm:$0xff]  }
 0x169   :  { %6359 = vmatmul.mubr.bf16.vlgmr.msra.gmra.mrb[4].mxu0 %v10026_v13  ;;  %6224 = vmatpush1.bf16.msra.mxu1 %v9040_v36  ;;  %v9111_v36 = vld [vmem:[#allocation5 + $0x95c] ss:$44 sps:$4 sm:$0xff]  }
 0x16a   :  { %6370 = vmatpush1.bf16.msra.mxu0 %v9043_v37  ;;  %6225 = vmatprep.subr.bf16.mxu1 %v9048_v38  ;;  %v9106_v37 = vld [vmem:[#allocation5 + $0x18c8] ss:$44 sps:$4 sm:$0xff]   ;;  %v9109_v38 = vld [vmem:[#allocation5 + $0x958] ss:$44 sps:$4 sm:$0xff]  }
 0x16b   :  { %6371 = vmatprep.subr.bf16.mxu0 %v9051_v40  ;;  %6401 = vmatprep.mubr.bf16.mxu0 %v10022_v54  ;;  %v9114_v40 = vld [vmem:[#allocation5 + $0x1924] ss:$44 sps:$4 sm:$0xff]  }
 0x16d   :  { %6226 = vmatpush1.bf16.msra.mxu1 %v9046_v41  ;;  %v9117_v41 = vld [vmem:[#allocation5 + $0x9b4] ss:$44 sps:$4 sm:$0xff]  }
 0x16e   :  { %6372 = vmatpush1.bf16.msra.mxu0 %v9049_v44  ;;  %6227 = vmatprep.subr.bf16.mxu1 %v9054_v45  ;;  %v9112_v44 = vld [vmem:[#allocation5 + $0x1920] ss:$44 sps:$4 sm:$0xff]   ;;  %v9115_v45 = vld [vmem:[#allocation5 + $0x9b0] ss:$44 sps:$4 sm:$0xff]  }
 0x16f   :  { %6373 = vmatprep.subr.bf16.mxu0 %v9057_v48  ;;  %v9120_v48 = vld [vmem:[#allocation5 + $0x197c] ss:$44 sps:$4 sm:$0xff]  }
 0x171   :  { %6228 = vmatpush1.bf16.msra.mxu1 %v9052_v49  ;;  %v9123_v49 = vld [vmem:[#allocation5 + $0xa0c] ss:$44 sps:$4 sm:$0xff]  }
 0x172   :  { %6374 = vmatpush1.bf16.msra.mxu0 %v9055_v50  ;;  %6240 = vmatprep.subr.bf16.mxu1 %v9060_v51  ;;  %v9118_v50 = vld [vmem:[#allocation5 + $0x1978] ss:$44 sps:$4 sm:$0xff]   ;;  %v9121_v51 = vld [vmem:[#allocation5 + $0xa08] ss:$44 sps:$4 sm:$0xff]  }
 0x173   :  { %6375 = vmatprep.subr.bf16.mxu0 %v9063_v56  ;;  %v9126_v56 = vld [vmem:[#allocation5 + $0x19d4] ss:$44 sps:$4 sm:$0xff]  }
 0x174   :  { %6230 = vmatmul.mubr.bf16.vlgmr.msra.gmra.mrb[8].mxu1 %v10053_v52 }
 0x175   :  { %6241 = vmatpush1.bf16.msra.mxu1 %v9058_v57  ;;  %6272 = vmatprep.mubr.bf16.mxu1 %v10055_v61  ;;  %v9129_v57 = vld [vmem:[#allocation5 + $0xa64] ss:$44 sps:$4 sm:$0xff]  }
 0x176   :  { %6376 = vmatpush1.bf16.msra.mxu0 %v9061_v58  ;;  %6242 = vmatprep.subr.bf16.mxu1 %v9066_v59  ;;  %v9124_v58 = vld [vmem:[#allocation5 + $0x19d0] ss:$44 sps:$4 sm:$0xff]   ;;  %v9127_v59 = vld [vmem:[#allocation5 + $0xa60] ss:$44 sps:$4 sm:$0xff]  }
 0x177   :  { %6377 = vmatprep.subr.bf16.mxu0 %v9069_v63  ;;  %v9132_v63 = vld [vmem:[#allocation5 + $0x1a2c] ss:$44 sps:$4 sm:$0xff]  }
 0x179   :  { %6243 = vmatpush1.bf16.msra.mxu1 %v9064_v0  ;;  %v9135_v0 = vld [vmem:[#allocation5 + $0xabc] ss:$44 sps:$4 sm:$0xff]  }
 0x17a   :  { %6378 = vmatpush1.bf16.msra.mxu0 %v9067_v2  ;;  %6244 = vmatprep.subr.bf16.mxu1 %v9072_v3  ;;  %v9130_v2 = vld [vmem:[#allocation5 + $0x1a28] ss:$44 sps:$4 sm:$0xff]   ;;  %v9133_v3 = vld [vmem:[#allocation5 + $0xab8] ss:$44 sps:$4 sm:$0xff]  }
 0x17b   :  { %6379 = vmatprep.subr.bf16.mxu0 %v9075_v5  ;;  %v9138_v5 = vld [vmem:[#allocation5 + $0x1a84] ss:$44 sps:$4 sm:$0xff]  }
 0x17d   :  { %6245 = vmatpush1.bf16.msra.mxu1 %v9070_v6  ;;  %v9141_v6 = vld [vmem:[#allocation5 + $0xb14] ss:$44 sps:$4 sm:$0xff]  }
 0x17e   :  { %6380 = vmatpush1.bf16.msra.mxu0 %v9073_v7  ;;  %6246 = vmatprep.subr.bf16.mxu1 %v9078_v9  ;;  %v9136_v7 = vld [vmem:[#allocation5 + $0x1a80] ss:$44 sps:$4 sm:$0xff]   ;;  %v9139_v9 = vld [vmem:[#allocation5 + $0xb10] ss:$44 sps:$4 sm:$0xff]  }
 0x17f   :  { %6381 = vmatprep.subr.bf16.mxu0 %v9081_v10  ;;  %v9144_v10 = vld [vmem:[#allocation5 + $0x1adc] ss:$44 sps:$4 sm:$0xff]  }
 0x181   :  { %6247 = vmatpush1.bf16.msra.mxu1 %v9076_v11  ;;  %v9147_v11 = vld [vmem:[#allocation5 + $0xb6c] ss:$44 sps:$4 sm:$0xff]  }
 0x182   :  { %6382 = vmatpush1.bf16.msra.mxu0 %v9079_v12  ;;  %6248 = vmatprep.subr.bf16.mxu1 %v9084_v15  ;;  %v9142_v12 = vld [vmem:[#allocation5 + $0x1ad8] ss:$44 sps:$4 sm:$0xff]   ;;  %v9145_v15 = vld [vmem:[#allocation5 + $0xb68] ss:$44 sps:$4 sm:$0xff]  }
 0x183   :  { %6383 = vmatprep.subr.bf16.mxu0 %v9087_v16  ;;  %v9150_v16 = vld [vmem:[#allocation5 + $0x1b34] ss:$44 sps:$4 sm:$0xff]  }
 0x185   :  { %6249 = vmatpush1.bf16.msra.mxu1 %v9082_v17  ;;  %v9153_v17 = vld [vmem:[#allocation5 + $0xbc4] ss:$44 sps:$4 sm:$0xff]  }
 0x186   :  { %6384 = vmatpush1.bf16.msra.mxu0 %v9085_v18  ;;  %6250 = vmatprep.subr.bf16.mxu1 %v9090_v19  ;;  %v9148_v18 = vld [vmem:[#allocation5 + $0x1b30] ss:$44 sps:$4 sm:$0xff]   ;;  %v9151_v19 = vld [vmem:[#allocation5 + $0xbc0] ss:$44 sps:$4 sm:$0xff]  }
 0x187   :  { %6385 = vmatprep.subr.bf16.mxu0 %v9093_v20  ;;  %v9156_v20 = vld [vmem:[#allocation5 + $0x1b8c] ss:$44 sps:$4 sm:$0xff]  }
 0x189   :  { %6251 = vmatpush1.bf16.msra.mxu1 %v9088_v22  ;;  %v9159_v22 = vld [vmem:[#allocation5 + $0xc1c] ss:$44 sps:$4 sm:$0xff]  }
 0x18a   :  { %6386 = vmatpush1.bf16.msra.mxu0 %v9091_v23  ;;  %6252 = vmatprep.subr.bf16.mxu1 %v9096_v24  ;;  %v9154_v23 = vld [vmem:[#allocation5 + $0x1b88] ss:$44 sps:$4 sm:$0xff]   ;;  %v9157_v24 = vld [vmem:[#allocation5 + $0xc18] ss:$44 sps:$4 sm:$0xff]  }
 0x18b   :  { %6387 = vmatprep.subr.bf16.mxu0 %v9099_v25  ;;  %v9162_v25 = vld [vmem:[#allocation5 + $0x1be4] ss:$44 sps:$4 sm:$0xff]  }
 0x18d   :  { %6253 = vmatpush1.bf16.msra.mxu1 %v9094_v26  ;;  %v9165_v26 = vld [vmem:[#allocation5 + $0xc74] ss:$44 sps:$4 sm:$0xff]  }
 0x18e   :  { %6388 = vmatpush1.bf16.msra.mxu0 %v9097_v28  ;;  %6254 = vmatprep.subr.bf16.mxu1 %v9102_v29  ;;  %v9168_v28 = vld [vmem:[#allocation5 + $0x1c3c] ss:$44 sps:$4 sm:$0x7f]   ;;  %v9160_v29 = vld [vmem:[#allocation5 + $0x1be0] ss:$44 sps:$4 sm:$0xff]  }
 0x18f   :  { %6389 = vmatprep.subr.bf16.mxu0 %v9105_v30  ;;  %v9163_v30 = vld [vmem:[#allocation5 + $0xc70] ss:$44 sps:$4 sm:$0xff]  }
 0x191   :  { %6255 = vmatpush1.bf16.msra.mxu1 %v9100_v31  ;;  %v9166_v31 = vld [vmem:[#allocation5 + $0x1c38] ss:$44 sps:$4 sm:$0x7f]  }
 0x192   :  { %6390 = vmatpush1.bf16.msra.mxu0 %v9103_v32  ;;  %6256 = vmatprep.subr.bf16.mxu1 %v9108_v33  ;;  %v5787_v32 = vand.u32 %v9168_v28, %v10030_v21  ;;  %v9171_v33 = vld [vmem:[#allocation5 + $0xccc] ss:$44 sps:$4 sm:$0xff]  }
 0x193   :  { %6391 = vmatprep.subr.bf16.mxu0 %v9111_v36  ;;  %v9169_v36 = vld [vmem:[#allocation5 + $0xcc8] ss:$44 sps:$4 sm:$0xff]   ;;  %v9223_v28 = vld [vmem:[#allocation5 + $0x2d8] ss:$44 sps:$4 sm:$0xff]  }
 0x195   :  { %6257 = vmatpush1.bf16.msra.mxu1 %v9106_v37  ;;  %v5784_v37 = vand.u32 %v9166_v31, %v10030_v21  ;;  %v9226_v31 = vld [vmem:[#allocation5 + $0x1038] ss:$44 sps:$4 sm:$0xff]  }
 0x196   :  { %6392 = vmatpush1.bf16.msra.mxu0 %v9109_v38  ;;  %6258 = vmatprep.subr.bf16.mxu1 %v9114_v40  ;;  %v9174_v38 = vld [vmem:[#allocation5 + $0xd24] ss:$44 sps:$4 sm:$0xff]   ;;  %v9177_v40 = vld [vmem:[#allocation5 + $0x1c] ss:$44 sps:$4 sm:$0xff]  }
 0x197   :  { %6393 = vmatprep.subr.bf16.mxu0 %v9117_v41  ;;  %v9172_v41 = vld [vmem:[#allocation5 + $0xd20] ss:$44 sps:$4 sm:$0xff]  }
 0x199   :  { %6259 = vmatpush1.bf16.msra.mxu1 %v9112_v44  ;;  %v9175_v44 = vld [vmem:[#allocation5 + $0x18] ss:$44 sps:$4 sm:$0xff]  }
 0x19a   :  { %6394 = vmatpush1.bf16.msra.mxu0 %v9115_v45  ;;  %6260 = vmatprep.subr.bf16.mxu1 %v9120_v48  ;;  %v9180_v45 = vld [vmem:[#allocation5 + $0xd7c] ss:$44 sps:$4 sm:$0xff]   ;;  %v9183_v48 = vld [vmem:[#allocation5 + $0x74] ss:$44 sps:$4 sm:$0xff]  }
 0x19b   :  { %6395 = vmatprep.subr.bf16.mxu0 %v9123_v49  ;;  %v9178_v49 = vld [vmem:[#allocation5 + $0xd78] ss:$44 sps:$4 sm:$0xff]  }
 0x19d   :  { %6261 = vmatpush1.bf16.msra.mxu1 %v9118_v50  ;;  %v9181_v50 = vld [vmem:[#allocation5 + $0x70] ss:$44 sps:$4 sm:$0xff]  }
 0x19e   :  { %6396 = vmatpush1.bf16.msra.mxu0 %v9121_v51  ;;  %6262 = vmatprep.subr.bf16.mxu1 %v9126_v56  ;;  %v9186_v51 = vld [vmem:[#allocation5 + $0xdd4] ss:$44 sps:$4 sm:$0xff]   ;;  %v9189_v56 = vld [vmem:[#allocation5 + $0xcc] ss:$44 sps:$4 sm:$0xff]  }
 0x19f   :  { %6397 = vmatprep.subr.bf16.mxu0 %v9129_v57  ;;  %v9184_v57 = vld [vmem:[#allocation5 + $0xdd0] ss:$44 sps:$4 sm:$0xff]  }
 0x1a1   :  { %6263 = vmatpush1.bf16.msra.mxu1 %v9124_v58  ;;  %v9187_v58 = vld [vmem:[#allocation5 + $0xc8] ss:$44 sps:$4 sm:$0xff]  }
 0x1a2   :  { %6398 = vmatpush1.bf16.msra.mxu0 %v9127_v59  ;;  %6264 = vmatprep.subr.bf16.mxu1 %v9132_v63  ;;  %v9192_v59 = vld [vmem:[#allocation5 + $0xe2c] ss:$44 sps:$4 sm:$0xff]   ;;  %v9195_v63 = vld [vmem:[#allocation5 + $0x124] ss:$44 sps:$4 sm:$0xff]  }
 0x1a3   :  { %6399 = vmatprep.subr.bf16.mxu0 %v9135_v0  ;;  %v9190_v0 = vld [vmem:[#allocation5 + $0xe28] ss:$44 sps:$4 sm:$0xff]  }
 0x1a5   :  { %6265 = vmatpush1.bf16.msra.mxu1 %v9130_v2  ;;  %v9193_v2 = vld [vmem:[#allocation5 + $0x120] ss:$44 sps:$4 sm:$0xff]  }
 0x1a6   :  { %6400 = vmatpush1.bf16.msra.mxu0 %v9133_v3  ;;  %6266 = vmatprep.subr.bf16.mxu1 %v9138_v5  ;;  %v9198_v3 = vld [vmem:[#allocation5 + $0xe84] ss:$44 sps:$4 sm:$0xff]   ;;  %v9201_v5 = vld [vmem:[#allocation5 + $0x17c] ss:$44 sps:$4 sm:$0xff]  }
 0x1a7   :  { %6412 = vmatprep.subr.bf16.mxu0 %v9141_v6  ;;  %v9196_v6 = vld [vmem:[#allocation5 + $0xe80] ss:$44 sps:$4 sm:$0xff]  }
 0x1a9   :  { %6402 = vmatmul.mubr.bf16.vlgmr.msra.gmra.mrb[4].mxu0 %v10028_v14  ;;  %6267 = vmatpush1.bf16.msra.mxu1 %v9136_v7  ;;  %v9199_v7 = vld [vmem:[#allocation5 + $0x178] ss:$44 sps:$4 sm:$0xff]  }
 0x1aa   :  { %6413 = vmatpush1.bf16.msra.mxu0 %v9139_v9  ;;  %6268 = vmatprep.subr.bf16.mxu1 %v9144_v10  ;;  %v9204_v9 = vld [vmem:[#allocation5 + $0xedc] ss:$44 sps:$4 sm:$0xff]   ;;  %v9207_v10 = vld [vmem:[#allocation5 + $0x1d4] ss:$44 sps:$4 sm:$0xff]  }
 0x1ab   :  { %6414 = vmatprep.subr.bf16.mxu0 %v9147_v11  ;;  %6444 = vmatprep.mubr.bf16.mxu0 %v10042_v55  ;;  %v9202_v11 = vld [vmem:[#allocation5 + $0xed8] ss:$44 sps:$4 sm:$0xff]  }
 0x1ad   :  { %6269 = vmatpush1.bf16.msra.mxu1 %v9142_v12  ;;  %v9205_v12 = vld [vmem:[#allocation5 + $0x1d0] ss:$44 sps:$4 sm:$0xff]  }
 0x1ae   :  { %6415 = vmatpush1.bf16.msra.mxu0 %v9145_v15  ;;  %6270 = vmatprep.subr.bf16.mxu1 %v9150_v16  ;;  %v9210_v15 = vld [vmem:[#allocation5 + $0xf34] ss:$44 sps:$4 sm:$0xff]   ;;  %v9213_v16 = vld [vmem:[#allocation5 + $0x22c] ss:$44 sps:$4 sm:$0xff]  }
 0x1af   :  { %6416 = vmatprep.subr.bf16.mxu0 %v9153_v17  ;;  %v9208_v17 = vld [vmem:[#allocation5 + $0xf30] ss:$44 sps:$4 sm:$0xff]  }
 0x1b1   :  { %6271 = vmatpush1.bf16.msra.mxu1 %v9148_v18  ;;  %v9211_v18 = vld [vmem:[#allocation5 + $0x228] ss:$44 sps:$4 sm:$0xff]  }
 0x1b2   :  { %6417 = vmatpush1.bf16.msra.mxu0 %v9151_v19  ;;  %6283 = vmatprep.subr.bf16.mxu1 %v9156_v20  ;;  %v9216_v19 = vld [vmem:[#allocation5 + $0xf8c] ss:$44 sps:$4 sm:$0xff]   ;;  %v9219_v20 = vld [vmem:[#allocation5 + $0x284] ss:$44 sps:$4 sm:$0xff]  }
 0x1b3   :  { %6418 = vmatprep.subr.bf16.mxu0 %v9159_v22  ;;  %v9214_v22 = vld [vmem:[#allocation5 + $0xf88] ss:$44 sps:$4 sm:$0xff]  }
 0x1b4   :  { %6273 = vmatmul.mubr.bf16.vlgmr.msra.gmra.mrb[8].mxu1 %v10061_v8 }
 0x1b5   :  { %6284 = vmatpush1.bf16.msra.mxu1 %v9154_v23  ;;  %6315 = vmatprep.mubr.bf16.mxu1 %v9969_v27  ;;  %v9217_v23 = vld [vmem:[#allocation5 + $0x280] ss:$44 sps:$4 sm:$0xff]  }
 0x1b6   :  { %6419 = vmatpush1.bf16.msra.mxu0 %v9157_v24  ;;  %6285 = vmatprep.subr.bf16.mxu1 %v9162_v25  ;;  %v9222_v24 = vld [vmem:[#allocation5 + $0xfe4] ss:$44 sps:$4 sm:$0xff]   ;;  %v9225_v25 = vld [vmem:[#allocation5 + $0x2dc] ss:$44 sps:$4 sm:$0xff]  }
 0x1b7   :  { %6420 = vmatprep.subr.bf16.mxu0 %v9165_v26  ;;  %v9220_v26 = vld [vmem:[#allocation5 + $0xfe0] ss:$44 sps:$4 sm:$0xff]  }
 0x1b9   :  { %6286 = vmatpush1.bf16.msra.mxu1 %v9160_v29  ;;  %v9228_v29 = vld [vmem:[#allocation5 + $0x103c] ss:$44 sps:$4 sm:$0xff]  }
 0x1ba   :  { %6421 = vmatpush1.bf16.msra.mxu0 %v9163_v30  ;;  %6287 = vmatprep.subr.bf16.mxu1 %v5787_v32  ;;  %v9231_v30 = vld [vmem:[#allocation5 + $0x334] ss:$44 sps:$4 sm:$0xff]   ;;  %v9229_v32 = vld [vmem:[#allocation5 + $0x330] ss:$44 sps:$4 sm:$0xff]  }
 0x1bb   :  { %6422 = vmatprep.subr.bf16.mxu0 %v9171_v33  ;;  %v9234_v33 = vld [vmem:[#allocation5 + $0x1094] ss:$44 sps:$4 sm:$0xff]  }
 0x1bd   :  { %6288 = vmatpush1.bf16.msra.mxu1 %v5784_v37  ;;  %v9232_v37 = vld [vmem:[#allocation5 + $0x1090] ss:$44 sps:$4 sm:$0xff]  }
 0x1be   :  { %6423 = vmatpush1.bf16.msra.mxu0 %v9169_v36  ;;  %6584 = vmatprep.subr.bf16.mxu1 %v9177_v40  ;;  %v9237_v36 = vld [vmem:[#allocation5 + $0x38c] ss:$44 sps:$4 sm:$0xff]  }
 0x1bf   :  { %6424 = vmatprep.subr.bf16.mxu0 %v9174_v38  ;;  %v9235_v38 = vld [vmem:[#allocation5 + $0x388] ss:$44 sps:$4 sm:$0xff]   ;;  %v9240_v40 = vld [vmem:[#allocation5 + $0x10ec] ss:$44 sps:$4 sm:$0xff]  }
 0x1c0   :  { %8300 = vmatmul.mubr.msk.bf16.vlgmr.msra.gmra.mrb[8].mxu1 %vm5769_vm2, %v10037_v34 }
 0x1c1   :  { %6585 = vmatpush1.bf16.msra.mxu1 %v9175_v44  ;;  %6616 = vmatprep.mubr.bf16.mxu1 %v10020_v53  ;;  %v1077_v44 = vlaneseq }
 0x1c2   :  { %6425 = vmatpush1.bf16.msra.mxu0 %v9172_v41  ;;  %6586 = vmatprep.subr.bf16.mxu1 %v9183_v48  ;;  %v9243_v41 = vld [vmem:[#allocation5 + $0x3e4] ss:$44 sps:$4 sm:$0xff]   ;;  %v9241_v48 = vld [vmem:[#allocation5 + $0x3e0] ss:$44 sps:$4 sm:$0xff]  }
 0x1c3   :  { %6426 = vmatprep.subr.bf16.mxu0 %v9180_v45  ;;  %v9238_v45 = vld [vmem:[#allocation5 + $0x10e8] ss:$44 sps:$4 sm:$0xff]  }
 0x1c5   :  { %6587 = vmatpush1.bf16.msra.mxu1 %v9181_v50  ;;  %v9249_v50 = vld [vmem:[#allocation5 + $0x43c] ss:$44 sps:$4 sm:$0xff]  }
 0x1c6   :  { %6427 = vmatpush1.bf16.msra.mxu0 %v9178_v49  ;;  %6588 = vmatprep.subr.bf16.mxu1 %v9189_v56  ;;  %v9246_v49 = vld [vmem:[#allocation5 + $0x1144] ss:$44 sps:$4 sm:$0xff]   ;;  %v10098_v56 = vshrl.u32 %v1077_v44, 7 }
 0x1c7   :  { %6428 = vmatprep.subr.bf16.mxu0 %v9186_v51  ;;  %v9244_v51 = vld [vmem:[#allocation5 + $0x1140] ss:$44 sps:$4 sm:$0xff]   ;;  %v9277_v44 = vld [vmem:[#allocation5 + $0x5f0] ss:$44 sps:$4 sm:$0xff]  }
 0x1c9   :  { %6589 = vmatpush1.bf16.msra.mxu1 %v9187_v58  ;;  %v9252_v58 = vld [vmem:[#allocation5 + $0x119c] ss:$44 sps:$4 sm:$0xff]  }
 0x1ca   :  { %6429 = vmatpush1.bf16.msra.mxu0 %v9184_v57  ;;  %6590 = vmatprep.subr.bf16.mxu1 %v9195_v63  ;;  %v9247_v57 = vld [vmem:[#allocation5 + $0x438] ss:$44 sps:$4 sm:$0xff]  }
 0x1cb   :  { %6430 = vmatprep.subr.bf16.mxu0 %v9192_v59  ;;  %v9255_v59 = vld [vmem:[#allocation5 + $0x494] ss:$44 sps:$4 sm:$0xff]   ;;  %v9250_v63 = vld [vmem:[#allocation5 + $0x1198] ss:$44 sps:$4 sm:$0xff]  }
 0x1cd   :  { %6591 = vmatpush1.bf16.msra.mxu1 %v9193_v2  ;;  %v1079_v2 = vsub.s32 0, %v10098_v56 }
 0x1ce   :  { %6431 = vmatpush1.bf16.msra.mxu0 %v9190_v0  ;;  %6592 = vmatprep.subr.bf16.mxu1 %v9201_v5  ;;  %v9253_v0 = vld [vmem:[#allocation5 + $0x490] ss:$44 sps:$4 sm:$0xff]   ;;  %v9261_v5 = vld [vmem:[#allocation5 + $0x4ec] ss:$44 sps:$4 sm:$0xff]  }
 0x1cf   :  { %6432 = vmatprep.subr.bf16.mxu0 %v9198_v3  ;;  %v9258_v3 = vld [vmem:[#allocation5 + $0x11f4] ss:$44 sps:$4 sm:$0xff]  }
 0x1d1   :  { %6593 = vmatpush1.bf16.msra.mxu1 %v9199_v7  ;;  %v1083_v7 = vsub.s32 1, %v10098_v56 }
 0x1d2   :  { %6433 = vmatpush1.bf16.msra.mxu0 %v9196_v6  ;;  %6594 = vmatprep.subr.bf16.mxu1 %v9207_v10  ;;  %v1073_v6 = vld [vmem:[%s10215_s2] sm:$0xff] }
 0x1d3   :  { %6434 = vmatprep.subr.bf16.mxu0 %v9204_v9  ;;  %v9256_v9 = vld [vmem:[#allocation5 + $0x11f0] ss:$44 sps:$4 sm:$0xff]   ;;  %v9259_v10 = vld [vmem:[#allocation5 + $0x4e8] ss:$44 sps:$4 sm:$0xff]  }
 0x1d5   :  { %6595 = vmatpush1.bf16.msra.mxu1 %v9205_v12  ;;  %v9264_v12 = vld [vmem:[#allocation5 + $0x124c] ss:$44 sps:$4 sm:$0xff]  }
 0x1d6   :  { %6435 = vmatpush1.bf16.msra.mxu0 %v9202_v11  ;;  %6596 = vmatprep.subr.bf16.mxu1 %v9213_v16  ;;  %v1080_v11 = vrot.slane %v1073_v6, %v1079_v2  ;;  %v1084_v16 = vrot.slane %v1073_v6, %v1083_v7  ;;  %v9301_v6 = vld [vmem:[#allocation5 + $0x750] ss:$44 sps:$4 sm:$0xff]  }
 0x1d7   :  { %6436 = vmatprep.subr.bf16.mxu0 %v9210_v15  ;;  %v9267_v15 = vld [vmem:[#allocation5 + $0x544] ss:$44 sps:$4 sm:$0xff]  }
 0x1d9   :  { %6597 = vmatpush1.bf16.msra.mxu1 %v9211_v18  ;;  %v9265_v18 = vld [vmem:[#allocation5 + $0x540] ss:$44 sps:$4 sm:$0xff]  }
 0x1da   :  { %6437 = vmatpush1.bf16.msra.mxu0 %v9208_v17  ;;  %6598 = vmatprep.subr.bf16.mxu1 %v9219_v20  ;;  %v9262_v17 = vld [vmem:[#allocation5 + $0x1248] ss:$44 sps:$4 sm:$0xff]   ;;  %v9270_v20 = vld [vmem:[#allocation5 + $0x12a4] ss:$44 sps:$4 sm:$0xff]  }
 0x1db   :  { %6438 = vmatprep.subr.bf16.mxu0 %v9216_v19  ;;  %v5845_v19 = vadd.f32 %v10067_v39, %v1080_v11 }
 0x1dd   :  { %6599 = vmatpush1.bf16.msra.mxu1 %v9217_v23  ;;  %v5847_v23 = vadd.f32 %v10069_v42, %v1084_v16  ;;  %v9276_v42 = vld [vmem:[#allocation5 + $0x12fc] ss:$44 sps:$4 sm:$0xff]  }
 0x1de   :  { %6439 = vmatpush1.bf16.msra.mxu0 %v9214_v22  ;;  %6600 = vmatprep.subr.bf16.mxu1 %v9225_v25  ;;  %v9273_v22 = vld [vmem:[#allocation5 + $0x59c] ss:$44 sps:$4 sm:$0xff]   ;;  %v5849_v25 = vadd.f32 %v10071_v43, %v1080_v11 }
 0x1df   :  { %6440 = vmatprep.subr.bf16.mxu0 %v9222_v24  ;;  %v9304_v11 = vld [vmem:[#allocation5 + $0x14b0] ss:$44 sps:$4 sm:$0xff]  }
 0x1e1   :  { %6601 = vmatpush1.bf16.msra.mxu1 %v9223_v28 }
 0x1e2   :  { %6441 = vmatpush1.bf16.msra.mxu0 %v9220_v26  ;;  %6602 = vmatprep.subr.bf16.mxu1 %v9231_v30 }
 0x1e3   :  { %6442 = vmatprep.subr.bf16.mxu0 %v9228_v29  ;;  %v5851_v29 = vadd.f32 %v10073_v47, %v1084_v16  ;;  %v9315_v16 = vld [vmem:[#allocation5 + $0x804] ss:$44 sps:$4 sm:$0xff]  }
 0x1e5   :  { %6603 = vmatpush1.bf16.msra.mxu1 %v9229_v32  ;;  %v9268_v32 = vld [vmem:[#allocation5 + $0x12a0] ss:$44 sps:$4 sm:$0xff]  }
 0x1e6   :  { %6443 = vmatpush1.bf16.msra.mxu0 %v9226_v31  ;;  %6604 = vmatprep.subr.bf16.mxu1 %v9237_v36 }
 0x1e7   :  { %6455 = vmatprep.subr.bf16.mxu0 %v9234_v33  ;;  %v9271_v33 = vld [vmem:[#allocation5 + $0x598] ss:$44 sps:$4 sm:$0xff]  }
 0x1e9   :  { %6445 = vmatmul.mubr.bf16.vlgmr.msra.gmra.mrb[4].mxu0 %v10045_v35  ;;  %6605 = vmatpush1.bf16.msra.mxu1 %v9235_v38  ;;  %v9279_v38 = vld [vmem:[#allocation5 + $0x5f4] ss:$44 sps:$4 sm:$0xff]  }
 0x1ea   :  { %6456 = vmatpush1.bf16.msra.mxu0 %v9232_v37  ;;  %6606 = vmatprep.subr.bf16.mxu1 %v9243_v41 }
 0x1eb   :  { %6457 = vmatprep.subr.bf16.mxu0 %v9240_v40  ;;  %6487 = vmatprep.mubr.bf16.mxu0 %v10048_v46 }
 0x1ed   :  { %6607 = vmatpush1.bf16.msra.mxu1 %v9241_v48  ;;  %v9285_v48 = vld [vmem:[#allocation5 + $0x64c] ss:$44 sps:$4 sm:$0xff]  }
 0x1ee   :  { %6458 = vmatpush1.bf16.msra.mxu0 %v9238_v45  ;;  %6608 = vmatprep.subr.bf16.mxu1 %v9249_v50  ;;  %v9282_v45 = vld [vmem:[#allocation5 + $0x1354] ss:$44 sps:$4 sm:$0xff]  }
 0x1ef   :  { %6459 = vmatprep.subr.bf16.mxu0 %v9246_v49  ;;  %v9288_v49 = vld [vmem:[#allocation5 + $0x13ac] ss:$44 sps:$4 sm:$0xff]   ;;  %v9286_v50 = vld [vmem:[#allocation5 + $0x13a8] ss:$44 sps:$4 sm:$0xff]  }
 0x1f1   :  { %6609 = vmatpush1.bf16.msra.mxu1 %v9247_v57  ;;  %v9294_v57 = vld [vmem:[#allocation5 + $0x1404] ss:$44 sps:$4 sm:$0xff]  }
 0x1f2   :  { %6460 = vmatpush1.bf16.msra.mxu0 %v9244_v51  ;;  %6610 = vmatprep.subr.bf16.mxu1 %v9255_v59  ;;  %v9289_v51 = vld [vmem:[#allocation5 + $0x6a0] ss:$44 sps:$4 sm:$0xff]  }
 0x1f3   :  { %6461 = vmatprep.subr.bf16.mxu0 %v9252_v58  ;;  %v9297_v58 = vld [vmem:[#allocation5 + $0x6fc] ss:$44 sps:$4 sm:$0xff]   ;;  %v9292_v59 = vld [vmem:[#allocation5 + $0x1400] ss:$44 sps:$4 sm:$0xff]  }
 0x1f5   :  { %6611 = vmatpush1.bf16.msra.mxu1 %v9253_v0  ;;  %v9300_v0 = vld [vmem:[#allocation5 + $0x145c] ss:$44 sps:$4 sm:$0xff]  }
 0x1f6   :  { %6462 = vmatpush1.bf16.msra.mxu0 %v9250_v63  ;;  %6612 = vmatprep.subr.bf16.mxu1 %v9261_v5  ;;  %v9295_v63 = vld [vmem:[#allocation5 + $0x6f8] ss:$44 sps:$4 sm:$0xff]  }
 0x1f7   :  { %6463 = vmatprep.subr.bf16.mxu0 %v9258_v3  ;;  %v9303_v3 = vld [vmem:[#allocation5 + $0x754] ss:$44 sps:$4 sm:$0xff]   ;;  %v9298_v5 = vld [vmem:[#allocation5 + $0x1458] ss:$44 sps:$4 sm:$0xff]  }
 0x1f9   :  { %6613 = vmatpush1.bf16.msra.mxu1 %v9259_v10  ;;  %v9309_v10 = vld [vmem:[#allocation5 + $0x7ac] ss:$44 sps:$4 sm:$0xff]  }
 0x1fa   :  { %6464 = vmatpush1.bf16.msra.mxu0 %v9256_v9  ;;  %6614 = vmatprep.subr.bf16.mxu1 %v9267_v15  ;;  %v9306_v9 = vld [vmem:[#allocation5 + $0x14b4] ss:$44 sps:$4 sm:$0xff]   ;;  %v9312_v15 = vld [vmem:[#allocation5 + $0x150c] ss:$44 sps:$4 sm:$0xff]  }
 0x1fb   :  { %6465 = vmatprep.subr.bf16.mxu0 %v9264_v12  ;;  %v9307_v12 = vld [vmem:[#allocation5 + $0x7a8] ss:$44 sps:$4 sm:$0xff]  }
 0x1fc   :  { %v6016_v24 = vpop.f32.mrb[0].mxu0 }
 0x1fd   :  { %v8430_v26 = vadd.f32 %v6016_v24, %v5845_v19  ;;  %v6018_v28 = vpop.f32.mrb[1].mxu0  ;;  %6615 = vmatpush1.bf16.msra.mxu1 %v9265_v18  ;;  %v9313_v18 = vld [vmem:[#allocation5 + $0x800] ss:$44 sps:$4 sm:$0xff]   ;;  %v9318_v19 = vld [vmem:[#allocation5 + $0x1564] ss:$44 sps:$4 sm:$0xff]  }
 0x1fe   :  { %v8433_v30 = vadd.f32 %v6018_v28, %v5847_v23  ;;  %v6020_v31 = vpop.f32.mrb[2].mxu0  ;;  %6466 = vmatpush1.bf16.msra.mxu0 %v9262_v17  ;;  %6627 = vmatprep.subr.bf16.mxu1 %v9273_v22  ;;  %v9310_v17 = vld [vmem:[#allocation5 + $0x1508] ss:$44 sps:$4 sm:$0xff]   ;;  %v9316_v22 = vld [vmem:[#allocation5 + $0x1560] ss:$44 sps:$4 sm:$0xff]  }
 0x1ff   :  { %v8431_v39 = vadd.f32 %v8430_v26, %v10075_v60  ;;  %v8436_v36 = vadd.f32 %v6020_v31, %v5849_v25  ;;  %v6022_v37 = vpop.f32.mrb[3].mxu0  ;;  %6467 = vmatprep.subr.bf16.mxu0 %v9270_v20  ;;  %v9274_v60 = vld [vmem:[#allocation5 + $0x12f8] ss:$44 sps:$4 sm:$0xff]   ;;  %v9321_v20 = vld [vmem:[#allocation5 + $0x85c] ss:$44 sps:$4 sm:$0xff]  }
 0x200   :  { %v8434_v43 = vadd.f32 %v8433_v30, %v10077_v62  ;;  %v8439_v40 = vadd.f32 %v6022_v37, %v5851_v29  ;;  %6617 = vmatmul.mubr.bf16.vlgmr.msra.gmra.mrb[12].mxu1 %v10026_v13  ;;  %v9280_v62 = vld [vmem:[#allocation5 + $0x1350] ss:$44 sps:$4 sm:$0xff]   ;;  %v9319_v23 = vld [vmem:[#allocation5 + $0x858] ss:$44 sps:$4 sm:$0xff]   ;;  %v9327_v25 = vld [vmem:[#allocation5 + $0x8b4] ss:$44 sps:$4 sm:$0xff]  }
 0x201   :  { %7346 = vst [vmem:[#allocation7] sm:$0xff] %v8431_v39  ;;  %v8437_v47 = vadd.f32 %v8436_v36, %v10079_v1  ;;  %6628 = vmatpush1.bf16.msra.mxu1 %v9271_v33  ;;  %6659 = vmatprep.mubr.bf16.mxu1 %v10022_v54  ;;  %v9283_v1 = vld [vmem:[#allocation5 + $0x648] ss:$44 sps:$4 sm:$0xff]   ;;  %v9322_v26 = vld [vmem:[#allocation5 + $0x15b8] ss:$44 sps:$4 sm:$0xff]  }
 0x202   :  { %7347 = vst [vmem:[#allocation7 + $0x8] sm:$0xff] %v8434_v43  ;;  %v8440_v41 = vadd.f32 %v8439_v40, %v10081_v4  ;;  %6468 = vmatpush1.bf16.msra.mxu0 %v9268_v32  ;;  %6629 = vmatprep.subr.bf16.mxu1 %v9279_v38  ;;  %v9291_v4 = vld [vmem:[#allocation5 + $0x6a4] ss:$44 sps:$4 sm:$0xff]   ;;  %v9324_v24 = vld [vmem:[#allocation5 + $0x15bc] ss:$44 sps:$4 sm:$0xff]  }
 0x203   :  { %7357 = vst [vmem:[#allocation7 + $0x58] sm:$0xff] %v8437_v47  ;;  %6469 = vmatprep.subr.bf16.mxu0 %v9276_v42  ;;  %v9325_v28 = vld [vmem:[#allocation5 + $0x8b0] ss:$44 sps:$4 sm:$0xff]   ;;  %v9330_v29 = vld [vmem:[#allocation5 + $0x1614] ss:$44 sps:$4 sm:$0xff]  }
 0x204   :  { %7358 = vst [vmem:[#allocation7 + $0x60] sm:$0xff] %v8440_v41  ;;  %v9333_v30 = vld [vmem:[#allocation5 + $0x90c] ss:$44 sps:$4 sm:$0xff]   ;;  %v9328_v31 = vld [vmem:[#allocation5 + $0x1610] ss:$44 sps:$4 sm:$0xff]  }
 0x205   :  { %6630 = vmatpush1.bf16.msra.mxu1 %v9277_v44  ;;  %v9331_v32 = vld [vmem:[#allocation5 + $0x908] ss:$44 sps:$4 sm:$0xff]   ;;  %v9336_v33 = vld [vmem:[#allocation5 + $0x166c] ss:$44 sps:$4 sm:$0xff]   ;;  %v9339_v39 = vld [vmem:[#allocation5 + $0x964] ss:$44 sps:$4 sm:$0xff]  }
 0x206   :  { %6470 = vmatpush1.bf16.msra.mxu0 %v9274_v60  ;;  %6631 = vmatprep.subr.bf16.mxu1 %v9285_v48  ;;  %v9334_v36 = vld [vmem:[#allocation5 + $0x1668] ss:$44 sps:$4 sm:$0xff]   ;;  %v9337_v37 = vld [vmem:[#allocation5 + $0x960] ss:$44 sps:$4 sm:$0xff]   ;;  %v9342_v42 = vld [vmem:[#allocation5 + $0x16c4] ss:$44 sps:$4 sm:$0xff]  }
 0x207   :  { %6471 = vmatprep.subr.bf16.mxu0 %v9282_v45  ;;  %v9345_v38 = vld [vmem:[#allocation5 + $0x9bc] ss:$44 sps:$4 sm:$0xff]   ;;  %v9340_v43 = vld [vmem:[#allocation5 + $0x16c0] ss:$44 sps:$4 sm:$0xff]   ;;  %v9343_v40 = vld [vmem:[#allocation5 + $0x9b8] ss:$44 sps:$4 sm:$0xff]  }
 0x208   :  { %v9348_v47 = vld [vmem:[#allocation5 + $0x171c] ss:$44 sps:$4 sm:$0xff]   ;;  %v9351_v41 = vld [vmem:[#allocation5 + $0xa14] ss:$44 sps:$4 sm:$0xff]   ;;  %v9346_v60 = vld [vmem:[#allocation5 + $0x1718] ss:$44 sps:$4 sm:$0xff]  }
 0x209   :  { %6632 = vmatpush1.bf16.msra.mxu1 %v9283_v1  ;;  %v9349_v44 = vld [vmem:[#allocation5 + $0xa10] ss:$44 sps:$4 sm:$0xff]   ;;  %v9354_v45 = vld [vmem:[#allocation5 + $0x1774] ss:$44 sps:$4 sm:$0xff]   ;;  %v9357_v48 = vld [vmem:[#allocation5 + $0xa6c] ss:$44 sps:$4 sm:$0xff]  }
 0x20a   :  { %6472 = vmatpush1.bf16.msra.mxu0 %v9280_v62  ;;  %6633 = vmatprep.subr.bf16.mxu1 %v9291_v4  ;;  %v9352_v62 = vld [vmem:[#allocation5 + $0x1770] ss:$44 sps:$4 sm:$0xff]   ;;  %v9355_v1 = vld [vmem:[#allocation5 + $0xa68] ss:$44 sps:$4 sm:$0xff]  }
 0x20b   :  { %6473 = vmatprep.subr.bf16.mxu0 %v9288_v49  ;;  %v9360_v49 = vld [vmem:[#allocation5 + $0x17cc] ss:$44 sps:$4 sm:$0xff]   ;;  %v9363_v4 = vld [vmem:[#allocation5 + $0xac4] ss:$44 sps:$4 sm:$0xff]  }
 0x20d   :  { %6634 = vmatpush1.bf16.msra.mxu1 %v9289_v51  ;;  %v9361_v51 = vld [vmem:[#allocation5 + $0xac0] ss:$44 sps:$4 sm:$0xff]  }
 0x20e   :  { %6474 = vmatpush1.bf16.msra.mxu0 %v9286_v50  ;;  %6635 = vmatprep.subr.bf16.mxu1 %v9297_v58  ;;  %v9358_v50 = vld [vmem:[#allocation5 + $0x17c8] ss:$44 sps:$4 sm:$0xff]  }
 0x20f   :  { %6475 = vmatprep.subr.bf16.mxu0 %v9294_v57  ;;  %v9366_v57 = vld [vmem:[#allocation5 + $0x1824] ss:$44 sps:$4 sm:$0xff]   ;;  %v9369_v58 = vld [vmem:[#allocation5 + $0xb1c] ss:$44 sps:$4 sm:$0xff]  }
 0x211   :  { %6636 = vmatpush1.bf16.msra.mxu1 %v9295_v63  ;;  %v9367_v63 = vld [vmem:[#allocation5 + $0xb18] ss:$44 sps:$4 sm:$0xff]  }
 0x212   :  { %6476 = vmatpush1.bf16.msra.mxu0 %v9292_v59  ;;  %6637 = vmatprep.subr.bf16.mxu1 %v9303_v3  ;;  %v9364_v59 = vld [vmem:[#allocation5 + $0x1820] ss:$44 sps:$4 sm:$0xff]  }
 0x213   :  { %6477 = vmatprep.subr.bf16.mxu0 %v9300_v0  ;;  %v9372_v0 = vld [vmem:[#allocation5 + $0x187c] ss:$44 sps:$4 sm:$0xff]   ;;  %v9375_v3 = vld [vmem:[#allocation5 + $0xb74] ss:$44 sps:$4 sm:$0xff]  }
 0x215   :  { %6638 = vmatpush1.bf16.msra.mxu1 %v9301_v6  ;;  %v9373_v6 = vld [vmem:[#allocation5 + $0xb70] ss:$44 sps:$4 sm:$0xff]  }
 0x216   :  { %6478 = vmatpush1.bf16.msra.mxu0 %v9298_v5  ;;  %6639 = vmatprep.subr.bf16.mxu1 %v9309_v10  ;;  %v9370_v5 = vld [vmem:[#allocation5 + $0x1878] ss:$44 sps:$4 sm:$0xff]  }
 0x217   :  { %6479 = vmatprep.subr.bf16.mxu0 %v9306_v9  ;;  %v9378_v9 = vld [vmem:[#allocation5 + $0x18d4] ss:$44 sps:$4 sm:$0xff]   ;;  %v9381_v10 = vld [vmem:[#allocation5 + $0xbcc] ss:$44 sps:$4 sm:$0xff]  }
 0x219   :  { %6640 = vmatpush1.bf16.msra.mxu1 %v9307_v12  ;;  %v9379_v12 = vld [vmem:[#allocation5 + $0xbc8] ss:$44 sps:$4 sm:$0xff]  }
 0x21a   :  { %6480 = vmatpush1.bf16.msra.mxu0 %v9304_v11  ;;  %6641 = vmatprep.subr.bf16.mxu1 %v9315_v16  ;;  %v9376_v11 = vld [vmem:[#allocation5 + $0x18d0] ss:$44 sps:$4 sm:$0xff]  }
 0x21b   :  { %6481 = vmatprep.subr.bf16.mxu0 %v9312_v15  ;;  %v9384_v15 = vld [vmem:[#allocation5 + $0x192c] ss:$44 sps:$4 sm:$0xff]   ;;  %v9387_v16 = vld [vmem:[#allocation5 + $0xc24] ss:$44 sps:$4 sm:$0xff]  }
 0x21d   :  { %6642 = vmatpush1.bf16.msra.mxu1 %v9313_v18  ;;  %v9385_v18 = vld [vmem:[#allocation5 + $0xc20] ss:$44 sps:$4 sm:$0xff]  }
 0x21e   :  { %6482 = vmatpush1.bf16.msra.mxu0 %v9310_v17  ;;  %6643 = vmatprep.subr.bf16.mxu1 %v9321_v20  ;;  %v9382_v17 = vld [vmem:[#allocation5 + $0x1928] ss:$44 sps:$4 sm:$0xff]  }
 0x21f   :  { %6483 = vmatprep.subr.bf16.mxu0 %v9318_v19  ;;  %v9390_v19 = vld [vmem:[#allocation5 + $0x1984] ss:$44 sps:$4 sm:$0xff]   ;;  %v9393_v20 = vld [vmem:[#allocation5 + $0xc7c] ss:$44 sps:$4 sm:$0xff]  }
 0x221   :  { %6644 = vmatpush1.bf16.msra.mxu1 %v9319_v23  ;;  %v9391_v23 = vld [vmem:[#allocation5 + $0xc78] ss:$44 sps:$4 sm:$0xff]  }
 0x222   :  { %6484 = vmatpush1.bf16.msra.mxu0 %v9316_v22  ;;  %6645 = vmatprep.subr.bf16.mxu1 %v9327_v25  ;;  %v9388_v22 = vld [vmem:[#allocation5 + $0x1980] ss:$44 sps:$4 sm:$0xff]  }
 0x223   :  { %6485 = vmatprep.subr.bf16.mxu0 %v9324_v24  ;;  %v9396_v24 = vld [vmem:[#allocation5 + $0x19dc] ss:$44 sps:$4 sm:$0xff]   ;;  %v9399_v25 = vld [vmem:[#allocation5 + $0xcd4] ss:$44 sps:$4 sm:$0xff]  }
 0x225   :  { %6646 = vmatpush1.bf16.msra.mxu1 %v9325_v28  ;;  %v9397_v28 = vld [vmem:[#allocation5 + $0xcd0] ss:$44 sps:$4 sm:$0xff]  }
 0x226   :  { %6486 = vmatpush1.bf16.msra.mxu0 %v9322_v26  ;;  %6647 = vmatprep.subr.bf16.mxu1 %v9333_v30  ;;  %v9394_v26 = vld [vmem:[#allocation5 + $0x19d8] ss:$44 sps:$4 sm:$0xff]  }
 0x227   :  { %6498 = vmatprep.subr.bf16.mxu0 %v9330_v29  ;;  %v9402_v29 = vld [vmem:[#allocation5 + $0x1a34] ss:$44 sps:$4 sm:$0xff]   ;;  %v9405_v30 = vld [vmem:[#allocation5 + $0xd2c] ss:$44 sps:$4 sm:$0xff]  }
 0x229   :  { %6488 = vmatmul.mubr.bf16.vlgmr.msra.gmra.mrb[4].mxu0 %v10053_v52  ;;  %6648 = vmatpush1.bf16.msra.mxu1 %v9331_v32  ;;  %v9403_v32 = vld [vmem:[#allocation5 + $0xd28] ss:$44 sps:$4 sm:$0xff]  }
 0x22a   :  { %6499 = vmatpush1.bf16.msra.mxu0 %v9328_v31  ;;  %6649 = vmatprep.subr.bf16.mxu1 %v9339_v39  ;;  %v9400_v31 = vld [vmem:[#allocation5 + $0x1a30] ss:$44 sps:$4 sm:$0xff]  }
 0x22b   :  { %6500 = vmatprep.subr.bf16.mxu0 %v9336_v33  ;;  %6530 = vmatprep.mubr.bf16.mxu0 %v10055_v61  ;;  %v9408_v33 = vld [vmem:[#allocation5 + $0x1a8c] ss:$44 sps:$4 sm:$0xff]   ;;  %v9411_v39 = vld [vmem:[#allocation5 + $0xd84] ss:$44 sps:$4 sm:$0xff]  }
 0x22d   :  { %6650 = vmatpush1.bf16.msra.mxu1 %v9337_v37  ;;  %v9409_v37 = vld [vmem:[#allocation5 + $0xd80] ss:$44 sps:$4 sm:$0xff]  }
 0x22e   :  { %6501 = vmatpush1.bf16.msra.mxu0 %v9334_v36  ;;  %6651 = vmatprep.subr.bf16.mxu1 %v9345_v38  ;;  %v9406_v36 = vld [vmem:[#allocation5 + $0x1a88] ss:$44 sps:$4 sm:$0xff]  }
 0x22f   :  { %6502 = vmatprep.subr.bf16.mxu0 %v9342_v42  ;;  %v9414_v42 = vld [vmem:[#allocation5 + $0x1ae4] ss:$44 sps:$4 sm:$0xff]   ;;  %v9417_v38 = vld [vmem:[#allocation5 + $0xddc] ss:$44 sps:$4 sm:$0xff]  }
 0x231   :  { %6652 = vmatpush1.bf16.msra.mxu1 %v9343_v40  ;;  %v9415_v40 = vld [vmem:[#allocation5 + $0xdd8] ss:$44 sps:$4 sm:$0xff]  }
 0x232   :  { %6503 = vmatpush1.bf16.msra.mxu0 %v9340_v43  ;;  %6653 = vmatprep.subr.bf16.mxu1 %v9351_v41  ;;  %v9412_v43 = vld [vmem:[#allocation5 + $0x1ae0] ss:$44 sps:$4 sm:$0xff]  }
 0x233   :  { %6504 = vmatprep.subr.bf16.mxu0 %v9348_v47  ;;  %v9420_v47 = vld [vmem:[#allocation5 + $0x1b3c] ss:$44 sps:$4 sm:$0xff]   ;;  %v9423_v41 = vld [vmem:[#allocation5 + $0xe34] ss:$44 sps:$4 sm:$0xff]  }
 0x235   :  { %6654 = vmatpush1.bf16.msra.mxu1 %v9349_v44  ;;  %v9421_v44 = vld [vmem:[#allocation5 + $0xe30] ss:$44 sps:$4 sm:$0xff]  }
 0x236   :  { %6505 = vmatpush1.bf16.msra.mxu0 %v9346_v60  ;;  %6655 = vmatprep.subr.bf16.mxu1 %v9357_v48  ;;  %v9418_v60 = vld [vmem:[#allocation5 + $0x1b38] ss:$44 sps:$4 sm:$0xff]  }
 0x237   :  { %6506 = vmatprep.subr.bf16.mxu0 %v9354_v45  ;;  %v9426_v45 = vld [vmem:[#allocation5 + $0x1b94] ss:$44 sps:$4 sm:$0xff]   ;;  %v9429_v48 = vld [vmem:[#allocation5 + $0xe8c] ss:$44 sps:$4 sm:$0xff]  }
 0x239   :  { %6656 = vmatpush1.bf16.msra.mxu1 %v9355_v1  ;;  %v9427_v1 = vld [vmem:[#allocation5 + $0xe88] ss:$44 sps:$4 sm:$0xff]  }
 0x23a   :  { %6507 = vmatpush1.bf16.msra.mxu0 %v9352_v62  ;;  %6657 = vmatprep.subr.bf16.mxu1 %v9363_v4  ;;  %v9424_v62 = vld [vmem:[#allocation5 + $0x1b90] ss:$44 sps:$4 sm:$0xff]  }
 0x23b   :  { %6508 = vmatprep.subr.bf16.mxu0 %v9360_v49  ;;  %v9432_v49 = vld [vmem:[#allocation5 + $0x1bec] ss:$44 sps:$4 sm:$0xff]   ;;  %v9435_v4 = vld [vmem:[#allocation5 + $0xee4] ss:$44 sps:$4 sm:$0xff]  }
 0x23d   :  { %6658 = vmatpush1.bf16.msra.mxu1 %v9361_v51  ;;  %v9430_v51 = vld [vmem:[#allocation5 + $0x1be8] ss:$44 sps:$4 sm:$0xff]  }
 0x23e   :  { %6509 = vmatpush1.bf16.msra.mxu0 %v9358_v50  ;;  %6670 = vmatprep.subr.bf16.mxu1 %v9369_v58  ;;  %v9438_v50 = vld [vmem:[#allocation5 + $0x1c44] ss:$44 sps:$4 sm:$0x7f]   ;;  %v9436_v58 = vld [vmem:[#allocation5 + $0x1c40] ss:$44 sps:$4 sm:$0x7f]  }
 0x23f   :  { %6510 = vmatprep.subr.bf16.mxu0 %v9366_v57  ;;  %v9433_v57 = vld [vmem:[#allocation5 + $0xee0] ss:$44 sps:$4 sm:$0xff]  }
 0x240   :  { %6660 = vmatmul.mubr.bf16.vlgmr.msra.gmra.mrb[12].mxu1 %v10028_v14 }
 0x241   :  { %6671 = vmatpush1.bf16.msra.mxu1 %v9367_v63  ;;  %6702 = vmatprep.mubr.bf16.mxu1 %v10042_v55  ;;  %v9441_v63 = vld [vmem:[#allocation5 + $0xf3c] ss:$44 sps:$4 sm:$0xff]  }
 0x242   :  { %6511 = vmatpush1.bf16.msra.mxu0 %v9364_v59  ;;  %6672 = vmatprep.subr.bf16.mxu1 %v9375_v3  ;;  %v5793_v59 = vand.u32 %v9438_v50, %v10030_v21  ;;  %v5790_v3 = vand.u32 %v9436_v58, %v10030_v21  ;;  %v9493_v50 = vld [vmem:[#allocation5 + $0x2e0] ss:$44 sps:$4 sm:$0xff]  }
 0x243   :  { %6512 = vmatprep.subr.bf16.mxu0 %v9372_v0  ;;  %v9439_v0 = vld [vmem:[#allocation5 + $0xf38] ss:$44 sps:$4 sm:$0xff]  }
 0x245   :  { %6673 = vmatpush1.bf16.msra.mxu1 %v9373_v6  ;;  %v9447_v6 = vld [vmem:[#allocation5 + $0x24] ss:$44 sps:$4 sm:$0xff]  }
 0x246   :  { %6513 = vmatpush1.bf16.msra.mxu0 %v9370_v5  ;;  %6674 = vmatprep.subr.bf16.mxu1 %v9381_v10  ;;  %v9444_v5 = vld [vmem:[#allocation5 + $0xf94] ss:$44 sps:$4 sm:$0xff]  }
 0x247   :  { %6514 = vmatprep.subr.bf16.mxu0 %v9378_v9  ;;  %v9442_v9 = vld [vmem:[#allocation5 + $0xf90] ss:$44 sps:$4 sm:$0xff]   ;;  %v9445_v10 = vld [vmem:[#allocation5 + $0x20] ss:$44 sps:$4 sm:$0xff]  }
 0x249   :  { %6675 = vmatpush1.bf16.msra.mxu1 %v9379_v12  ;;  %v9453_v12 = vld [vmem:[#allocation5 + $0x7c] ss:$44 sps:$4 sm:$0xff]  }
 0x24a   :  { %6515 = vmatpush1.bf16.msra.mxu0 %v9376_v11  ;;  %6676 = vmatprep.subr.bf16.mxu1 %v9387_v16  ;;  %v9450_v11 = vld [vmem:[#allocation5 + $0xfec] ss:$44 sps:$4 sm:$0xff]  }
 0x24b   :  { %6516 = vmatprep.subr.bf16.mxu0 %v9384_v15  ;;  %v9448_v15 = vld [vmem:[#allocation5 + $0xfe8] ss:$44 sps:$4 sm:$0xff]   ;;  %v9451_v16 = vld [vmem:[#allocation5 + $0x78] ss:$44 sps:$4 sm:$0xff]  }
 0x24d   :  { %6677 = vmatpush1.bf16.msra.mxu1 %v9385_v18  ;;  %v9459_v18 = vld [vmem:[#allocation5 + $0xd4] ss:$44 sps:$4 sm:$0xff]  }
 0x24e   :  { %6517 = vmatpush1.bf16.msra.mxu0 %v9382_v17  ;;  %6678 = vmatprep.subr.bf16.mxu1 %v9393_v20  ;;  %v9456_v17 = vld [vmem:[#allocation5 + $0x1044] ss:$44 sps:$4 sm:$0xff]  }
 0x24f   :  { %6518 = vmatprep.subr.bf16.mxu0 %v9390_v19  ;;  %v9454_v19 = vld [vmem:[#allocation5 + $0x1040] ss:$44 sps:$4 sm:$0xff]   ;;  %v9457_v20 = vld [vmem:[#allocation5 + $0xd0] ss:$44 sps:$4 sm:$0xff]  }
 0x251   :  { %6679 = vmatpush1.bf16.msra.mxu1 %v9391_v23  ;;  %v9465_v23 = vld [vmem:[#allocation5 + $0x12c] ss:$44 sps:$4 sm:$0xff]  }
 0x252   :  { %6519 = vmatpush1.bf16.msra.mxu0 %v9388_v22  ;;  %6680 = vmatprep.subr.bf16.mxu1 %v9399_v25  ;;  %v9462_v22 = vld [vmem:[#allocation5 + $0x109c] ss:$44 sps:$4 sm:$0xff]  }
 0x253   :  { %6520 = vmatprep.subr.bf16.mxu0 %v9396_v24  ;;  %v9460_v24 = vld [vmem:[#allocation5 + $0x1098] ss:$44 sps:$4 sm:$0xff]   ;;  %v9463_v25 = vld [vmem:[#allocation5 + $0x128] ss:$44 sps:$4 sm:$0xff]  }
 0x255   :  { %6681 = vmatpush1.bf16.msra.mxu1 %v9397_v28  ;;  %v9471_v28 = vld [vmem:[#allocation5 + $0x184] ss:$44 sps:$4 sm:$0xff]  }
 0x256   :  { %6521 = vmatpush1.bf16.msra.mxu0 %v9394_v26  ;;  %6682 = vmatprep.subr.bf16.mxu1 %v9405_v30  ;;  %v9468_v26 = vld [vmem:[#allocation5 + $0x10f4] ss:$44 sps:$4 sm:$0xff]  }
 0x257   :  { %6522 = vmatprep.subr.bf16.mxu0 %v9402_v29  ;;  %v9466_v29 = vld [vmem:[#allocation5 + $0x10f0] ss:$44 sps:$4 sm:$0xff]   ;;  %v9469_v30 = vld [vmem:[#allocation5 + $0x180] ss:$44 sps:$4 sm:$0xff]  }
 0x259   :  { %6683 = vmatpush1.bf16.msra.mxu1 %v9403_v32  ;;  %v9477_v32 = vld [vmem:[#allocation5 + $0x1dc] ss:$44 sps:$4 sm:$0xff]  }
 0x25a   :  { %6523 = vmatpush1.bf16.msra.mxu0 %v9400_v31  ;;  %6684 = vmatprep.subr.bf16.mxu1 %v9411_v39  ;;  %v9474_v31 = vld [vmem:[#allocation5 + $0x114c] ss:$44 sps:$4 sm:$0xff]  }
 0x25b   :  { %6524 = vmatprep.subr.bf16.mxu0 %v9408_v33  ;;  %v9472_v33 = vld [vmem:[#allocation5 + $0x1148] ss:$44 sps:$4 sm:$0xff]   ;;  %v9475_v39 = vld [vmem:[#allocation5 + $0x1d8] ss:$44 sps:$4 sm:$0xff]  }
 0x25d   :  { %6685 = vmatpush1.bf16.msra.mxu1 %v9409_v37  ;;  %v9483_v37 = vld [vmem:[#allocation5 + $0x234] ss:$44 sps:$4 sm:$0xff]  }
 0x25e   :  { %6525 = vmatpush1.bf16.msra.mxu0 %v9406_v36  ;;  %6686 = vmatprep.subr.bf16.mxu1 %v9417_v38  ;;  %v9480_v36 = vld [vmem:[#allocation5 + $0x11a4] ss:$44 sps:$4 sm:$0xff]  }
 0x25f   :  { %6526 = vmatprep.subr.bf16.mxu0 %v9414_v42  ;;  %v9478_v42 = vld [vmem:[#allocation5 + $0x11a0] ss:$44 sps:$4 sm:$0xff]   ;;  %v9481_v38 = vld [vmem:[#allocation5 + $0x230] ss:$44 sps:$4 sm:$0xff]  }
 0x261   :  { %6687 = vmatpush1.bf16.msra.mxu1 %v9415_v40  ;;  %v9489_v40 = vld [vmem:[#allocation5 + $0x28c] ss:$44 sps:$4 sm:$0xff]  }
 0x262   :  { %6527 = vmatpush1.bf16.msra.mxu0 %v9412_v43  ;;  %6688 = vmatprep.subr.bf16.mxu1 %v9423_v41  ;;  %v9486_v43 = vld [vmem:[#allocation5 + $0x11fc] ss:$44 sps:$4 sm:$0xff]   ;;  %v9484_v41 = vld [vmem:[#allocation5 + $0x11f8] ss:$44 sps:$4 sm:$0xff]  }
 0x263   :  { %6528 = vmatprep.subr.bf16.mxu0 %v9420_v47  ;;  %v1087_v47 = vsub.s32 2, %v10098_v56 }
 0x265   :  { %6689 = vmatpush1.bf16.msra.mxu1 %v9421_v44  ;;  %v1091_v44 = vsub.s32 3, %v10098_v56 }
 0x266   :  { %6529 = vmatpush1.bf16.msra.mxu0 %v9418_v60  ;;  %6690 = vmatprep.subr.bf16.mxu1 %v9429_v48  ;;  %v9487_v60 = vld [vmem:[#allocation5 + $0x288] ss:$44 sps:$4 sm:$0xff]   ;;  %v9495_v48 = vld [vmem:[#allocation5 + $0x2e4] ss:$44 sps:$4 sm:$0xff]  }
 0x267   :  { %6541 = vmatprep.subr.bf16.mxu0 %v9426_v45  ;;  %v9492_v45 = vld [vmem:[#allocation5 + $0x1254] ss:$44 sps:$4 sm:$0xff]  }
 0x269   :  { %6531 = vmatmul.mubr.bf16.vlgmr.msra.gmra.mrb[4].mxu0 %v10061_v8  ;;  %6691 = vmatpush1.bf16.msra.mxu1 %v9427_v1 }
 0x26a   :  { %6542 = vmatpush1.bf16.msra.mxu0 %v9424_v62  ;;  %6692 = vmatprep.subr.bf16.mxu1 %v9435_v4  ;;  %v10137_v62 = vld [vmem:[%s10215_s2] sm:$0xff] }
 0x26b   :  { %6543 = vmatprep.subr.bf16.mxu0 %v9432_v49  ;;  %6573 = vmatprep.mubr.bf16.mxu0 %v9969_v27  ;;  %v1088_v1 = vrot.slane %v10137_v62, %v1087_v47  ;;  %v1092_v49 = vrot.slane %v10137_v62, %v1091_v44  ;;  %v9490_v4 = vld [vmem:[#allocation5 + $0x1250] ss:$44 sps:$4 sm:$0xff]   ;;  %v9541_v44 = vld [vmem:[#allocation5 + $0x5a0] ss:$44 sps:$4 sm:$0xff]  }
 0x26d   :  { %6693 = vmatpush1.bf16.msra.mxu1 %v9433_v57  ;;  %v9501_v57 = vld [vmem:[#allocation5 + $0x33c] ss:$44 sps:$4 sm:$0xff]  }
 0x26e   :  { %6544 = vmatpush1.bf16.msra.mxu0 %v9430_v51  ;;  %6694 = vmatprep.subr.bf16.mxu1 %v9441_v63  ;;  %v9498_v51 = vld [vmem:[#allocation5 + $0x12ac] ss:$44 sps:$4 sm:$0xff]  }
 0x26f   :  { %6545 = vmatprep.subr.bf16.mxu0 %v5793_v59 }
 0x271   :  { %6695 = vmatpush1.bf16.msra.mxu1 %v9439_v0 }
 0x272   :  { %6546 = vmatpush1.bf16.msra.mxu0 %v5790_v3  ;;  %6696 = vmatprep.subr.bf16.mxu1 %v9444_v5  ;;  %v9496_v5 = vld [vmem:[#allocation5 + $0x12a8] ss:$44 sps:$4 sm:$0xff]  }
 0x273   :  { %6842 = vmatprep.subr.bf16.mxu0 %v9447_v6  ;;  %v9499_v6 = vld [vmem:[#allocation5 + $0x338] ss:$44 sps:$4 sm:$0xff]  }
 0x275   :  { %8301 = vmatmul.mubr.msk.bf16.vlgmr.msra.gmra.mrb[4].mxu0 %vm5769_vm2, %v10037_v34  ;;  %6697 = vmatpush1.bf16.msra.mxu1 %v9442_v9 }
 0x276   :  { %6843 = vmatpush1.bf16.msra.mxu0 %v9445_v10  ;;  %6698 = vmatprep.subr.bf16.mxu1 %v9450_v11  ;;  %v9504_v11 = vld [vmem:[#allocation5 + $0x1304] ss:$44 sps:$4 sm:$0xff]  }
 0x277   :  { %6844 = vmatprep.subr.bf16.mxu0 %v9453_v12  ;;  %6874 = vmatprep.mubr.bf16.mxu0 %v10020_v53  ;;  %v9507_v12 = vld [vmem:[#allocation5 + $0x394] ss:$44 sps:$4 sm:$0xff]  }
 0x279   :  { %6699 = vmatpush1.bf16.msra.mxu1 %v9448_v15 }
 0x27a   :  { %6845 = vmatpush1.bf16.msra.mxu0 %v9451_v16  ;;  %6700 = vmatprep.subr.bf16.mxu1 %v9456_v17  ;;  %v9502_v16 = vld [vmem:[#allocation5 + $0x1300] ss:$44 sps:$4 sm:$0xff]   ;;  %v9505_v17 = vld [vmem:[#allocation5 + $0x390] ss:$44 sps:$4 sm:$0xff]  }
 0x27b   :  { %6846 = vmatprep.subr.bf16.mxu0 %v9459_v18  ;;  %v9510_v18 = vld [vmem:[#allocation5 + $0x135c] ss:$44 sps:$4 sm:$0xff]  }
 0x27d   :  { %6701 = vmatpush1.bf16.msra.mxu1 %v9454_v19  ;;  %v9513_v19 = vld [vmem:[#allocation5 + $0x3ec] ss:$44 sps:$4 sm:$0xff]  }
 0x27e   :  { %6847 = vmatpush1.bf16.msra.mxu0 %v9457_v20  ;;  %6713 = vmatprep.subr.bf16.mxu1 %v9462_v22  ;;  %v9508_v20 = vld [vmem:[#allocation5 + $0x1358] ss:$44 sps:$4 sm:$0xff]   ;;  %v9511_v22 = vld [vmem:[#allocation5 + $0x3e8] ss:$44 sps:$4 sm:$0xff]  }
 0x27f   :  { %6848 = vmatprep.subr.bf16.mxu0 %v9465_v23  ;;  %v9516_v23 = vld [vmem:[#allocation5 + $0x13b4] ss:$44 sps:$4 sm:$0xff]  }
 0x280   :  { %6703 = vmatmul.mubr.bf16.vlgmr.msra.gmra.mrb[12].mxu1 %v10045_v35 }
 0x281   :  { %6714 = vmatpush1.bf16.msra.mxu1 %v9460_v24  ;;  %6745 = vmatprep.mubr.bf16.mxu1 %v10048_v46  ;;  %v9519_v24 = vld [vmem:[#allocation5 + $0x444] ss:$44 sps:$4 sm:$0xff]  }
 0x282   :  { %6849 = vmatpush1.bf16.msra.mxu0 %v9463_v25  ;;  %6715 = vmatprep.subr.bf16.mxu1 %v9468_v26  ;;  %v9514_v25 = vld [vmem:[#allocation5 + $0x13b0] ss:$44 sps:$4 sm:$0xff]   ;;  %v9517_v26 = vld [vmem:[#allocation5 + $0x440] ss:$44 sps:$4 sm:$0xff]  }
 0x283   :  { %6850 = vmatprep.subr.bf16.mxu0 %v9471_v28  ;;  %v9522_v28 = vld [vmem:[#allocation5 + $0x140c] ss:$44 sps:$4 sm:$0xff]  }
 0x285   :  { %6716 = vmatpush1.bf16.msra.mxu1 %v9466_v29  ;;  %v9525_v29 = vld [vmem:[#allocation5 + $0x49c] ss:$44 sps:$4 sm:$0xff]  }
 0x286   :  { %6851 = vmatpush1.bf16.msra.mxu0 %v9469_v30  ;;  %6717 = vmatprep.subr.bf16.mxu1 %v9474_v31  ;;  %v9520_v30 = vld [vmem:[#allocation5 + $0x1408] ss:$44 sps:$4 sm:$0xff]   ;;  %v9523_v31 = vld [vmem:[#allocation5 + $0x498] ss:$44 sps:$4 sm:$0xff]  }
 0x287   :  { %6852 = vmatprep.subr.bf16.mxu0 %v9477_v32  ;;  %v9528_v32 = vld [vmem:[#allocation5 + $0x1464] ss:$44 sps:$4 sm:$0xff]  }
 0x289   :  { %6718 = vmatpush1.bf16.msra.mxu1 %v9472_v33  ;;  %v9531_v33 = vld [vmem:[#allocation5 + $0x4f4] ss:$44 sps:$4 sm:$0xff]  }
 0x28a   :  { %6853 = vmatpush1.bf16.msra.mxu0 %v9475_v39  ;;  %6719 = vmatprep.subr.bf16.mxu1 %v9480_v36  ;;  %v9526_v39 = vld [vmem:[#allocation5 + $0x1460] ss:$44 sps:$4 sm:$0xff]   ;;  %v9529_v36 = vld [vmem:[#allocation5 + $0x4f0] ss:$44 sps:$4 sm:$0xff]  }
 0x28b   :  { %6854 = vmatprep.subr.bf16.mxu0 %v9483_v37  ;;  %v9534_v37 = vld [vmem:[#allocation5 + $0x14bc] ss:$44 sps:$4 sm:$0xff]  }
 0x28d   :  { %6720 = vmatpush1.bf16.msra.mxu1 %v9478_v42  ;;  %v9537_v42 = vld [vmem:[#allocation5 + $0x54c] ss:$44 sps:$4 sm:$0xff]  }
 0x28e   :  { %6855 = vmatpush1.bf16.msra.mxu0 %v9481_v38  ;;  %6721 = vmatprep.subr.bf16.mxu1 %v9486_v43  ;;  %v9532_v38 = vld [vmem:[#allocation5 + $0x14b8] ss:$44 sps:$4 sm:$0xff]   ;;  %v9535_v43 = vld [vmem:[#allocation5 + $0x548] ss:$44 sps:$4 sm:$0xff]  }
 0x28f   :  { %6856 = vmatprep.subr.bf16.mxu0 %v9489_v40  ;;  %v9540_v40 = vld [vmem:[#allocation5 + $0x1514] ss:$44 sps:$4 sm:$0xff]  }
 0x291   :  { %6722 = vmatpush1.bf16.msra.mxu1 %v9484_v41  ;;  %v9543_v41 = vld [vmem:[#allocation5 + $0x5a4] ss:$44 sps:$4 sm:$0xff]  }
 0x292   :  { %6857 = vmatpush1.bf16.msra.mxu0 %v9487_v60  ;;  %6723 = vmatprep.subr.bf16.mxu1 %v9492_v45  ;;  %v9538_v60 = vld [vmem:[#allocation5 + $0x1510] ss:$44 sps:$4 sm:$0xff]   ;;  %v9546_v45 = vld [vmem:[#allocation5 + $0x156c] ss:$44 sps:$4 sm:$0xff]  }
 0x293   :  { %6858 = vmatprep.subr.bf16.mxu0 %v9495_v48  ;;  %v6317_v58 = vpop.f32.mrb[8].mxu1  ;;  %v9549_v48 = vld [vmem:[#allocation5 + $0x5fc] ss:$44 sps:$4 sm:$0xff]  }
 0x294   :  { %v8441_v59 = vadd.f32 %v6317_v58, %v1088_v1  ;;  %v6319_v63 = vpop.f32.mrb[9].mxu1  ;;  %v9558_v58 = vld [vmem:[#allocation5 + $0x161c] ss:$44 sps:$4 sm:$0xff]  }
 0x295   :  { %v8442_v0 = vadd.f32 %v6319_v63, %v1092_v49  ;;  %v6321_v3 = vpop.f32.mrb[10].mxu1  ;;  %6724 = vmatpush1.bf16.msra.mxu1 %v9490_v4  ;;  %v9552_v4 = vld [vmem:[#allocation5 + $0x15c4] ss:$44 sps:$4 sm:$0xff]  }
 0x296   :  { %6859 = vmatpush1.bf16.msra.mxu0 %v9493_v50  ;;  %7348 = vst [vmem:[#allocation7 + $0x10] sm:$0xff] %v8441_v59  ;;  %v8443_v9 = vadd.f32 %v6321_v3, %v1088_v1  ;;  %v6323_v10 = vpop.f32.mrb[11].mxu1  ;;  %6725 = vmatprep.subr.bf16.mxu1 %v9498_v51  ;;  %v9544_v1 = vld [vmem:[#allocation5 + $0x1568] ss:$44 sps:$4 sm:$0xff]   ;;  %v9550_v51 = vld [vmem:[#allocation5 + $0x15c0] ss:$44 sps:$4 sm:$0xff]  }
 0x297   :  { %6860 = vmatprep.subr.bf16.mxu0 %v9501_v57  ;;  %7349 = vst [vmem:[#allocation7 + $0x18] sm:$0xff] %v8442_v0  ;;  %v8444_v15 = vadd.f32 %v6323_v10, %v1092_v49  ;;  %v9547_v49 = vld [vmem:[#allocation5 + $0x5f8] ss:$44 sps:$4 sm:$0xff]   ;;  %v9555_v50 = vld [vmem:[#allocation5 + $0x654] ss:$44 sps:$4 sm:$0xff]  }
 0x298   :  { %7359 = vst [vmem:[#allocation7 + $0x68] sm:$0xff] %v8443_v9  ;;  %v9553_v57 = vld [vmem:[#allocation5 + $0x650] ss:$44 sps:$4 sm:$0xff]   ;;  %v9561_v59 = vld [vmem:[#allocation5 + $0x6ac] ss:$44 sps:$4 sm:$0xff]  }
 0x299   :  { %7360 = vst [vmem:[#allocation7 + $0x70] sm:$0xff] %v8444_v15  ;;  %6726 = vmatpush1.bf16.msra.mxu1 %v9496_v5  ;;  %v9556_v63 = vld [vmem:[#allocation5 + $0x1618] ss:$44 sps:$4 sm:$0xff]   ;;  %v9559_v0 = vld [vmem:[#allocation5 + $0x6a8] ss:$44 sps:$4 sm:$0xff]  }
 0x29a   :  { %6861 = vmatpush1.bf16.msra.mxu0 %v9499_v6  ;;  %6727 = vmatprep.subr.bf16.mxu1 %v9504_v11  ;;  %v9564_v3 = vld [vmem:[#allocation5 + $0x1674] ss:$44 sps:$4 sm:$0xff]   ;;  %v9567_v5 = vld [vmem:[#allocation5 + $0x704] ss:$44 sps:$4 sm:$0xff]   ;;  %v9570_v10 = vld [vmem:[#allocation5 + $0x16cc] ss:$44 sps:$4 sm:$0xff]  }
 0x29b   :  { %6862 = vmatprep.subr.bf16.mxu0 %v9507_v12  ;;  %v9562_v6 = vld [vmem:[#allocation5 + $0x1670] ss:$44 sps:$4 sm:$0xff]   ;;  %v9565_v9 = vld [vmem:[#allocation5 + $0x700] ss:$44 sps:$4 sm:$0xff]   ;;  %v9568_v12 = vld [vmem:[#allocation5 + $0x16c8] ss:$44 sps:$4 sm:$0xff]  }
 0x29c   :  { %v9573_v11 = vld [vmem:[#allocation5 + $0x75c] ss:$44 sps:$4 sm:$0xff]   ;;  %v9571_v15 = vld [vmem:[#allocation5 + $0x758] ss:$44 sps:$4 sm:$0xff]  }
 0x29d   :  { %6728 = vmatpush1.bf16.msra.mxu1 %v9502_v16  ;;  %v9576_v16 = vld [vmem:[#allocation5 + $0x1724] ss:$44 sps:$4 sm:$0xff]  }
 0x29e   :  { %6863 = vmatpush1.bf16.msra.mxu0 %v9505_v17  ;;  %6729 = vmatprep.subr.bf16.mxu1 %v9510_v18  ;;  %v9579_v17 = vld [vmem:[#allocation5 + $0x7b4] ss:$44 sps:$4 sm:$0xff]  }
 0x29f   :  { %6864 = vmatprep.subr.bf16.mxu0 %v9513_v19  ;;  %v9574_v18 = vld [vmem:[#allocation5 + $0x1720] ss:$44 sps:$4 sm:$0xff]   ;;  %v9577_v19 = vld [vmem:[#allocation5 + $0x7b0] ss:$44 sps:$4 sm:$0xff]  }
 0x2a1   :  { %6730 = vmatpush1.bf16.msra.mxu1 %v9508_v20  ;;  %v9582_v20 = vld [vmem:[#allocation5 + $0x177c] ss:$44 sps:$4 sm:$0xff]  }
 0x2a2   :  { %6865 = vmatpush1.bf16.msra.mxu0 %v9511_v22  ;;  %6731 = vmatprep.subr.bf16.mxu1 %v9516_v23  ;;  %v9585_v22 = vld [vmem:[#allocation5 + $0x80c] ss:$44 sps:$4 sm:$0xff]  }
 0x2a3   :  { %6866 = vmatprep.subr.bf16.mxu0 %v9519_v24  ;;  %v9580_v23 = vld [vmem:[#allocation5 + $0x1778] ss:$44 sps:$4 sm:$0xff]   ;;  %v9583_v24 = vld [vmem:[#allocation5 + $0x808] ss:$44 sps:$4 sm:$0xff]  }
 0x2a5   :  { %6732 = vmatpush1.bf16.msra.mxu1 %v9514_v25  ;;  %v9588_v25 = vld [vmem:[#allocation5 + $0x17d4] ss:$44 sps:$4 sm:$0xff]  }
 0x2a6   :  { %6867 = vmatpush1.bf16.msra.mxu0 %v9517_v26  ;;  %6733 = vmatprep.subr.bf16.mxu1 %v9522_v28  ;;  %v9591_v26 = vld [vmem:[#allocation5 + $0x864] ss:$44 sps:$4 sm:$0xff]  }
 0x2a7   :  { %6868 = vmatprep.subr.bf16.mxu0 %v9525_v29  ;;  %v9586_v28 = vld [vmem:[#allocation5 + $0x17d0] ss:$44 sps:$4 sm:$0xff]   ;;  %v9589_v29 = vld [vmem:[#allocation5 + $0x860] ss:$44 sps:$4 sm:$0xff]  }
 0x2a9   :  { %6734 = vmatpush1.bf16.msra.mxu1 %v9520_v30  ;;  %v9594_v30 = vld [vmem:[#allocation5 + $0x182c] ss:$44 sps:$4 sm:$0xff]  }
 0x2aa   :  { %6869 = vmatpush1.bf16.msra.mxu0 %v9523_v31  ;;  %6735 = vmatprep.subr.bf16.mxu1 %v9528_v32  ;;  %v9597_v31 = vld [vmem:[#allocation5 + $0x8bc] ss:$44 sps:$4 sm:$0xff]  }
 0x2ab   :  { %6870 = vmatprep.subr.bf16.mxu0 %v9531_v33  ;;  %v9592_v32 = vld [vmem:[#allocation5 + $0x1828] ss:$44 sps:$4 sm:$0xff]   ;;  %v9595_v33 = vld [vmem:[#allocation5 + $0x8b8] ss:$44 sps:$4 sm:$0xff]  }
 0x2ad   :  { %6736 = vmatpush1.bf16.msra.mxu1 %v9526_v39  ;;  %v9600_v39 = vld [vmem:[#allocation5 + $0x1884] ss:$44 sps:$4 sm:$0xff]  }
 0x2ae   :  { %6871 = vmatpush1.bf16.msra.mxu0 %v9529_v36  ;;  %6737 = vmatprep.subr.bf16.mxu1 %v9534_v37  ;;  %v9603_v36 = vld [vmem:[#allocation5 + $0x914] ss:$44 sps:$4 sm:$0xff]  }
 0x2af   :  { %6872 = vmatprep.subr.bf16.mxu0 %v9537_v42  ;;  %v9598_v37 = vld [vmem:[#allocation5 + $0x1880] ss:$44 sps:$4 sm:$0xff]   ;;  %v9601_v42 = vld [vmem:[#allocation5 + $0x910] ss:$44 sps:$4 sm:$0xff]  }
 0x2b1   :  { %6738 = vmatpush1.bf16.msra.mxu1 %v9532_v38  ;;  %v9606_v38 = vld [vmem:[#allocation5 + $0x18dc] ss:$44 sps:$4 sm:$0xff]  }
 0x2b2   :  { %6873 = vmatpush1.bf16.msra.mxu0 %v9535_v43  ;;  %6739 = vmatprep.subr.bf16.mxu1 %v9540_v40  ;;  %v9609_v43 = vld [vmem:[#allocation5 + $0x96c] ss:$44 sps:$4 sm:$0xff]  }
 0x2b3   :  { %6885 = vmatprep.subr.bf16.mxu0 %v9543_v41  ;;  %v9604_v40 = vld [vmem:[#allocation5 + $0x18d8] ss:$44 sps:$4 sm:$0xff]   ;;  %v9607_v41 = vld [vmem:[#allocation5 + $0x968] ss:$44 sps:$4 sm:$0xff]  }
 0x2b5   :  { %6875 = vmatmul.mubr.bf16.vlgmr.msra.gmra.mrb[8].mxu0 %v10026_v13  ;;  %6740 = vmatpush1.bf16.msra.mxu1 %v9538_v60  ;;  %v9612_v60 = vld [vmem:[#allocation5 + $0x1934] ss:$44 sps:$4 sm:$0xff]  }
 0x2b6   :  { %6886 = vmatpush1.bf16.msra.mxu0 %v9541_v44  ;;  %6741 = vmatprep.subr.bf16.mxu1 %v9546_v45  ;;  %v9615_v44 = vld [vmem:[#allocation5 + $0x9c4] ss:$44 sps:$4 sm:$0xff]  }
 0x2b7   :  { %6887 = vmatprep.subr.bf16.mxu0 %v9549_v48  ;;  %6917 = vmatprep.mubr.bf16.mxu0 %v10022_v54  ;;  %v9610_v45 = vld [vmem:[#allocation5 + $0x1930] ss:$44 sps:$4 sm:$0xff]   ;;  %v9613_v48 = vld [vmem:[#allocation5 + $0x9c0] ss:$44 sps:$4 sm:$0xff]  }
 0x2b9   :  { %6742 = vmatpush1.bf16.msra.mxu1 %v9544_v1  ;;  %v9618_v1 = vld [vmem:[#allocation5 + $0x198c] ss:$44 sps:$4 sm:$0xff]  }
 0x2ba   :  { %6888 = vmatpush1.bf16.msra.mxu0 %v9547_v49  ;;  %6743 = vmatprep.subr.bf16.mxu1 %v9552_v4  ;;  %v9621_v49 = vld [vmem:[#allocation5 + $0xa1c] ss:$44 sps:$4 sm:$0xff]  }
 0x2bb   :  { %6889 = vmatprep.subr.bf16.mxu0 %v9555_v50  ;;  %v9616_v4 = vld [vmem:[#allocation5 + $0x1988] ss:$44 sps:$4 sm:$0xff]   ;;  %v9619_v50 = vld [vmem:[#allocation5 + $0xa18] ss:$44 sps:$4 sm:$0xff]  }
 0x2bd   :  { %6744 = vmatpush1.bf16.msra.mxu1 %v9550_v51  ;;  %v9624_v51 = vld [vmem:[#allocation5 + $0x19e4] ss:$44 sps:$4 sm:$0xff]  }
 0x2be   :  { %6890 = vmatpush1.bf16.msra.mxu0 %v9553_v57  ;;  %6756 = vmatprep.subr.bf16.mxu1 %v9558_v58  ;;  %v9627_v57 = vld [vmem:[#allocation5 + $0xa74] ss:$44 sps:$4 sm:$0xff]  }
 0x2bf   :  { %6891 = vmatprep.subr.bf16.mxu0 %v9561_v59  ;;  %v9622_v58 = vld [vmem:[#allocation5 + $0x19e0] ss:$44 sps:$4 sm:$0xff]   ;;  %v9625_v59 = vld [vmem:[#allocation5 + $0xa70] ss:$44 sps:$4 sm:$0xff]  }
 0x2c0   :  { %6746 = vmatmul.mubr.bf16.vlgmr.msra.gmra.mrb[12].mxu1 %v10053_v52 }
 0x2c1   :  { %6757 = vmatpush1.bf16.msra.mxu1 %v9556_v63  ;;  %6788 = vmatprep.mubr.bf16.mxu1 %v10055_v61  ;;  %v9630_v63 = vld [vmem:[#allocation5 + $0x1a3c] ss:$44 sps:$4 sm:$0xff]  }
 0x2c2   :  { %6892 = vmatpush1.bf16.msra.mxu0 %v9559_v0  ;;  %6758 = vmatprep.subr.bf16.mxu1 %v9564_v3  ;;  %v9633_v0 = vld [vmem:[#allocation5 + $0xacc] ss:$44 sps:$4 sm:$0xff]  }
 0x2c3   :  { %6893 = vmatprep.subr.bf16.mxu0 %v9567_v5  ;;  %v9628_v3 = vld [vmem:[#allocation5 + $0x1a38] ss:$44 sps:$4 sm:$0xff]   ;;  %v9631_v5 = vld [vmem:[#allocation5 + $0xac8] ss:$44 sps:$4 sm:$0xff]  }
 0x2c5   :  { %6759 = vmatpush1.bf16.msra.mxu1 %v9562_v6  ;;  %v9636_v6 = vld [vmem:[#allocation5 + $0x1a94] ss:$44 sps:$4 sm:$0xff]  }
 0x2c6   :  { %6894 = vmatpush1.bf16.msra.mxu0 %v9565_v9  ;;  %6760 = vmatprep.subr.bf16.mxu1 %v9570_v10  ;;  %v9639_v9 = vld [vmem:[#allocation5 + $0xb24] ss:$44 sps:$4 sm:$0xff]  }
 0x2c7   :  { %6895 = vmatprep.subr.bf16.mxu0 %v9573_v11  ;;  %v9634_v10 = vld [vmem:[#allocation5 + $0x1a90] ss:$44 sps:$4 sm:$0xff]   ;;  %v9637_v11 = vld [vmem:[#allocation5 + $0xb20] ss:$44 sps:$4 sm:$0xff]  }
 0x2c9   :  { %6761 = vmatpush1.bf16.msra.mxu1 %v9568_v12  ;;  %v9642_v12 = vld [vmem:[#allocation5 + $0x1aec] ss:$44 sps:$4 sm:$0xff]  }
 0x2ca   :  { %6896 = vmatpush1.bf16.msra.mxu0 %v9571_v15  ;;  %6762 = vmatprep.subr.bf16.mxu1 %v9576_v16  ;;  %v9645_v15 = vld [vmem:[#allocation5 + $0xb7c] ss:$44 sps:$4 sm:$0xff]  }
 0x2cb   :  { %6897 = vmatprep.subr.bf16.mxu0 %v9579_v17  ;;  %v9640_v16 = vld [vmem:[#allocation5 + $0x1ae8] ss:$44 sps:$4 sm:$0xff]   ;;  %v9643_v17 = vld [vmem:[#allocation5 + $0xb78] ss:$44 sps:$4 sm:$0xff]  }
 0x2cd   :  { %6763 = vmatpush1.bf16.msra.mxu1 %v9574_v18  ;;  %v9648_v18 = vld [vmem:[#allocation5 + $0x1b44] ss:$44 sps:$4 sm:$0xff]  }
 0x2ce   :  { %6898 = vmatpush1.bf16.msra.mxu0 %v9577_v19  ;;  %6764 = vmatprep.subr.bf16.mxu1 %v9582_v20  ;;  %v9651_v19 = vld [vmem:[#allocation5 + $0xbd4] ss:$44 sps:$4 sm:$0xff]  }
 0x2cf   :  { %6899 = vmatprep.subr.bf16.mxu0 %v9585_v22  ;;  %v9646_v20 = vld [vmem:[#allocation5 + $0x1b40] ss:$44 sps:$4 sm:$0xff]   ;;  %v9649_v22 = vld [vmem:[#allocation5 + $0xbd0] ss:$44 sps:$4 sm:$0xff]  }
 0x2d1   :  { %6765 = vmatpush1.bf16.msra.mxu1 %v9580_v23  ;;  %v9654_v23 = vld [vmem:[#allocation5 + $0x1b9c] ss:$44 sps:$4 sm:$0xff]  }
 0x2d2   :  { %6900 = vmatpush1.bf16.msra.mxu0 %v9583_v24  ;;  %6766 = vmatprep.subr.bf16.mxu1 %v9588_v25  ;;  %v9657_v24 = vld [vmem:[#allocation5 + $0xc2c] ss:$44 sps:$4 sm:$0xff]  }
 0x2d3   :  { %6901 = vmatprep.subr.bf16.mxu0 %v9591_v26  ;;  %v9652_v25 = vld [vmem:[#allocation5 + $0x1b98] ss:$44 sps:$4 sm:$0xff]   ;;  %v9655_v26 = vld [vmem:[#allocation5 + $0xc28] ss:$44 sps:$4 sm:$0xff]  }
 0x2d5   :  { %6767 = vmatpush1.bf16.msra.mxu1 %v9586_v28  ;;  %v9660_v28 = vld [vmem:[#allocation5 + $0x1bf4] ss:$44 sps:$4 sm:$0xff]  }
 0x2d6   :  { %6902 = vmatpush1.bf16.msra.mxu0 %v9589_v29  ;;  %6768 = vmatprep.subr.bf16.mxu1 %v9594_v30  ;;  %v9663_v29 = vld [vmem:[#allocation5 + $0xc84] ss:$44 sps:$4 sm:$0xff]   ;;  %v9666_v30 = vld [vmem:[#allocation5 + $0x1c4c] ss:$44 sps:$4 sm:$0x7f]  }
 0x2d7   :  { %6903 = vmatprep.subr.bf16.mxu0 %v9597_v31  ;;  %v9658_v31 = vld [vmem:[#allocation5 + $0x1bf0] ss:$44 sps:$4 sm:$0xff]  }
 0x2d9   :  { %6769 = vmatpush1.bf16.msra.mxu1 %v9592_v32  ;;  %v9661_v32 = vld [vmem:[#allocation5 + $0xc80] ss:$44 sps:$4 sm:$0xff]  }
 0x2da   :  { %6904 = vmatpush1.bf16.msra.mxu0 %v9595_v33  ;;  %6770 = vmatprep.subr.bf16.mxu1 %v9600_v39  ;;  %v9664_v33 = vld [vmem:[#allocation5 + $0x1c48] ss:$44 sps:$4 sm:$0x7f]   ;;  %v5799_v39 = vand.u32 %v9666_v30, %v10030_v21  ;;  %v9719_v30 = vld [vmem:[#allocation5 + $0x600] ss:$44 sps:$4 sm:$0xff]  }
 0x2db   :  { %6905 = vmatprep.subr.bf16.mxu0 %v9603_v36  ;;  %v9669_v36 = vld [vmem:[#allocation5 + $0xcdc] ss:$44 sps:$4 sm:$0xff]  }
 0x2dd   :  { %6771 = vmatpush1.bf16.msra.mxu1 %v9598_v37  ;;  %v9667_v37 = vld [vmem:[#allocation5 + $0xcd8] ss:$44 sps:$4 sm:$0xff]  }
 0x2de   :  { %6906 = vmatpush1.bf16.msra.mxu0 %v9601_v42  ;;  %6772 = vmatprep.subr.bf16.mxu1 %v9606_v38  ;;  %v5796_v42 = vand.u32 %v9664_v33, %v10030_v21  ;;  %v9672_v38 = vld [vmem:[#allocation5 + $0xd34] ss:$44 sps:$4 sm:$0xff]  }
 0x2df   :  { %6907 = vmatprep.subr.bf16.mxu0 %v9609_v43  ;;  %v9673_v43 = vld [vmem:[#allocation5 + $0x2e8] ss:$44 sps:$4 sm:$0xff]   ;;  %v9720_v33 = vld [vmem:[#allocation5 + $0x10a0] ss:$44 sps:$4 sm:$0xff]  }
 0x2e1   :  { %6773 = vmatpush1.bf16.msra.mxu1 %v9604_v40  ;;  %v9670_v40 = vld [vmem:[#allocation5 + $0xd30] ss:$44 sps:$4 sm:$0xff]  }
 0x2e2   :  { %6908 = vmatpush1.bf16.msra.mxu0 %v9607_v41  ;;  %6774 = vmatprep.subr.bf16.mxu1 %v9612_v60  ;;  %v9674_v41 = vld [vmem:[#allocation5 + $0x28] ss:$44 sps:$4 sm:$0xff]   ;;  %v9677_v60 = vld [vmem:[#allocation5 + $0xd8c] ss:$44 sps:$4 sm:$0xff]  }
 0x2e3   :  { %6909 = vmatprep.subr.bf16.mxu0 %v9615_v44  ;;  %v9678_v44 = vld [vmem:[#allocation5 + $0x340] ss:$44 sps:$4 sm:$0xff]  }
 0x2e5   :  { %6775 = vmatpush1.bf16.msra.mxu1 %v9610_v45  ;;  %v9675_v45 = vld [vmem:[#allocation5 + $0xd88] ss:$44 sps:$4 sm:$0xff]  }
 0x2e6   :  { %6910 = vmatpush1.bf16.msra.mxu0 %v9613_v48  ;;  %6776 = vmatprep.subr.bf16.mxu1 %v9618_v1  ;;  %v9679_v48 = vld [vmem:[#allocation5 + $0x80] ss:$44 sps:$4 sm:$0xff]   ;;  %v9682_v1 = vld [vmem:[#allocation5 + $0xde4] ss:$44 sps:$4 sm:$0xff]  }
 0x2e7   :  { %6911 = vmatprep.subr.bf16.mxu0 %v9621_v49  ;;  %v9683_v49 = vld [vmem:[#allocation5 + $0x398] ss:$44 sps:$4 sm:$0xff]  }
 0x2e9   :  { %6777 = vmatpush1.bf16.msra.mxu1 %v9616_v4  ;;  %v9680_v4 = vld [vmem:[#allocation5 + $0xde0] ss:$44 sps:$4 sm:$0xff]  }
 0x2ea   :  { %6912 = vmatpush1.bf16.msra.mxu0 %v9619_v50  ;;  %6778 = vmatprep.subr.bf16.mxu1 %v9624_v51  ;;  %v9684_v50 = vld [vmem:[#allocation5 + $0xd8] ss:$44 sps:$4 sm:$0xff]   ;;  %v9687_v51 = vld [vmem:[#allocation5 + $0xe3c] ss:$44 sps:$4 sm:$0xff]  }
 0x2eb   :  { %6913 = vmatprep.subr.bf16.mxu0 %v9627_v57  ;;  %v9688_v57 = vld [vmem:[#allocation5 + $0x3f0] ss:$44 sps:$4 sm:$0xff]  }
 0x2ed   :  { %6779 = vmatpush1.bf16.msra.mxu1 %v9622_v58  ;;  %v9685_v58 = vld [vmem:[#allocation5 + $0xe38] ss:$44 sps:$4 sm:$0xff]  }
 0x2ee   :  { %6914 = vmatpush1.bf16.msra.mxu0 %v9625_v59  ;;  %6780 = vmatprep.subr.bf16.mxu1 %v9630_v63  ;;  %v9689_v59 = vld [vmem:[#allocation5 + $0x130] ss:$44 sps:$4 sm:$0xff]   ;;  %v9692_v63 = vld [vmem:[#allocation5 + $0xe94] ss:$44 sps:$4 sm:$0xff]  }
 0x2ef   :  { %6915 = vmatprep.subr.bf16.mxu0 %v9633_v0  ;;  %v9693_v0 = vld [vmem:[#allocation5 + $0x448] ss:$44 sps:$4 sm:$0xff]  }
 0x2f1   :  { %6781 = vmatpush1.bf16.msra.mxu1 %v9628_v3  ;;  %v9690_v3 = vld [vmem:[#allocation5 + $0xe90] ss:$44 sps:$4 sm:$0xff]  }
 0x2f2   :  { %6916 = vmatpush1.bf16.msra.mxu0 %v9631_v5  ;;  %6782 = vmatprep.subr.bf16.mxu1 %v9636_v6  ;;  %v9697_v5 = vld [vmem:[#allocation5 + $0xeec] ss:$44 sps:$4 sm:$0xff]  }
 0x2f3   :  { %6928 = vmatprep.subr.bf16.mxu0 %v9639_v9  ;;  %v9698_v6 = vld [vmem:[#allocation5 + $0x4a0] ss:$44 sps:$4 sm:$0xff]   ;;  %v9695_v9 = vld [vmem:[#allocation5 + $0xee8] ss:$44 sps:$4 sm:$0xff]  }
 0x2f5   :  { %6918 = vmatmul.mubr.bf16.vlgmr.msra.gmra.mrb[8].mxu0 %v10028_v14  ;;  %6783 = vmatpush1.bf16.msra.mxu1 %v9634_v10  ;;  %v9699_v10 = vld [vmem:[#allocation5 + $0x1e0] ss:$44 sps:$4 sm:$0xff]  }
 0x2f6   :  { %6929 = vmatpush1.bf16.msra.mxu0 %v9637_v11  ;;  %6784 = vmatprep.subr.bf16.mxu1 %v9642_v12  ;;  %v9702_v11 = vld [vmem:[#allocation5 + $0xf44] ss:$44 sps:$4 sm:$0xff]  }
 0x2f7   :  { %6930 = vmatprep.subr.bf16.mxu0 %v9645_v15  ;;  %6960 = vmatprep.mubr.bf16.mxu0 %v10042_v55  ;;  %v9703_v12 = vld [vmem:[#allocation5 + $0x4f8] ss:$44 sps:$4 sm:$0xff]   ;;  %v9700_v15 = vld [vmem:[#allocation5 + $0xf40] ss:$44 sps:$4 sm:$0xff]  }
 0x2f9   :  { %6785 = vmatpush1.bf16.msra.mxu1 %v9640_v16  ;;  %v9704_v16 = vld [vmem:[#allocation5 + $0x238] ss:$44 sps:$4 sm:$0xff]  }
 0x2fa   :  { %6931 = vmatpush1.bf16.msra.mxu0 %v9643_v17  ;;  %6786 = vmatprep.subr.bf16.mxu1 %v9648_v18  ;;  %v9707_v17 = vld [vmem:[#allocation5 + $0xf9c] ss:$44 sps:$4 sm:$0xff]  }
 0x2fb   :  { %6932 = vmatprep.subr.bf16.mxu0 %v9651_v19  ;;  %v9708_v18 = vld [vmem:[#allocation5 + $0x550] ss:$44 sps:$4 sm:$0xff]   ;;  %v9705_v19 = vld [vmem:[#allocation5 + $0xf98] ss:$44 sps:$4 sm:$0xff]  }
 0x2fd   :  { %6787 = vmatpush1.bf16.msra.mxu1 %v9646_v20  ;;  %v9709_v20 = vld [vmem:[#allocation5 + $0x290] ss:$44 sps:$4 sm:$0xff]  }
 0x2fe   :  { %6933 = vmatpush1.bf16.msra.mxu0 %v9649_v22  ;;  %6799 = vmatprep.subr.bf16.mxu1 %v9654_v23  ;;  %v9712_v22 = vld [vmem:[#allocation5 + $0xff4] ss:$44 sps:$4 sm:$0xff]  }
 0x2ff   :  { %6934 = vmatprep.subr.bf16.mxu0 %v9657_v24  ;;  %v9713_v23 = vld [vmem:[#allocation5 + $0x868] ss:$44 sps:$4 sm:$0xff]   ;;  %v9710_v24 = vld [vmem:[#allocation5 + $0xff0] ss:$44 sps:$4 sm:$0xff]  }
 0x300   :  { %6789 = vmatmul.mubr.bf16.vlgmr.msra.gmra.mrb[12].mxu1 %v10061_v8 }
 0x301   :  { %6800 = vmatpush1.bf16.msra.mxu1 %v9652_v25  ;;  %6831 = vmatprep.mubr.bf16.mxu1 %v9969_v27  ;;  %v9714_v25 = vld [vmem:[#allocation5 + $0x5a8] ss:$44 sps:$4 sm:$0xff]  }
 0x302   :  { %6935 = vmatpush1.bf16.msra.mxu0 %v9655_v26  ;;  %6801 = vmatprep.subr.bf16.mxu1 %v9660_v28  ;;  %v9717_v26 = vld [vmem:[#allocation5 + $0x104c] ss:$44 sps:$4 sm:$0xff]  }
 0x303   :  { %6936 = vmatprep.subr.bf16.mxu0 %v9663_v29  ;;  %v9718_v28 = vld [vmem:[#allocation5 + $0x8c0] ss:$44 sps:$4 sm:$0xff]   ;;  %v9715_v29 = vld [vmem:[#allocation5 + $0x1048] ss:$44 sps:$4 sm:$0xff]  }
 0x305   :  { %6802 = vmatpush1.bf16.msra.mxu1 %v9658_v31  ;;  %v9722_v31 = vld [vmem:[#allocation5 + $0x10a4] ss:$44 sps:$4 sm:$0xff]  }
 0x306   :  { %6937 = vmatpush1.bf16.msra.mxu0 %v9661_v32  ;;  %6803 = vmatprep.subr.bf16.mxu1 %v5799_v39  ;;  %v9723_v32 = vld [vmem:[#allocation5 + $0x918] ss:$44 sps:$4 sm:$0xff]  }
 0x307   :  { %6938 = vmatprep.subr.bf16.mxu0 %v9669_v36  ;;  %v9724_v39 = vld [vmem:[#allocation5 + $0x658] ss:$44 sps:$4 sm:$0xff]   ;;  %v9727_v36 = vld [vmem:[#allocation5 + $0x10fc] ss:$44 sps:$4 sm:$0xff]  }
 0x309   :  { %6804 = vmatpush1.bf16.msra.mxu1 %v5796_v42  ;;  %v9729_v42 = vld [vmem:[#allocation5 + $0x6b0] ss:$44 sps:$4 sm:$0xff]  }
 0x30a   :  { %6939 = vmatpush1.bf16.msra.mxu0 %v9667_v37  ;;  %8305 = vmatprep.subr.bf16.mxu1 %v9673_v43  ;;  %v9728_v37 = vld [vmem:[#allocation5 + $0x970] ss:$44 sps:$4 sm:$0xff]   ;;  %v9733_v43 = vld [vmem:[#allocation5 + $0x9c8] ss:$44 sps:$4 sm:$0xff]  }
 0x30b   :  { %6940 = vmatprep.subr.bf16.mxu0 %v9672_v38  ;;  %v9732_v38 = vld [vmem:[#allocation5 + $0x1154] ss:$44 sps:$4 sm:$0xff]  }
 0x30c   :  { %8302 = vmatmul.mubr.msk.bf16.vlgmr.msra.gmra.mrb[12].mxu1 %vm5769_vm2, %v10037_v34 }
 0x30d   :  { %8306 = vmatpush3.bf16.msra.mxu1 %v9674_v41  ;;  %7132 = vmatprep.mubr.bf16.mxu1 %v10020_v53  ;;  %v9694_v53 = vld [vmem:[#allocation5 + $0x188] ss:$44 sps:$4 sm:$0xff]   ;;  %v9737_v41 = vld [vmem:[#allocation5 + $0x11ac] ss:$44 sps:$4 sm:$0xff]  }
 0x30e   :  { %6941 = vmatpush1.bf16.msra.mxu0 %v9670_v40  ;;  %8307 = vmatprep.subr.bf16.mxu1 %v9678_v44  ;;  %v9734_v40 = vld [vmem:[#allocation5 + $0x708] ss:$44 sps:$4 sm:$0xff]  }
 0x30f   :  { %6942 = vmatprep.subr.bf16.mxu0 %v9677_v60  ;;  %v9738_v60 = vld [vmem:[#allocation5 + $0xa20] ss:$44 sps:$4 sm:$0xff]   ;;  %v9735_v44 = vld [vmem:[#allocation5 + $0x11a8] ss:$44 sps:$4 sm:$0xff]  }
 0x311   :  { %8308 = vmatpush3.bf16.msra.mxu1 %v9679_v48  ;;  %v9742_v48 = vld [vmem:[#allocation5 + $0x1204] ss:$44 sps:$4 sm:$0xff]  }
 0x312   :  { %6943 = vmatpush1.bf16.msra.mxu0 %v9675_v45  ;;  %8309 = vmatprep.subr.bf16.mxu1 %v9683_v49  ;;  %v9739_v45 = vld [vmem:[#allocation5 + $0x760] ss:$44 sps:$4 sm:$0xff]   ;;  %v1095_v49 = vsub.s32 4, %v10098_v56 }
 0x313   :  { %6944 = vmatprep.subr.bf16.mxu0 %v9682_v1  ;;  %v9743_v1 = vld [vmem:[#allocation5 + $0xa78] ss:$44 sps:$4 sm:$0xff]  }
 0x315   :  { %8310 = vmatpush3.bf16.msra.mxu1 %v9684_v50  ;;  %v9744_v50 = vld [vmem:[#allocation5 + $0x7b8] ss:$44 sps:$4 sm:$0xff]  }
 0x316   :  { %6945 = vmatpush1.bf16.msra.mxu0 %v9680_v4  ;;  %8311 = vmatprep.subr.bf16.mxu1 %v9688_v57  ;;  %v9740_v4 = vld [vmem:[#allocation5 + $0x1200] ss:$44 sps:$4 sm:$0xff]   ;;  %v9747_v57 = vld [vmem:[#allocation5 + $0x125c] ss:$44 sps:$4 sm:$0xff]  }
 0x317   :  { %6946 = vmatprep.subr.bf16.mxu0 %v9687_v51  ;;  %v1099_v51 = vsub.s32 5, %v10098_v56 }
 0x319   :  { %8312 = vmatpush3.bf16.msra.mxu1 %v9689_v59  ;;  %v1096_v59 = vrot.slane %v10137_v62, %v1095_v49  ;;  %v9790_v49 = vld [vmem:[#allocation5 + $0x1570] ss:$44 sps:$4 sm:$0xff]  }
 0x31a   :  { %6947 = vmatpush1.bf16.msra.mxu0 %v9685_v58  ;;  %8313 = vmatprep.subr.bf16.mxu1 %v9693_v0  ;;  %v9748_v58 = vld [vmem:[#allocation5 + $0xad0] ss:$44 sps:$4 sm:$0xff]   ;;  %v9745_v0 = vld [vmem:[#allocation5 + $0x1258] ss:$44 sps:$4 sm:$0xff]  }
 0x31b   :  { %6948 = vmatprep.subr.bf16.mxu0 %v9692_v63  ;;  %v1100_v63 = vrot.slane %v10137_v62, %v1099_v51  ;;  %v9757_v62 = vld [vmem:[#allocation5 + $0x130c] ss:$44 sps:$4 sm:$0xff]  }
 0x31c   :  { %v9798_v51 = vld [vmem:[#allocation5 + $0x13c0] ss:$44 sps:$4 sm:$0xff]  }
 0x31d   :  { %8314 = vmatpush3.bf16.msra.mxu1 %v9694_v53  ;;  %v9752_v53 = vld [vmem:[#allocation5 + $0x12b4] ss:$44 sps:$4 sm:$0xff]  }
 0x31e   :  { %6949 = vmatpush1.bf16.msra.mxu0 %v9690_v3  ;;  %8315 = vmatprep.subr.bf16.mxu1 %v9698_v6  ;;  %v9749_v3 = vld [vmem:[#allocation5 + $0x810] ss:$44 sps:$4 sm:$0xff]  }
 0x31f   :  { %6950 = vmatprep.subr.bf16.mxu0 %v9697_v5  ;;  %v9753_v5 = vld [vmem:[#allocation5 + $0xde8] ss:$44 sps:$4 sm:$0xff]  }
 0x321   :  { %8316 = vmatpush3.bf16.msra.mxu1 %v9699_v10 }
 0x322   :  { %6951 = vmatpush1.bf16.msra.mxu0 %v9695_v9  ;;  %8317 = vmatprep.subr.bf16.mxu1 %v9703_v12 }
 0x323   :  { %6952 = vmatprep.subr.bf16.mxu0 %v9702_v11 }
 0x325   :  { %8318 = vmatpush3.bf16.msra.mxu1 %v9704_v16  ;;  %v9754_v16 = vld [vmem:[#allocation5 + $0xb28] ss:$44 sps:$4 sm:$0xff]  }
 0x326   :  { %6953 = vmatpush1.bf16.msra.mxu0 %v9700_v15  ;;  %8319 = vmatprep.subr.bf16.mxu1 %v9708_v18  ;;  %v9750_v15 = vld [vmem:[#allocation5 + $0x12b0] ss:$44 sps:$4 sm:$0xff]  }
 0x327   :  { %6954 = vmatprep.subr.bf16.mxu0 %v9707_v17 }
 0x329   :  { %8320 = vmatpush3.bf16.msra.mxu1 %v9709_v20 }
 0x32a   :  { %6955 = vmatpush1.bf16.msra.mxu0 %v9705_v19  ;;  %8327 = vmatprep.subr.bf16.mxu1 %v9713_v23  ;;  %v9758_v19 = vld [vmem:[#allocation5 + $0xe40] ss:$44 sps:$4 sm:$0xff]  }
 0x32b   :  { %6956 = vmatprep.subr.bf16.mxu0 %v9712_v22  ;;  %v9755_v22 = vld [vmem:[#allocation5 + $0x1308] ss:$44 sps:$4 sm:$0xff]   ;;  %v9759_v23 = vld [vmem:[#allocation5 + $0xb80] ss:$44 sps:$4 sm:$0xff]  }
 0x32c   :  { %7133 = vmatmul.mubr.bf16.vlgmr.msra.gmra.mrb[16].mxu1 %v10026_v13  ;;  %v9725_v13 = vld [vmem:[#allocation5 + $0x10f8] ss:$44 sps:$4 sm:$0xff]  }
 0x32d   :  { %8328 = vmatpush3.bf16.msra.mxu1 %v9714_v25  ;;  %7173 = vmatprep.mubr.bf16.mxu1 %v10022_v54  ;;  %v9730_v54 = vld [vmem:[#allocation5 + $0x1150] ss:$44 sps:$4 sm:$0xff]   ;;  %v9763_v25 = vld [vmem:[#allocation5 + $0xe98] ss:$44 sps:$4 sm:$0xff]  }
 0x32e   :  { %6957 = vmatpush1.bf16.msra.mxu0 %v9710_v24  ;;  %8329 = vmatprep.subr.bf16.mxu1 %v9718_v28  ;;  %v9762_v24 = vld [vmem:[#allocation5 + $0x1364] ss:$44 sps:$4 sm:$0xff]  }
 0x32f   :  { %6958 = vmatprep.subr.bf16.mxu0 %v9717_v26  ;;  %v9760_v26 = vld [vmem:[#allocation5 + $0x1360] ss:$44 sps:$4 sm:$0xff]   ;;  %v9764_v28 = vld [vmem:[#allocation5 + $0xbd8] ss:$44 sps:$4 sm:$0xff]  }
 0x331   :  { %8330 = vmatpush3.bf16.msra.mxu1 %v9719_v30  ;;  %v9768_v30 = vld [vmem:[#allocation5 + $0xef0] ss:$44 sps:$4 sm:$0xff]  }
 0x332   :  { %6959 = vmatpush1.bf16.msra.mxu0 %v9715_v29  ;;  %8331 = vmatprep.subr.bf16.mxu1 %v9723_v32  ;;  %v9767_v29 = vld [vmem:[#allocation5 + $0x13bc] ss:$44 sps:$4 sm:$0xff]   ;;  %v9772_v32 = vld [vmem:[#allocation5 + $0x1414] ss:$44 sps:$4 sm:$0xff]  }
 0x333   :  { %6971 = vmatprep.subr.bf16.mxu0 %v9722_v31  ;;  %v9769_v31 = vld [vmem:[#allocation5 + $0xc30] ss:$44 sps:$4 sm:$0xff]  }
 0x335   :  { %6961 = vmatmul.mubr.bf16.vlgmr.msra.gmra.mrb[8].mxu0 %v10045_v35  ;;  %8332 = vmatpush3.bf16.msra.mxu1 %v9724_v39  ;;  %v9770_v39 = vld [vmem:[#allocation5 + $0x1410] ss:$44 sps:$4 sm:$0xff]  }
 0x336   :  { %6972 = vmatpush1.bf16.msra.mxu0 %v9720_v33  ;;  %8333 = vmatprep.subr.bf16.mxu1 %v9728_v37  ;;  %v9773_v33 = vld [vmem:[#allocation5 + $0xf48] ss:$44 sps:$4 sm:$0xff]   ;;  %v9778_v37 = vld [vmem:[#allocation5 + $0xfa0] ss:$44 sps:$4 sm:$0xff]  }
 0x337   :  { %6973 = vmatprep.subr.bf16.mxu0 %v9727_v36  ;;  %7003 = vmatprep.mubr.bf16.mxu0 %v10048_v46  ;;  %v9777_v36 = vld [vmem:[#allocation5 + $0x146c] ss:$44 sps:$4 sm:$0xff]  }
 0x339   :  { %8334 = vmatpush3.bf16.msra.mxu1 %v9729_v42  ;;  %v9779_v42 = vld [vmem:[#allocation5 + $0xce0] ss:$44 sps:$4 sm:$0xff]  }
 0x33a   :  { %6974 = vmatpush1.bf16.msra.mxu0 %v9725_v13  ;;  %8335 = vmatprep.subr.bf16.mxu1 %v9733_v43  ;;  %v9775_v13 = vld [vmem:[#allocation5 + $0x1468] ss:$44 sps:$4 sm:$0xff]   ;;  %v9783_v43 = vld [vmem:[#allocation5 + $0xff8] ss:$44 sps:$4 sm:$0xff]  }
 0x33b   :  { %6975 = vmatprep.subr.bf16.mxu0 %v9732_v38  ;;  %v9782_v38 = vld [vmem:[#allocation5 + $0x14c4] ss:$44 sps:$4 sm:$0xff]  }
 0x33d   :  { %8336 = vmatpush3.bf16.msra.mxu1 %v9734_v40  ;;  %v9784_v40 = vld [vmem:[#allocation5 + $0xd38] ss:$44 sps:$4 sm:$0xff]  }
 0x33e   :  { %6976 = vmatpush1.bf16.msra.mxu0 %v9730_v54  ;;  %8337 = vmatprep.subr.bf16.mxu1 %v9738_v60  ;;  %v9780_v54 = vld [vmem:[#allocation5 + $0x14c0] ss:$44 sps:$4 sm:$0xff]   ;;  %v9788_v60 = vld [vmem:[#allocation5 + $0x1050] ss:$44 sps:$4 sm:$0xff]  }
 0x33f   :  { %6977 = vmatprep.subr.bf16.mxu0 %v9737_v41  ;;  %v9787_v41 = vld [vmem:[#allocation5 + $0x151c] ss:$44 sps:$4 sm:$0xff]  }
 0x341   :  { %8338 = vmatpush3.bf16.msra.mxu1 %v9739_v45  ;;  %v9789_v45 = vld [vmem:[#allocation5 + $0xd90] ss:$44 sps:$4 sm:$0xff]  }
 0x342   :  { %6978 = vmatpush1.bf16.msra.mxu0 %v9735_v44  ;;  %8339 = vmatprep.subr.bf16.mxu1 %v9743_v1  ;;  %v9785_v44 = vld [vmem:[#allocation5 + $0x1518] ss:$44 sps:$4 sm:$0xff]   ;;  %v9793_v1 = vld [vmem:[#allocation5 + $0x1368] ss:$44 sps:$4 sm:$0xff]  }
 0x343   :  { %6979 = vmatprep.subr.bf16.mxu0 %v9742_v48  ;;  %v9792_v48 = vld [vmem:[#allocation5 + $0x1574] ss:$44 sps:$4 sm:$0xff]  }
 0x345   :  { %8340 = vmatpush3.bf16.msra.mxu1 %v9744_v50  ;;  %v9797_v50 = vld [vmem:[#allocation5 + $0x15cc] ss:$44 sps:$4 sm:$0xff]  }
 0x346   :  { %6980 = vmatpush1.bf16.msra.mxu0 %v9740_v4  ;;  %8341 = vmatprep.subr.bf16.mxu1 %v9748_v58  ;;  %v9794_v4 = vld [vmem:[#allocation5 + $0x10a8] ss:$44 sps:$4 sm:$0xff]   ;;  %v9799_v58 = vld [vmem:[#allocation5 + $0x1100] ss:$44 sps:$4 sm:$0xff]  }
 0x347   :  { %6981 = vmatprep.subr.bf16.mxu0 %v9747_v57  ;;  %v9795_v57 = vld [vmem:[#allocation5 + $0x15c8] ss:$44 sps:$4 sm:$0xff]  }
 0x348   :  { %v6575_v6 = vpop.f32.mrb[4].mxu0 }
 0x349   :  { %v8445_v9 = vadd.f32 %v6575_v6, %v1096_v59  ;;  %v6577_v10 = vpop.f32.mrb[5].mxu0  ;;  %8342 = vmatpush3.bf16.msra.mxu1 %v9749_v3  ;;  %v9804_v3 = vld [vmem:[#allocation5 + $0x1158] ss:$44 sps:$4 sm:$0xff]   ;;  %v9809_v6 = vld [vmem:[#allocation5 + $0x11b0] ss:$44 sps:$4 sm:$0xff]  }
 0x34a   :  { %v8446_v11 = vadd.f32 %v6577_v10, %v1100_v63  ;;  %v6579_v12 = vpop.f32.mrb[6].mxu0  ;;  %6982 = vmatpush1.bf16.msra.mxu0 %v9745_v0  ;;  %8349 = vmatprep.subr.bf16.mxu1 %v9753_v5  ;;  %v9800_v0 = vld [vmem:[#allocation5 + $0x1620] ss:$44 sps:$4 sm:$0xff]   ;;  %v9808_v5 = vld [vmem:[#allocation5 + $0x1470] ss:$44 sps:$4 sm:$0xff]  }
 0x34b   :  { %7350 = vst [vmem:[#allocation7 + $0x20] sm:$0xff] %v8445_v9  ;;  %v8447_v17 = vadd.f32 %v6579_v12, %v1096_v59  ;;  %v6581_v18 = vpop.f32.mrb[7].mxu0  ;;  %6983 = vmatprep.subr.bf16.mxu0 %v9752_v53  ;;  %v9802_v59 = vld [vmem:[#allocation5 + $0x1624] ss:$44 sps:$4 sm:$0xff]   ;;  %v9807_v53 = vld [vmem:[#allocation5 + $0x167c] ss:$44 sps:$4 sm:$0xff]  }
 0x34c   :  { %7351 = vst [vmem:[#allocation7 + $0x28] sm:$0xff] %v8446_v11  ;;  %v8448_v20 = vadd.f32 %v6581_v18, %v1100_v63  ;;  %7174 = vmatmul.mubr.bf16.vlgmr.msra.gmra.mrb[20].mxu1 %v10028_v14  ;;  %v9765_v14 = vld [vmem:[#allocation5 + $0x13b8] ss:$44 sps:$4 sm:$0xff]   ;;  %v9812_v9 = vld [vmem:[#allocation5 + $0x16d4] ss:$44 sps:$4 sm:$0xff]  }
 0x34d   :  { %7361 = vst [vmem:[#allocation7 + $0x78] sm:$0xff] %v8447_v17  ;;  %8350 = vmatpush3.bf16.msra.mxu1 %v9754_v16  ;;  %7214 = vmatprep.mubr.bf16.mxu1 %v10042_v55  ;;  %v9774_v55 = vld [vmem:[#allocation5 + $0xc88] ss:$44 sps:$4 sm:$0xff]   ;;  %v9803_v63 = vld [vmem:[#allocation5 + $0x1418] ss:$44 sps:$4 sm:$0xff]  }
 0x34e   :  { %7362 = vst [vmem:[#allocation7 + $0x80] sm:$0xff] %v8448_v20  ;;  %6984 = vmatpush1.bf16.msra.mxu0 %v9750_v15  ;;  %8351 = vmatprep.subr.bf16.mxu1 %v9758_v19  ;;  %v9813_v10 = vld [vmem:[#allocation5 + $0x14c8] ss:$44 sps:$4 sm:$0xff]   ;;  %v9817_v12 = vld [vmem:[#allocation5 + $0x172c] ss:$44 sps:$4 sm:$0xff]  }
 0x34f   :  { %6985 = vmatprep.subr.bf16.mxu0 %v9757_v62  ;;  %v9814_v11 = vld [vmem:[#allocation5 + $0x1208] ss:$44 sps:$4 sm:$0xff]   ;;  %v9818_v15 = vld [vmem:[#allocation5 + $0x1520] ss:$44 sps:$4 sm:$0xff]   ;;  %v9822_v18 = vld [vmem:[#allocation5 + $0x1784] ss:$44 sps:$4 sm:$0xff]  }
 0x350   :  { %v9815_v16 = vld [vmem:[#allocation5 + $0x1728] ss:$44 sps:$4 sm:$0xff]   ;;  %v9819_v17 = vld [vmem:[#allocation5 + $0x1260] ss:$44 sps:$4 sm:$0xff]   ;;  %v9823_v62 = vld [vmem:[#allocation5 + $0x1578] ss:$44 sps:$4 sm:$0xff]  }
 0x351   :  { %8352 = vmatpush3.bf16.msra.mxu1 %v9759_v23  ;;  %v9820_v19 = vld [vmem:[#allocation5 + $0x1780] ss:$44 sps:$4 sm:$0xff]   ;;  %v9824_v20 = vld [vmem:[#allocation5 + $0x12b8] ss:$44 sps:$4 sm:$0xff]   ;;  %v9828_v23 = vld [vmem:[#allocation5 + $0x15d0] ss:$44 sps:$4 sm:$0xff]  }
 0x352   :  { %6986 = vmatpush1.bf16.msra.mxu0 %v9755_v22  ;;  %8353 = vmatprep.subr.bf16.mxu1 %v9763_v25  ;;  %v9827_v22 = vld [vmem:[#allocation5 + $0x17dc] ss:$44 sps:$4 sm:$0xff]  }
 0x353   :  { %6987 = vmatprep.subr.bf16.mxu0 %v9762_v24  ;;  %v9825_v24 = vld [vmem:[#allocation5 + $0x17d8] ss:$44 sps:$4 sm:$0xff]   ;;  %v9829_v25 = vld [vmem:[#allocation5 + $0x1310] ss:$44 sps:$4 sm:$0xff]  }
 0x355   :  { %8354 = vmatpush3.bf16.msra.mxu1 %v9764_v28  ;;  %v9833_v28 = vld [vmem:[#allocation5 + $0x18e8] ss:$44 sps:$4 sm:$0xff]  }
 0x356   :  { %6988 = vmatpush1.bf16.msra.mxu0 %v9760_v26  ;;  %8355 = vmatprep.subr.bf16.mxu1 %v9768_v30  ;;  %v9832_v26 = vld [vmem:[#allocation5 + $0x1834] ss:$44 sps:$4 sm:$0xff]  }
 0x357   :  { %6989 = vmatprep.subr.bf16.mxu0 %v9767_v29  ;;  %v9830_v29 = vld [vmem:[#allocation5 + $0x1830] ss:$44 sps:$4 sm:$0xff]   ;;  %v9834_v30 = vld [vmem:[#allocation5 + $0x1628] ss:$44 sps:$4 sm:$0xff]  }
 0x359   :  { %8356 = vmatpush3.bf16.msra.mxu1 %v9769_v31  ;;  %v9838_v31 = vld [vmem:[#allocation5 + $0x1940] ss:$44 sps:$4 sm:$0xff]  }
 0x35a   :  { %6990 = vmatpush1.bf16.msra.mxu0 %v9765_v14  ;;  %8357 = vmatprep.subr.bf16.mxu1 %v9773_v33  ;;  %v9837_v14 = vld [vmem:[#allocation5 + $0x188c] ss:$44 sps:$4 sm:$0xff]  }
 0x35b   :  { %6991 = vmatprep.subr.bf16.mxu0 %v9772_v32  ;;  %v9835_v32 = vld [vmem:[#allocation5 + $0x1888] ss:$44 sps:$4 sm:$0xff]   ;;  %v9839_v33 = vld [vmem:[#allocation5 + $0x1680] ss:$44 sps:$4 sm:$0xff]  }
 0x35d   :  { %8358 = vmatpush3.bf16.msra.mxu1 %v9774_v55  ;;  %v9843_v55 = vld [vmem:[#allocation5 + $0x1998] ss:$44 sps:$4 sm:$0xff]  }
 0x35e   :  { %6992 = vmatpush1.bf16.msra.mxu0 %v9770_v39  ;;  %8359 = vmatprep.subr.bf16.mxu1 %v9778_v37  ;;  %v9842_v39 = vld [vmem:[#allocation5 + $0x18e4] ss:$44 sps:$4 sm:$0xff]  }
 0x35f   :  { %6993 = vmatprep.subr.bf16.mxu0 %v9777_v36  ;;  %v9840_v36 = vld [vmem:[#allocation5 + $0x18e0] ss:$44 sps:$4 sm:$0xff]   ;;  %v9844_v37 = vld [vmem:[#allocation5 + $0x16d8] ss:$44 sps:$4 sm:$0xff]  }
 0x361   :  { %8360 = vmatpush3.bf16.msra.mxu1 %v9779_v42  ;;  %v9848_v42 = vld [vmem:[#allocation5 + $0x19f0] ss:$44 sps:$4 sm:$0xff]  }
 0x362   :  { %6994 = vmatpush1.bf16.msra.mxu0 %v9775_v13  ;;  %8361 = vmatprep.subr.bf16.mxu1 %v9783_v43  ;;  %v9847_v13 = vld [vmem:[#allocation5 + $0x193c] ss:$44 sps:$4 sm:$0xff]   ;;  %v9852_v43 = vld [vmem:[#allocation5 + $0x1994] ss:$44 sps:$4 sm:$0xff]  }
 0x363   :  { %6995 = vmatprep.subr.bf16.mxu0 %v9782_v38  ;;  %v9849_v38 = vld [vmem:[#allocation5 + $0x1730] ss:$44 sps:$4 sm:$0xff]  }
 0x365   :  { %8362 = vmatpush3.bf16.msra.mxu1 %v9784_v40  ;;  %v9850_v40 = vld [vmem:[#allocation5 + $0x1990] ss:$44 sps:$4 sm:$0xff]  }
 0x366   :  { %6996 = vmatpush1.bf16.msra.mxu0 %v9780_v54  ;;  %8363 = vmatprep.subr.bf16.mxu1 %v9788_v60  ;;  %v9853_v54 = vld [vmem:[#allocation5 + $0x1a48] ss:$44 sps:$4 sm:$0xff]   ;;  %v9858_v60 = vld [vmem:[#allocation5 + $0x1aa0] ss:$44 sps:$4 sm:$0xff]  }
 0x367   :  { %6997 = vmatprep.subr.bf16.mxu0 %v9787_v41  ;;  %v9857_v41 = vld [vmem:[#allocation5 + $0x19ec] ss:$44 sps:$4 sm:$0xff]  }
 0x369   :  { %8364 = vmatpush3.bf16.msra.mxu1 %v9789_v45  ;;  %v9859_v45 = vld [vmem:[#allocation5 + $0x17e0] ss:$44 sps:$4 sm:$0xff]  }
 0x36a   :  { %6998 = vmatpush1.bf16.msra.mxu0 %v9785_v44  ;;  %8371 = vmatprep.subr.bf16.mxu1 %v9793_v1  ;;  %v9855_v44 = vld [vmem:[#allocation5 + $0x19e8] ss:$44 sps:$4 sm:$0xff]   ;;  %v9863_v1 = vld [vmem:[#allocation5 + $0x1af8] ss:$44 sps:$4 sm:$0xff]  }
 0x36b   :  { %6999 = vmatprep.subr.bf16.mxu0 %v9792_v48  ;;  %v9862_v48 = vld [vmem:[#allocation5 + $0x1a44] ss:$44 sps:$4 sm:$0xff]  }
 0x36c   :  { %7215 = vmatmul.mubr.bf16.vlgmr.msra.gmra.mrb[24].mxu1 %v10045_v35  ;;  %v9805_v35 = vld [vmem:[#allocation5 + $0x1678] ss:$44 sps:$4 sm:$0xff]  }
 0x36d   :  { %8372 = vmatpush3.bf16.msra.mxu1 %v9794_v4  ;;  %7255 = vmatprep.mubr.bf16.mxu1 %v10048_v46  ;;  %v9810_v46 = vld [vmem:[#allocation5 + $0x16d0] ss:$44 sps:$4 sm:$0xff]   ;;  %v9864_v4 = vld [vmem:[#allocation5 + $0x1838] ss:$44 sps:$4 sm:$0xff]  }
 0x36e   :  { %7000 = vmatpush1.bf16.msra.mxu0 %v9790_v49  ;;  %8373 = vmatprep.subr.bf16.mxu1 %v9798_v51  ;;  %v9860_v49 = vld [vmem:[#allocation5 + $0x1a40] ss:$44 sps:$4 sm:$0xff]   ;;  %v9868_v51 = vld [vmem:[#allocation5 + $0x1b50] ss:$44 sps:$4 sm:$0xff]  }
 0x36f   :  { %7001 = vmatprep.subr.bf16.mxu0 %v9797_v50  ;;  %v9867_v50 = vld [vmem:[#allocation5 + $0x1a9c] ss:$44 sps:$4 sm:$0xff]  }
 0x371   :  { %8374 = vmatpush3.bf16.msra.mxu1 %v9799_v58  ;;  %v9869_v58 = vld [vmem:[#allocation5 + $0x1890] ss:$44 sps:$4 sm:$0xff]  }
 0x372   :  { %7002 = vmatpush1.bf16.msra.mxu0 %v9795_v57  ;;  %8375 = vmatprep.subr.bf16.mxu1 %v9803_v63  ;;  %v9865_v57 = vld [vmem:[#allocation5 + $0x1a98] ss:$44 sps:$4 sm:$0xff]   ;;  %v9870_v63 = vld [vmem:[#allocation5 + $0x1af0] ss:$44 sps:$4 sm:$0xff]  }
 0x373   :  { %7014 = vmatprep.subr.bf16.mxu0 %v9802_v59  ;;  %v9872_v59 = vld [vmem:[#allocation5 + $0x1af4] ss:$44 sps:$4 sm:$0xff]  }
 0x375   :  { %7004 = vmatmul.mubr.bf16.vlgmr.msra.gmra.mrb[8].mxu0 %v10053_v52  ;;  %8376 = vmatpush3.bf16.msra.mxu1 %v9804_v3  ;;  %v9970_v3 = vmov 0.0  }
 0x376   :  { %7015 = vmatpush1.bf16.msra.mxu0 %v9800_v0  ;;  %8377 = vmatprep.subr.bf16.mxu1 %v9808_v5  ;;  %v9873_v0 = vld [vmem:[#allocation5 + $0x1ba8] ss:$44 sps:$4 sm:$0xff]  }
 0x377   :  { %7016 = vmatprep.subr.bf16.mxu0 %v9807_v53  ;;  %7046 = vmatprep.mubr.bf16.mxu0 %v10055_v61  ;;  %v9876_v53 = vld [vmem:[#allocation5 + $0x1b4c] ss:$44 sps:$4 sm:$0xff]   ;;  %v9874_v5 = vld [vmem:[#allocation5 + $0x1b48] ss:$44 sps:$4 sm:$0xff]  }
 0x379   :  { %8378 = vmatpush3.bf16.msra.mxu1 %v9809_v6  ;;  %v9881_v6 = vld [vmem:[#allocation5 + $0x1c58] ss:$44 sps:$4 sm:$0x7f]  }
 0x37a   :  { %7017 = vmatpush1.bf16.msra.mxu0 %v9805_v35  ;;  %8379 = vmatprep.subr.bf16.mxu1 %v9813_v10  ;;  %v9877_v35 = vld [vmem:[#allocation5 + $0x1c00] ss:$44 sps:$4 sm:$0xff]  }
 0x37b   :  { %7018 = vmatprep.subr.bf16.mxu0 %v9812_v9  ;;  %v9880_v9 = vld [vmem:[#allocation5 + $0x1ba4] ss:$44 sps:$4 sm:$0xff]   ;;  %v9878_v10 = vld [vmem:[#allocation5 + $0x1ba0] ss:$44 sps:$4 sm:$0xff]  }
 0x37d   :  { %8380 = vmatpush3.bf16.msra.mxu1 %v9814_v11  ;;  %v9884_v11 = vld [vmem:[#allocation5 + $0x1bfc] ss:$44 sps:$4 sm:$0xff]  }
 0x37e   :  { %7019 = vmatpush1.bf16.msra.mxu0 %v9810_v46  ;;  %8381 = vmatprep.subr.bf16.mxu1 %v9818_v15  ;;  %v5808_v46 = vand.u32 %v9881_v6, %v10030_v21  ;;  %v9882_v15 = vld [vmem:[#allocation5 + $0x1bf8] ss:$44 sps:$4 sm:$0xff]  }
 0x37f   :  { %7020 = vmatprep.subr.bf16.mxu0 %v9817_v12  ;;  %v9887_v12 = vld [vmem:[#allocation5 + $0x1c54] ss:$44 sps:$4 sm:$0x7f]  }
 0x381   :  { %8382 = vmatpush3.bf16.msra.mxu1 %v9819_v17  ;;  %v5805_v17 = vand.u32 %v9887_v12, %v10030_v21 }
 0x382   :  { %7021 = vmatpush1.bf16.msra.mxu0 %v9815_v16  ;;  %8383 = vmatprep.subr.bf16.mxu1 %v9823_v62  ;;  %v9885_v16 = vld [vmem:[#allocation5 + $0x1c50] ss:$44 sps:$4 sm:$0x7f]   ;;  %v1107_v62 = vsub.s32 7, %v10098_v56 }
 0x383   :  { %7022 = vmatprep.subr.bf16.mxu0 %v9822_v18  ;;  %v5802_v18 = vand.u32 %v9885_v16, %v10030_v21 }
 0x385   :  { %8384 = vmatpush3.bf16.msra.mxu1 %v9824_v20 }
 0x386   :  { %7023 = vmatpush1.bf16.msra.mxu0 %v9820_v19  ;;  %8385 = vmatprep.subr.bf16.mxu1 %v9828_v23  ;;  %v9889_v19 = vld [vmem:[%s10215_s2] sm:$0xff] }
 0x387   :  { %7024 = vmatprep.subr.bf16.mxu0 %v9827_v22  ;;  %v1108_v20 = vrot.slane %v9889_v19, %v1107_v62 }
 0x389   :  { %8386 = vmatpush3.bf16.msra.mxu1 %v9829_v25 }
 0x38a   :  { %7025 = vmatpush1.bf16.msra.mxu0 %v9825_v24  ;;  %8393 = vmatprep.subr.bf16.mxu1 %v9833_v28 }
 0x38b   :  { %7026 = vmatprep.subr.bf16.mxu0 %v9832_v26 }
 0x38c   :  { %7256 = vmatmul.mubr.bf16.vlgmr.msra.gmra.mrb[28].mxu1 %v10053_v52  ;;  %v9845_v52 = vld [vmem:[#allocation5 + $0x1938] ss:$44 sps:$4 sm:$0xff]  }
 0x38d   :  { %8394 = vmatpush3.bf16.msra.mxu1 %v9834_v30  ;;  %7296 = vmatprep.mubr.bf16.mxu1 %v10055_v61  ;;  %v9854_v61 = vld [vmem:[#allocation5 + $0x1788] ss:$44 sps:$4 sm:$0xff]  }
 0x38e   :  { %7027 = vmatpush1.bf16.msra.mxu0 %v9830_v29  ;;  %8395 = vmatprep.subr.bf16.mxu1 %v9838_v31 }
 0x38f   :  { %7028 = vmatprep.subr.bf16.mxu0 %v9837_v14 }
 0x391   :  { %8396 = vmatpush3.bf16.msra.mxu1 %v9839_v33 }
 0x392   :  { %7029 = vmatpush1.bf16.msra.mxu0 %v9835_v32  ;;  %8397 = vmatprep.subr.bf16.mxu1 %v9843_v55 }
 0x393   :  { %7030 = vmatprep.subr.bf16.mxu0 %v9842_v39  ;;  %v1074_v39 = vld [vmem:[%s10215_s2 + $0x8] sm:$0x7]  ;;  %s9972_s2 = smov [#allocation7]  }
 0x394   :  { %v1120_v55 = vrot.slane %v1074_v39, %v1087_v47  ;;  %v1116_v62 = vrot.slane %v1074_v39, %v1083_v7  ;;  %s7373_s19 = sshll.u32 %s9972_s2, 4  ;;  %s7374_s19 = int_to_ptr.vmem [resolvable:$true] %s7373_s19 }
 0x395   :  { %8398 = vmatpush3.bf16.msra.mxu1 %v9844_v37  ;;  %s9934_s20 = scalar_lea.vmem %s7374_s19, 2816  ;;  %p9939_p3 = scmp.lt.s32.totalorder %s7374_s19, %s7374_s19 }
 0x396   :  { %7031 = vmatpush1.bf16.msra.mxu0 %v9840_v36  ;;  %8399 = vmatprep.subr.bf16.mxu1 %v9848_v42  ;;  %p9935_p2 = scmp.ne.s32.totalorder %s7374_s19, %s9934_s20  ;;  %p9940_p4 = scmp.lt.s32.totalorder %s9934_s20, %s9934_s20 }
 0x397   :  { %7032 = vmatprep.subr.bf16.mxu0 %v9847_v13 }
 0x398   :  { %p9941_p5 = por %p9940_p4, %p9939_p3 }
 0x399   :  { %8400 = vmatpush3.bf16.msra.mxu1 %v9849_v38 }
 0x39a   :  { %7033 = vmatpush1.bf16.msra.mxu0 %v9845_v52  ;;  %8401 = vmatprep.subr.bf16.mxu1 %v9853_v54  ;;  %p9942_p6 = pnand %p9941_p5, %p9935_p2 }
 0x39b   :  { %7034 = vmatprep.subr.bf16.mxu0 %v9852_v43 }
 0x39d   :  { %8402 = vmatpush3.bf16.msra.mxu1 %v9854_v61 }
 0x39e   :  { %7035 = vmatpush1.bf16.msra.mxu0 %v9850_v40  ;;  %8403 = vmatprep.subr.bf16.mxu1 %v9858_v60 }
 0x39f   :  { %7036 = vmatprep.subr.bf16.mxu0 %v9857_v41 }
 0x3a1   :  { %8404 = vmatpush3.bf16.msra.mxu1 %v9859_v45 }
 0x3a2   :  { %7037 = vmatpush1.bf16.msra.mxu0 %v9855_v44  ;;  %8405 = vmatprep.subr.bf16.mxu1 %v9863_v1 }
 0x3a3   :  { %7038 = vmatprep.subr.bf16.mxu0 %v9862_v48 }
 0x3a5   :  { %8406 = vmatpush3.bf16.msra.mxu1 %v9864_v4 }
 0x3a6   :  { %7039 = vmatpush1.bf16.msra.mxu0 %v9860_v49  ;;  %8407 = vmatprep.subr.bf16.mxu1 %v9868_v51 }
 0x3a7   :  { %7040 = vmatprep.subr.bf16.mxu0 %v9867_v50 }
 0x3a9   :  { %8408 = vmatpush3.bf16.msra.mxu1 %v9869_v58 }
 0x3aa   :  { %7041 = vmatpush1.bf16.msra.mxu0 %v9865_v57  ;;  %8419 = vmatprep.subr.bf16.mxu1 %v9970_v3 }
 0x3ab   :  { %7042 = vmatprep.subr.bf16.mxu0 %v9872_v59 }
 0x3ac   :  { %7297 = vmatmul.mubr.bf16.vlgmr.msra.gmra.mrb[32].mxu1 %v10061_v8 }
 0x3ad   :  { %8420 = vmatpush3.bf16.msra.mxu1 %v9873_v0  ;;  %8425 = vmatprep.mubr.msk.bf16.mxu1 %vm9971_vm3, %v9970_v3 }
 0x3ae   :  { %7043 = vmatpush1.bf16.msra.mxu0 %v9870_v63  ;;  %8421 = vmatprep.subr.bf16.mxu1 %v9970_v3 }
 0x3af   :  { %7044 = vmatprep.subr.bf16.mxu0 %v9876_v53 }
 0x3b1   :  { %8422 = vmatpush3.bf16.msra.mxu1 %v9877_v35 }
 0x3b2   :  { %7045 = vmatpush1.bf16.msra.mxu0 %v9874_v5  ;;  %8423 = vmatprep.subr.bf16.mxu1 %v9970_v3 }
 0x3b3   :  { %7057 = vmatprep.subr.bf16.mxu0 %v9880_v9 }
 0x3b5   :  { %7047 = vmatmul.mubr.bf16.vlgmr.msra.gmra.mrb[8].mxu0 %v10061_v8  ;;  %8424 = vmatpush3.bf16.msra.mxu1 %v5808_v46  ;;  %v1103_v8 = vsub.s32 6, %v10098_v56 }
 0x3b6   :  { %7058 = vmatpush1.bf16.msra.mxu0 %v9878_v10  ;;  %7089 = vmatprep.mubr.bf16.mxu0 %v9969_v27 }
 0x3b7   :  { %7059 = vmatprep.subr.bf16.mxu0 %v9884_v11  ;;  %v1104_v27 = vrot.slane %v9889_v19, %v1103_v8  ;;  %v1112_v8 = vrot.slane %v1074_v39, %v1079_v2 }
 0x3b8   :  { %8426 = vmatmul.mubr.msk.bf16.vlgmr.msra.gmra.mrb[36].mxu1 %vm5769_vm2, %v10037_v34 }
 0x3ba   :  { %7060 = vmatpush1.bf16.msra.mxu0 %v9882_v15 }
 0x3bb   :  { %7061 = vmatprep.subr.bf16.mxu0 %v5805_v17 }
 0x3be   :  { %7062 = vmatpush1.bf16.msra.mxu0 %v5802_v18 }
 0x3c1   :  { %8303 = vmatmul.mubr.msk.bf16.vlgmr.msra.gmra.mrb[8].mxu0 %vm5769_vm2, %v10037_v34 }
 0x3df   :  { %v6833_v22 = vpop.f32.mrb[12].mxu1 }
 0x3e0   :  { %v8449_v23 = vadd.f32 %v6833_v22, %v1104_v27  ;;  %v6835_v24 = vpop.f32.mrb[13].mxu1 }
 0x3e1   :  { %v8450_v25 = vadd.f32 %v6835_v24, %v1108_v20  ;;  %v6837_v21 = vpop.f32.mrb[14].mxu1 }
 0x3e2   :  { %7352 = vst [vmem:[#allocation7 + $0x30] sm:$0xff] %v8449_v23  ;;  %v8451_v26 = vadd.f32 %v6837_v21, %v1104_v27  ;;  %v6839_v28 = vpop.f32.mrb[15].mxu1 }
 0x3e3   :  { %7353 = vst [vmem:[#allocation7 + $0x38] sm:$0xff] %v8450_v25  ;;  %v8452_v34 = vadd.f32 %v6839_v28, %v1108_v20 }
 0x3e4   :  { %7363 = vst [vmem:[#allocation7 + $0x88] sm:$0xff] %v8451_v26 }
 0x3e5   :  { %7364 = vst [vmem:[#allocation7 + $0x90] sm:$0xff] %v8452_v34 }
 0x3ff   :  { %v8321_v29 = vpop.f32.mrb[16].mxu1 }
 0x400   :  { %v8322_v30 = vpop.f32.mrb[17].mxu1 }
 0x401   :  { %v8323_v14 = vadd.f32 %v8322_v30, %v8321_v29  ;;  %v8324_v31 = vpop.f32.mrb[18].mxu1 }
 0x402   :  { %v8325_v32 = vpop.f32.mrb[19].mxu1 }
 0x403   :  { %v8326_v33 = vadd.f32 %v8325_v32, %v8324_v31  ;;  %v7135_v13 = vadd.f32 %v8323_v14, %v1120_v55 }
 0x405   :  { %v7138_v43 = vadd.f32 %v8326_v33, %v1120_v55 }
 0x41f   :  { %v8343_v36 = vpop.f32.mrb[20].mxu1 }
 0x420   :  { %v8344_v37 = vpop.f32.mrb[21].mxu1 }
 0x421   :  { %v8345_v42 = vadd.f32 %v8344_v37, %v8343_v36  ;;  %v8346_v52 = vpop.f32.mrb[22].mxu1 }
 0x422   :  { %v8347_v38 = vpop.f32.mrb[23].mxu1 }
 0x423   :  { %v7176_v54 = vadd.f32 %v8345_v42, %v7135_v13  ;;  %v8348_v40 = vadd.f32 %v8347_v38, %v8346_v52 }
 0x425   :  { %v7179_v61 = vadd.f32 %v8348_v40, %v7138_v43 }
 0x43f   :  { %v8365_v41 = vpop.f32.mrb[24].mxu1 }
 0x440   :  { %v8366_v60 = vpop.f32.mrb[25].mxu1 }
 0x441   :  { %v8367_v44 = vadd.f32 %v8366_v60, %v8365_v41  ;;  %v8368_v45 = vpop.f32.mrb[26].mxu1 }
 0x442   :  { %v8369_v48 = vpop.f32.mrb[27].mxu1 }
 0x443   :  { %v7217_v1 = vadd.f32 %v8367_v44, %v7176_v54  ;;  %v8370_v49 = vadd.f32 %v8369_v48, %v8368_v45 }
 0x445   :  { %v7220_v4 = vadd.f32 %v8370_v49, %v7179_v61 }
 0x45f   :  { %v8387_v50 = vpop.f32.mrb[28].mxu1 }
 0x460   :  { %v8388_v47 = vpop.f32.mrb[29].mxu1 }
 0x461   :  { %v8389_v51 = vadd.f32 %v8388_v47, %v8387_v50  ;;  %v8390_v57 = vpop.f32.mrb[30].mxu1 }
 0x462   :  { %v8391_v58 = vpop.f32.mrb[31].mxu1 }
 0x463   :  { %v7258_v59 = vadd.f32 %v8389_v51, %v7217_v1  ;;  %v8392_v63 = vadd.f32 %v8391_v58, %v8390_v57 }
 0x465   :  { %v7261_v0 = vadd.f32 %v8392_v63, %v7220_v4 }
 0x47f   :  { %v8409_v3 = vpop.f32.mrb[32].mxu1 }
 0x480   :  { %v8410_v53 = vpop.f32.mrb[33].mxu1 }
 0x481   :  { %v8411_v5 = vadd.f32 %v8410_v53, %v8409_v3  ;;  %v8412_v35 = vpop.f32.mrb[34].mxu1 }
 0x482   :  { %v8413_v6 = vpop.f32.mrb[35].mxu1 }
 0x483   :  { %v8414_v9 = vadd.f32 %v8413_v6, %v8412_v35  ;;  %v7299_v10 = vadd.f32 %v8411_v5, %v7258_v59 }
 0x485   :  { %v7302_v46 = vadd.f32 %v8414_v9, %v7261_v0 }
 0x48b   :  { %v7339_v11 = vpop.f32.mrb[36].mxu1 }
 0x48c   :  { %v7340_v12 = vadd.f32 %v7339_v11, %v7299_v10  ;;  %v8427_v15 = vpop.f32.mrb[37].mxu1 }
 0x48d   :  { %v7342_v16 = vpop.f32.mrb[38].mxu1 }
 0x48e   :  { %7356 = vst.msk [vmem:[#allocation7 + $0x50] sm:$0xff] %vm5769_vm2, %v7340_v12  ;;  %v7343_v17 = vadd.f32 %v7342_v16, %v7302_v46  ;;  %v8428_v18 = vpop.f32.mrb[39].mxu1 }
 0x490   :  { %7367 = vst.msk [vmem:[#allocation7 + $0xa8] sm:$0xff] %vm5769_vm2, %v7343_v17 }
 0x494   :  { %v7091_v19 = vpop.f32.mrb[8].mxu0 }
 0x495   :  { %v8453_v27 = vadd.f32 %v7091_v19, %v1112_v8  ;;  %v7093_v20 = vpop.f32.mrb[9].mxu0 }
 0x496   :  { %v8454_v22 = vadd.f32 %v7093_v20, %v1116_v62  ;;  %v7095_v23 = vpop.f32.mrb[10].mxu0 }
 0x497   :  { %7354 = vst [vmem:[#allocation7 + $0x40] sm:$0xff] %v8453_v27  ;;  %v8455_v24 = vadd.f32 %v7095_v23, %v1112_v8  ;;  %v7097_v25 = vpop.f32.mrb[11].mxu0 }
 0x498   :  { %7355 = vst [vmem:[#allocation7 + $0x48] sm:$0xff] %v8454_v22  ;;  %v8456_v21 = vadd.f32 %v7097_v25, %v1116_v62 }
 0x499   :  { %7365 = vst [vmem:[#allocation7 + $0x98] sm:$0xff] %v8455_v24 }
 0x49a   :  { %7366 = vst [vmem:[#allocation7 + $0xa0] sm:$0xff] %v8456_v21 }
 0x49b   :  { %9945 = shalt.err (!%p9942_p6)
}
 0x49c   :  { %s9946_s25 = scalar_lea.hbm %s10216_s3, 2816 }
 0x49d   :  { %p9947_p7 = scmp.ne.s32.totalorder %s10216_s3, %s9946_s25  ;;  %p9950_p8 = scmp.lt.u32.totalorder %s9946_s25, %s10216_s3 }
 0x49f   :  { %p9952_p9 = pnand %p9950_p8, %p9947_p7 }
 0x4a1   :  { %9955 = shalt.err (!%p9952_p9)
}
 0x4a2   :  { %7379 = dma.vmem_to_hbm [thread:$0]  %s7374_s19, 2816, %s10216_s3, [#allocation4], %s9963_s22, %s9963_s22, %s9964_s23  }
 0x4a3   :  { %9960 = dma.done.wait [#allocation4], 2816  }
 0x4a4   :  { %9961 = vsyncadd [#allocation4], 4294964480 }
 0x4a5   :  { %7383 = vsyncpa [#allocation3], 1 }
 0x4a6   :  { %7384 = vsyncpa [#allocation6], 1 }
 0x4a7   :  { %7385 = vsyncpa [#allocation4], 1 }

</bundles_post_ra>
